<compile_context>
chip_gen: v7x
topology: tpu7x:2x2x1
jax: 0.10.0
libtpu: 0.0.40
codegen_flags: <defaults>
</compile_context>

<pallas_src>
import functools

import jax
import jax.numpy as jnp
from jax import lax
from jax.experimental import pallas as pl
from jax.experimental.pallas import tpu as pltpu

LEAKY_SLOPE = 0.2
BN_EPS = 1e-5


def _leaky(x):
    return jnp.where(x >= 0, x, LEAKY_SLOPE * x)


# --------------------------------------------------------------------------
# Kernel 1: negative pairwise squared distances (the matmul inside knn()).
#   pd[i, j] = -||x_i - x_j||^2 = 2 x_i.x_j - ||x_i||^2 - ||x_j||^2
# --------------------------------------------------------------------------
def pdist_kernel(x_ref, o_ref):
    x = x_ref[0]                                                  # (N, C) f32
    inner = lax.dot_general(x, x, (((1,), (1,)), ((), ())),
                            preferred_element_type=jnp.float32)   # (N, N)
    xx = x * x
    sq_col = jnp.sum(xx, axis=1, keepdims=True)                   # (N, 1)  ||x_i||^2
    ones_row = jnp.ones((1, x.shape[1]), jnp.float32)
    sq_row = lax.dot_general(ones_row, xx, (((1,), (1,)), ((), ())),
                             preferred_element_type=jnp.float32)  # (1, N)  ||x_j||^2
    o_ref[0] = 2.0 * inner - sq_col - sq_row


def neg_pairwise_dist(x):
    # x: (B, N, C) -> (B, N, N), kept in f32 so k-NN ordering matches PyTorch.
    B, N, C = x.shape
    return pl.pallas_call(
        pdist_kernel,
        out_shape=jax.ShapeDtypeStruct((B, N, N), jnp.float32),
        grid=(B,),
        in_specs=[pl.BlockSpec((1, N, C), lambda b: (b, 0, 0))],
        out_specs=pl.BlockSpec((1, N, N), lambda b: (b, 0, 0)),
        compiler_params=pltpu.CompilerParams(dimension_semantics=("parallel",)),
    )(x)


# --------------------------------------------------------------------------
# Kernel 2: one EdgeConv block, gridded over (batch, neighbor-slot).
#   h_j = neigh_j @ (Wd*s) + x @ ((Wc - Wd)*s) + shift ; LeakyReLU ; max over j
#   (BN scale s already folded into the bf16 weights.)
# --------------------------------------------------------------------------
def edge_conv_kernel(x_ref, nb_ref, wn_ref, wc_ref, shift_ref, o_ref, cen_ref):
    j = pl.program_id(1)

    @pl.when(j == 0)
    def _():
        # Center contribution: computed once per batch element, reused for all k.
        cen_ref[...] = (jnp.dot(x_ref[0].astype(jnp.bfloat16), wc_ref[...],
                                preferred_element_type=jnp.float32)
                        + shift_ref[...])

    h = (jnp.dot(nb_ref[0, 0].astype(jnp.bfloat16), wn_ref[...],
                 preferred_element_type=jnp.float32)
         + cen_ref[...])
    h = _leaky(h)                                                 # (N, Cout)

    @pl.when(j == 0)
    def _():
        o_ref[0] = h

    @pl.when(j > 0)
    def _():
        o_ref[0] = jnp.maximum(o_ref[0], h)                       # running max over k


def edge_conv(x, neigh, w_n, w_c, shift):
    # x: (B, N, Cin); neigh: (B, k, N, Cin) gathered neighbor features.
    B, N, Cin = x.shape
    k = neigh.shape[1]
    Cout = w_n.shape[1]
    return pl.pallas_call(
        edge_conv_kernel,
        out_shape=jax.ShapeDtypeStruct((B, N, Cout), jnp.float32),
        grid=(B, k),
        in_specs=[
            pl.BlockSpec((1, N, Cin), lambda b, j: (b, 0, 0)),
            pl.BlockSpec((1, 1, N, Cin), lambda b, j: (b, j, 0, 0)),
            pl.BlockSpec((Cin, Cout), lambda b, j: (0, 0)),
            pl.BlockSpec((Cin, Cout), lambda b, j: (0, 0)),
            pl.BlockSpec((1, Cout), lambda b, j: (0, 0)),
        ],
        out_specs=pl.BlockSpec((1, N, Cout), lambda b, j: (b, 0, 0)),
        scratch_shapes=[pltpu.VMEM((N, Cout), jnp.float32)],
        compiler_params=pltpu.CompilerParams(
            dimension_semantics=("parallel", "arbitrary")),
    )(x, neigh, w_n, w_c, shift)


# --------------------------------------------------------------------------
# Kernel 3a: conv5 (1x1 conv over the concatenated 512 channels) + global
#   max / avg pooling, gridded over batch.  w5 is pre-split into the four
#   per-input chunks (avoids any in-kernel concat of x1..x4).
# --------------------------------------------------------------------------
def conv5_pool_kernel(x1_ref, x2_ref, x3_ref, x4_ref,
                      w51_ref, w52_ref, w53_ref, w54_ref, shift_ref,
                      feat_ref):
    h = (jnp.dot(x1_ref[0].astype(jnp.bfloat16), w51_ref[...],
                 preferred_element_type=jnp.float32)
         + jnp.dot(x2_ref[0].astype(jnp.bfloat16), w52_ref[...],
                   preferred_element_type=jnp.float32)
         + jnp.dot(x3_ref[0].astype(jnp.bfloat16), w53_ref[...],
                   preferred_element_type=jnp.float32)
         + jnp.dot(x4_ref[0].astype(jnp.bfloat16), w54_ref[...],
                   preferred_element_type=jnp.float32))
    h = _leaky(h + shift_ref[...])                                # (N, E)
    n, e = h.shape
    feat_ref[0, :, 0:e] = jnp.max(h, axis=0, keepdims=True)               # max pool
    feat_ref[0, :, e:2 * e] = jnp.sum(h, axis=0, keepdims=True) * (1.0 / n)  # avg pool


def conv5_pool(x1, x2, x3, x4, w5_parts, shift5):
    B, N, _ = x1.shape
    E = shift5.shape[1]
    w51, w52, w53, w54 = w5_parts
    return pl.pallas_call(
        conv5_pool_kernel,
        out_shape=jax.ShapeDtypeStruct((B, 1, 2 * E), jnp.float32),
        grid=(B,),
        in_specs=[
            pl.BlockSpec((1, N, x1.shape[2]), lambda b: (b, 0, 0)),
            pl.BlockSpec((1, N, x2.shape[2]), lambda b: (b, 0, 0)),
            pl.BlockSpec((1, N, x3.shape[2]), lambda b: (b, 0, 0)),
            pl.BlockSpec((1, N, x4.shape[2]), lambda b: (b, 0, 0)),
            pl.BlockSpec(w51.shape, lambda b: (0, 0)),
            pl.BlockSpec(w52.shape, lambda b: (0, 0)),
            pl.BlockSpec(w53.shape, lambda b: (0, 0)),
            pl.BlockSpec(w54.shape, lambda b: (0, 0)),
            pl.BlockSpec(shift5.shape, lambda b: (0, 0)),
        ],
        out_specs=pl.BlockSpec((1, 1, 2 * E), lambda b: (b, 0, 0)),
        compiler_params=pltpu.CompilerParams(dimension_semantics=("parallel",)),
    )(x1, x2, x3, x4, w51, w52, w53, w54, shift5)


# --------------------------------------------------------------------------
# Kernel 3b: tiny classifier MLP on (B, 2E) pooled features.
# --------------------------------------------------------------------------
def mlp_head_kernel(feat_ref, wl1_ref, b6_ref, wl2_ref, b7_ref, wl3_ref, b3_ref,
                    o_ref):
    z = _leaky(jnp.dot(feat_ref[...].astype(jnp.bfloat16), wl1_ref[...],
                       preferred_element_type=jnp.float32) + b6_ref[...])
    # TODO(synk): Dropout layers are identity in eval mode; omitted.
    z = _leaky(jnp.dot(z.astype(jnp.bfloat16), wl2_ref[...],
                       preferred_element_type=jnp.float32) + b7_ref[...])
    o_ref[...] = (jnp.dot(z.astype(jnp.bfloat16), wl3_ref[...],
                          preferred_element_type=jnp.float32) + b3_ref[...])


# --------------------------------------------------------------------------
# Parameter init (deterministic, synthetic) with eval-mode BatchNorm folded
# into the (bf16) weights; shifts / biases stay f32.
# --------------------------------------------------------------------------
def init_params(key, emb_dims=64, output_channels=40):
    ks = jax.random.split(key, 16)

    def w(kk, fan_in, fan_out):
        return (jax.random.normal(kk, (fan_in, fan_out), jnp.float32)
                / jnp.sqrt(float(fan_in)))

    # eval-mode BatchNorm with default stats: scale = 1/sqrt(1+eps), shift = 0.
    bn_scale = 1.0 / jnp.sqrt(1.0 + BN_EPS)

    def edge(kd, kc, cin, cout):
        wd = w(kd, cin, cout)          # half of the conv weight hitting (feature - x)
        wc = w(kc, cin, cout)          # half hitting x
        # h = (nb - x) @ wd + x @ wc == nb @ wd + x @ (wc - wd); fold BN scale.
        return ((wd * bn_scale).astype(jnp.bfloat16),
                ((wc - wd) * bn_scale).astype(jnp.bfloat16),
                jnp.zeros((1, cout), jnp.float32))

    p = {}
    p['w1n'], p['w1c'], p['b1'] = edge(ks[0], ks[1], 3, 64)
    p['w2n'], p['w2c'], p['b2'] = edge(ks[2], ks[3], 64, 64)
    p['w3n'], p['w3c'], p['b3'] = edge(ks[4], ks[5], 64, 128)
    p['w4n'], p['w4c'], p['b4'] = edge(ks[6], ks[7], 128, 256)

    w5 = w(ks[8], 64 + 64 + 128 + 256, emb_dims) * bn_scale       # conv5 (no bias)
    p['w5'] = tuple(w5[lo:hi].astype(jnp.bfloat16)
                    for lo, hi in ((0, 64), (64, 128), (128, 256), (256, 512)))
    p['b5'] = jnp.zeros((1, emb_dims), jnp.float32)

    p['wl1'] = (w(ks[9], 2 * emb_dims, 512) * bn_scale).astype(jnp.bfloat16)
    p['b6'] = jnp.zeros((1, 512), jnp.float32)

    wl2 = w(ks[10], 512, 256)
    bl2 = jax.random.normal(ks[11], (1, 256), jnp.float32) * 0.01
    p['wl2'] = (wl2 * bn_scale).astype(jnp.bfloat16)
    p['b7'] = bl2 * bn_scale                                      # bias folded thru bn7

    p['wl3'] = w(ks[12], 256, output_channels).astype(jnp.bfloat16)
    p['bl3'] = jax.random.normal(ks[13], (1, output_channels), jnp.float32) * 0.01
    return p


# --------------------------------------------------------------------------
# Full forward pass.
# --------------------------------------------------------------------------
def dgcnn_forward(x_bcn, params, k):
    # x_bcn: (B, 3, N) -- same layout as the PyTorch module's input.
    x = jnp.transpose(x_bcn, (0, 2, 1)).astype(jnp.float32)       # (B, N, 3)

    def knn_gather(feat):
        pd = neg_pairwise_dist(feat)                              # Pallas kernel (f32)
        # TODO(synk): top-k selection and the arbitrary-row neighbor gather have
        # no clean Pallas TPU expression; both run in plain-JAX glue.
        idx = lax.top_k(pd, k)[1]                                 # (B, N, k)
        idx_t = jnp.transpose(idx, (0, 2, 1))                     # (B, k, N)
        return jax.vmap(lambda f, i: jnp.take(f, i, axis=0))(feat, idx_t)  # (B,k,N,C)

    x1 = edge_conv(x,  knn_gather(x),  params['w1n'], params['w1c'], params['b1'])
    x2 = edge_conv(x1, knn_gather(x1), params['w2n'], params['w2c'], params['b2'])
    x3 = edge_conv(x2, knn_gather(x2), params['w3n'], params['w3c'], params['b3'])
    x4 = edge_conv(x3, knn_gather(x3), params['w4n'], params['w4c'], params['b4'])

    feat = conv5_pool(x1, x2, x3, x4, params['w5'], params['b5'])  # (B, 1, 2E)
    feat = feat.reshape(feat.shape[0], -1)                         # (B, 2E)

    out_channels = params['wl3'].shape[1]
    return pl.pallas_call(
        mlp_head_kernel,
        out_shape=jax.ShapeDtypeStruct((feat.shape[0], out_channels), jnp.float32),
    )(feat, params['wl1'], params['b6'], params['wl2'], params['b7'],
      params['wl3'], params['bl3'])


if __name__ == "__main__":
    B, N, K = 2, 16, 4           # batch, points, k-nearest-neighbors (args.k)
    EMB, OUT = 64, 40            # args.emb_dims, output_channels

    key = jax.random.PRNGKey(0)
    kx, kp = jax.random.split(key)
    x = jax.random.normal(kx, (B, 3, N), jnp.float32)   # PyTorch-style (B, 3, N)
    params = init_params(kp, emb_dims=EMB, output_channels=OUT)

    fwd = jax.jit(functools.partial(dgcnn_forward, k=K))
    out = fwd(x, params)
    out = jax.block_until_ready(out)
    assert out.shape == (B, OUT), out.shape
    assert bool(jnp.all(jnp.isfinite(out)))
    print("KERNEL_OK")
</pallas_src>

<mosaic_0001>
module attributes {stable_mosaic.version = 11 : i64} {
  func.func @pdist_kernel(%arg0: i32, %arg1: memref<1x16x3xf32, #tpu.memory_space<vmem>>, %arg2: memref<1x16x16xf32, #tpu.memory_space<vmem>>) attributes {dimension_semantics = [#tpu.dimension_semantics<parallel>], iteration_bounds = array<i64: 2>, scalar_prefetch = 0 : i64, scratch_operands = 0 : i64, tpu.core_type = #tpu.core_type<tc>, window_params = [{transform_indices = @transform_0, window_bounds = array<i64: 1, 16, 3>}, {transform_indices = @transform_1, window_bounds = array<i64: 1, 16, 16>}]} {
    %c0 = arith.constant 0 : index
    %c0_0 = arith.constant 0 : index
    %c0_1 = arith.constant 0 : index
    %0 = vector.load %arg1[%c0, %c0_0, %c0_1] : memref<1x16x3xf32, #tpu.memory_space<vmem>>, vector<1x16x3xf32>
    %1 = vector.shape_cast %0 : vector<1x16x3xf32> to vector<16x3xf32>
    %cst = arith.constant dense<0.000000e+00> : vector<16x16xf32>
    %2 = tpu.matmul %1, %1, %cst {dimension_numbers = #tpu.dot_dimension_numbers<[1], [1], [0], [0], [0, 0, 1, 0], [], []>} : vector<16x3xf32>, vector<16x3xf32>, vector<16x16xf32> -> vector<16x16xf32>
    %3 = arith.mulf %1, %1 : vector<16x3xf32>
    %cst_2 = arith.constant dense<0.000000e+00> : vector<16xf32>
    %4 = vector.multi_reduction <add>, %3, %cst_2 [1] : vector<16x3xf32> to vector<16xf32>
    %5 = vector.shape_cast %4 : vector<16xf32> to vector<16x1xf32>
    %cst_3 = arith.constant 1.000000e+00 : f32
    %6 = vector.broadcast %cst_3 : f32 to vector<1x3xf32>
    %cst_4 = arith.constant dense<0.000000e+00> : vector<1x16xf32>
    %7 = tpu.matmul %6, %3, %cst_4 {dimension_numbers = #tpu.dot_dimension_numbers<[1], [1], [0], [0], [0, 0, 1, 0], [], []>} : vector<1x3xf32>, vector<16x3xf32>, vector<1x16xf32> -> vector<1x16xf32>
    %cst_5 = arith.constant 2.000000e+00 : f32
    %8 = vector.broadcast %cst_5 : f32 to vector<16x16xf32>
    %9 = arith.mulf %8, %2 : vector<16x16xf32>
    %10 = vector.broadcast %5 : vector<16x1xf32> to vector<16x16xf32>
    %11 = arith.subf %9, %10 : vector<16x16xf32>
    %12 = vector.broadcast %7 : vector<1x16xf32> to vector<16x16xf32>
    %13 = arith.subf %11, %12 : vector<16x16xf32>
    %c0_6 = arith.constant 0 : index
    %c0_7 = arith.constant 0 : index
    %c0_8 = arith.constant 0 : index
    %14 = vector.load %arg2[%c0_6, %c0_7, %c0_8] : memref<1x16x16xf32, #tpu.memory_space<vmem>>, vector<1x16x16xf32>
    %15 = vector.shape_cast %14 : vector<1x16x16xf32> to vector<16x16xf32>
    %16 = vector.shape_cast %13 : vector<16x16xf32> to vector<1x16x16xf32>
    tpu.vector_store %arg2[%c0_6, %c0_7, %c0_8], %16 {strides = array<i32>} : memref<1x16x16xf32, #tpu.memory_space<vmem>>, vector<1x16x16xf32>,
    return
  }
  func.func @transform_0(%arg0: i32) -> (i32, i32, i32) {
    %c0_i32 = arith.constant 0 : i32
    %c0_i32_0 = arith.constant 0 : i32
    %c0_i32_1 = arith.constant 0 : i32
    return %arg0, %c0_i32, %c0_i32_0 : i32, i32, i32
  }
  func.func @transform_1(%arg0: i32) -> (i32, i32, i32) {
    %c0_i32 = arith.constant 0 : i32
    %c0_i32_0 = arith.constant 0 : i32
    %c0_i32_1 = arith.constant 0 : i32
    return %arg0, %c0_i32, %c0_i32_0 : i32, i32, i32
  }
}

module attributes {stable_mosaic.version = 11 : i64} {
  func.func @edge_conv_kernel(%arg0: i32, %arg1: i32, %arg2: memref<1x16x3xf32, #tpu.memory_space<vmem>>, %arg3: memref<1x1x16x3xf32, #tpu.memory_space<vmem>>, %arg4: memref<3x64xbf16, #tpu.memory_space<vmem>>, %arg5: memref<3x64xbf16, #tpu.memory_space<vmem>>, %arg6: memref<1x64xf32, #tpu.memory_space<vmem>>, %arg7: memref<1x16x64xf32, #tpu.memory_space<vmem>>, %arg8: memref<16x64xf32, #tpu.memory_space<vmem>>) attributes {dimension_semantics = [#tpu.dimension_semantics<parallel>, #tpu.dimension_semantics<arbitrary>], iteration_bounds = array<i64: 2, 4>, scalar_prefetch = 0 : i64, scratch_operands = 1 : i64, tpu.core_type = #tpu.core_type<tc>, window_params = [{transform_indices = @transform_0, window_bounds = array<i64: 1, 16, 3>}, {transform_indices = @transform_1, window_bounds = array<i64: 1, 1, 16, 3>}, {pipeline_mode = #tpu.pipeline_mode<synchronous>, transform_indices = @transform_2, window_bounds = array<i64: 3, 64>}, {pipeline_mode = #tpu.pipeline_mode<synchronous>, transform_indices = @transform_3, window_bounds = array<i64: 3, 64>}, {pipeline_mode = #tpu.pipeline_mode<synchronous>, transform_indices = @transform_4, window_bounds = array<i64: 1, 64>}, {transform_indices = @transform_5, window_bounds = array<i64: 1, 16, 64>}]} {
    %c0_i32 = arith.constant 0 : i32
    %0 = arith.cmpi eq, %arg1, %c0_i32 : i32
    %1 = arith.extui %0 : i1 to i32
    %c0_i32_0 = arith.constant 0 : i32
    %2 = arith.cmpi ne, %1, %c0_i32_0 : i32
    scf.if %2 {
      %c0_14 = arith.constant 0 : index
      %c0_15 = arith.constant 0 : index
      %c0_16 = arith.constant 0 : index
      %21 = vector.load %arg2[%c0_14, %c0_15, %c0_16] : memref<1x16x3xf32, #tpu.memory_space<vmem>>, vector<1x16x3xf32>
      %22 = vector.shape_cast %21 : vector<1x16x3xf32> to vector<16x3xf32>
      %23 = arith.truncf %22 : vector<16x3xf32> to vector<16x3xbf16>
      %c0_17 = arith.constant 0 : index
      %c0_18 = arith.constant 0 : index
      %24 = vector.load %arg5[%c0_17, %c0_18] : memref<3x64xbf16, #tpu.memory_space<vmem>>, vector<3x64xbf16>
      %cst_19 = arith.constant dense<0.000000e+00> : vector<16x64xf32>
      %25 = tpu.matmul %23, %24, %cst_19 {dimension_numbers = #tpu.dot_dimension_numbers<[1], [0], [0], [1], [0, 0, 1, 1], [], []>} : vector<16x3xbf16>, vector<3x64xbf16>, vector<16x64xf32> -> vector<16x64xf32>
      %c0_20 = arith.constant 0 : index
      %c0_21 = arith.constant 0 : index
      %26 = vector.load %arg6[%c0_20, %c0_21] : memref<1x64xf32, #tpu.memory_space<vmem>>, vector<1x64xf32>
      %27 = vector.broadcast %26 : vector<1x64xf32> to vector<16x64xf32>
      %28 = arith.addf %25, %27 : vector<16x64xf32>
      %c0_22 = arith.constant 0 : index
      %c0_23 = arith.constant 0 : index
      %29 = vector.load %arg8[%c0_22, %c0_23] : memref<16x64xf32, #tpu.memory_space<vmem>>, vector<16x64xf32>
      tpu.vector_store %arg8[%c0_22, %c0_23], %28 {strides = array<i32>} : memref<16x64xf32, #tpu.memory_space<vmem>>, vector<16x64xf32>,
    } else {
    }
    %c0 = arith.constant 0 : index
    %c0_1 = arith.constant 0 : index
    %c0_2 = arith.constant 0 : index
    %c0_3 = arith.constant 0 : index
    %3 = vector.load %arg3[%c0, %c0_1, %c0_2, %c0_3] : memref<1x1x16x3xf32, #tpu.memory_space<vmem>>, vector<1x1x16x3xf32>
    %4 = vector.shape_cast %3 : vector<1x1x16x3xf32> to vector<16x3xf32>
    %5 = arith.truncf %4 : vector<16x3xf32> to vector<16x3xbf16>
    %c0_4 = arith.constant 0 : index
    %c0_5 = arith.constant 0 : index
    %6 = vector.load %arg4[%c0_4, %c0_5] : memref<3x64xbf16, #tpu.memory_space<vmem>>, vector<3x64xbf16>
    %cst = arith.constant dense<0.000000e+00> : vector<16x64xf32>
    %7 = tpu.matmul %5, %6, %cst {dimension_numbers = #tpu.dot_dimension_numbers<[1], [0], [0], [1], [0, 0, 1, 1], [], []>} : vector<16x3xbf16>, vector<3x64xbf16>, vector<16x64xf32> -> vector<16x64xf32>
    %c0_6 = arith.constant 0 : index
    %c0_7 = arith.constant 0 : index
    %8 = vector.load %arg8[%c0_6, %c0_7] : memref<16x64xf32, #tpu.memory_space<vmem>>, vector<16x64xf32>
    %9 = arith.addf %7, %8 : vector<16x64xf32>
    %cst_8 = arith.constant 0.000000e+00 : f32
    %10 = vector.broadcast %cst_8 : f32 to vector<16x64xf32>
    %11 = arith.cmpf oge, %9, %10 : vector<16x64xf32>
    %cst_9 = arith.constant 2.000000e-01 : f32
    %12 = vector.broadcast %cst_9 : f32 to vector<16x64xf32>
    %13 = arith.mulf %12, %9 : vector<16x64xf32>
    %14 = arith.select %11, %9, %13 : vector<16x64xi1>, vector<16x64xf32>
    %c0_i32_10 = arith.constant 0 : i32
    %15 = arith.cmpi eq, %arg1, %c0_i32_10 : i32
    %16 = arith.extui %15 : i1 to i32
    %c0_i32_11 = arith.constant 0 : i32
    %17 = arith.cmpi ne, %16, %c0_i32_11 : i32
    scf.if %17 {
      %c0_14 = arith.constant 0 : index
      %c0_15 = arith.constant 0 : index
      %c0_16 = arith.constant 0 : index
      %21 = vector.load %arg7[%c0_14, %c0_15, %c0_16] : memref<1x16x64xf32, #tpu.memory_space<vmem>>, vector<1x16x64xf32>
      %22 = vector.shape_cast %21 : vector<1x16x64xf32> to vector<16x64xf32>
      %23 = vector.shape_cast %14 : vector<16x64xf32> to vector<1x16x64xf32>
      tpu.vector_store %arg7[%c0_14, %c0_15, %c0_16], %23 {strides = array<i32>} : memref<1x16x64xf32, #tpu.memory_space<vmem>>, vector<1x16x64xf32>,
    } else {
    }
    %c0_i32_12 = arith.constant 0 : i32
    %18 = arith.cmpi sgt, %arg1, %c0_i32_12 : i32
    %19 = arith.extui %18 : i1 to i32
    %c0_i32_13 = arith.constant 0 : i32
    %20 = arith.cmpi ne, %19, %c0_i32_13 : i32
    scf.if %20 {
      %c0_14 = arith.constant 0 : index
      %c0_15 = arith.constant 0 : index
      %c0_16 = arith.constant 0 : index
      %21 = vector.load %arg7[%c0_14, %c0_15, %c0_16] : memref<1x16x64xf32, #tpu.memory_space<vmem>>, vector<1x16x64xf32>
      %22 = vector.shape_cast %21 : vector<1x16x64xf32> to vector<16x64xf32>
      %23 = arith.maximumf %22, %14 : vector<16x64xf32>
      %c0_17 = arith.constant 0 : index
      %c0_18 = arith.constant 0 : index
      %c0_19 = arith.constant 0 : index
      %24 = vector.load %arg7[%c0_17, %c0_18, %c0_19] : memref<1x16x64xf32, #tpu.memory_space<vmem>>, vector<1x16x64xf32>
      %25 = vector.shape_cast %24 : vector<1x16x64xf32> to vector<16x64xf32>
      %26 = vector.shape_cast %23 : vector<16x64xf32> to vector<1x16x64xf32>
      tpu.vector_store %arg7[%c0_17, %c0_18, %c0_19], %26 {strides = array<i32>} : memref<1x16x64xf32, #tpu.memory_space<vmem>>, vector<1x16x64xf32>,
    } else {
    }
    return
  }
  func.func @transform_0(%arg0: i32, %arg1: i32) -> (i32, i32, i32) {
    %c0_i32 = arith.constant 0 : i32
    %c0_i32_0 = arith.constant 0 : i32
    %c0_i32_1 = arith.constant 0 : i32
    return %arg0, %c0_i32, %c0_i32_0 : i32, i32, i32
  }
  func.func @transform_1(%arg0: i32, %arg1: i32) -> (i32, i32, i32, i32) {
    %c0_i32 = arith.constant 0 : i32
    %c0_i32_0 = arith.constant 0 : i32
    %c0_i32_1 = arith.constant 0 : i32
    return %arg0, %arg1, %c0_i32, %c0_i32_0 : i32, i32, i32, i32
  }
  func.func @transform_2(%arg0: i32, %arg1: i32) -> (i32, i32) {
    %c0_i32 = arith.constant 0 : i32
    %c0_i32_0 = arith.constant 0 : i32
    %c0_i32_1 = arith.constant 0 : i32
    return %c0_i32, %c0_i32_0 : i32, i32
  }
  func.func @transform_3(%arg0: i32, %arg1: i32) -> (i32, i32) {
    %c0_i32 = arith.constant 0 : i32
    %c0_i32_0 = arith.constant 0 : i32
    %c0_i32_1 = arith.constant 0 : i32
    return %c0_i32, %c0_i32_0 : i32, i32
  }
  func.func @transform_4(%arg0: i32, %arg1: i32) -> (i32, i32) {
    %c0_i32 = arith.constant 0 : i32
    %c0_i32_0 = arith.constant 0 : i32
    %c0_i32_1 = arith.constant 0 : i32
    return %c0_i32, %c0_i32_0 : i32, i32
  }
  func.func @transform_5(%arg0: i32, %arg1: i32) -> (i32, i32, i32) {
    %c0_i32 = arith.constant 0 : i32
    %c0_i32_0 = arith.constant 0 : i32
    %c0_i32_1 = arith.constant 0 : i32
    return %arg0, %c0_i32, %c0_i32_0 : i32, i32, i32
  }
}

module attributes {stable_mosaic.version = 11 : i64} {
  func.func @pdist_kernel(%arg0: i32, %arg1: memref<1x16x64xf32, #tpu.memory_space<vmem>>, %arg2: memref<1x16x16xf32, #tpu.memory_space<vmem>>) attributes {dimension_semantics = [#tpu.dimension_semantics<parallel>], iteration_bounds = array<i64: 2>, scalar_prefetch = 0 : i64, scratch_operands = 0 : i64, tpu.core_type = #tpu.core_type<tc>, window_params = [{transform_indices = @transform_0, window_bounds = array<i64: 1, 16, 64>}, {transform_indices = @transform_1, window_bounds = array<i64: 1, 16, 16>}]} {
    %c0 = arith.constant 0 : index
    %c0_0 = arith.constant 0 : index
    %c0_1 = arith.constant 0 : index
    %0 = vector.load %arg1[%c0, %c0_0, %c0_1] : memref<1x16x64xf32, #tpu.memory_space<vmem>>, vector<1x16x64xf32>
    %1 = vector.shape_cast %0 : vector<1x16x64xf32> to vector<16x64xf32>
    %cst = arith.constant dense<0.000000e+00> : vector<16x16xf32>
    %2 = tpu.matmul %1, %1, %cst {dimension_numbers = #tpu.dot_dimension_numbers<[1], [1], [0], [0], [0, 0, 1, 0], [], []>} : vector<16x64xf32>, vector<16x64xf32>, vector<16x16xf32> -> vector<16x16xf32>
    %3 = arith.mulf %1, %1 : vector<16x64xf32>
    %cst_2 = arith.constant dense<0.000000e+00> : vector<16xf32>
    %4 = vector.multi_reduction <add>, %3, %cst_2 [1] : vector<16x64xf32> to vector<16xf32>
    %5 = vector.shape_cast %4 : vector<16xf32> to vector<16x1xf32>
    %cst_3 = arith.constant 1.000000e+00 : f32
    %6 = vector.broadcast %cst_3 : f32 to vector<1x64xf32>
    %cst_4 = arith.constant dense<0.000000e+00> : vector<1x16xf32>
    %7 = tpu.matmul %6, %3, %cst_4 {dimension_numbers = #tpu.dot_dimension_numbers<[1], [1], [0], [0], [0, 0, 1, 0], [], []>} : vector<1x64xf32>, vector<16x64xf32>, vector<1x16xf32> -> vector<1x16xf32>
    %cst_5 = arith.constant 2.000000e+00 : f32
    %8 = vector.broadcast %cst_5 : f32 to vector<16x16xf32>
    %9 = arith.mulf %8, %2 : vector<16x16xf32>
    %10 = vector.broadcast %5 : vector<16x1xf32> to vector<16x16xf32>
    %11 = arith.subf %9, %10 : vector<16x16xf32>
    %12 = vector.broadcast %7 : vector<1x16xf32> to vector<16x16xf32>
    %13 = arith.subf %11, %12 : vector<16x16xf32>
    %c0_6 = arith.constant 0 : index
    %c0_7 = arith.constant 0 : index
    %c0_8 = arith.constant 0 : index
    %14 = vector.load %arg2[%c0_6, %c0_7, %c0_8] : memref<1x16x16xf32, #tpu.memory_space<vmem>>, vector<1x16x16xf32>
    %15 = vector.shape_cast %14 : vector<1x16x16xf32> to vector<16x16xf32>
    %16 = vector.shape_cast %13 : vector<16x16xf32> to vector<1x16x16xf32>
    tpu.vector_store %arg2[%c0_6, %c0_7, %c0_8], %16 {strides = array<i32>} : memref<1x16x16xf32, #tpu.memory_space<vmem>>, vector<1x16x16xf32>,
    return
  }
  func.func @transform_0(%arg0: i32) -> (i32, i32, i32) {
    %c0_i32 = arith.constant 0 : i32
    %c0_i32_0 = arith.constant 0 : i32
    %c0_i32_1 = arith.constant 0 : i32
    return %arg0, %c0_i32, %c0_i32_0 : i32, i32, i32
  }
  func.func @transform_1(%arg0: i32) -> (i32, i32, i32) {
    %c0_i32 = arith.constant 0 : i32
    %c0_i32_0 = arith.constant 0 : i32
    %c0_i32_1 = arith.constant 0 : i32
    return %arg0, %c0_i32, %c0_i32_0 : i32, i32, i32
  }
}

module attributes {stable_mosaic.version = 11 : i64} {
  func.func @edge_conv_kernel(%arg0: i32, %arg1: i32, %arg2: memref<1x16x64xf32, #tpu.memory_space<vmem>>, %arg3: memref<1x1x16x64xf32, #tpu.memory_space<vmem>>, %arg4: memref<64x128xbf16, #tpu.memory_space<vmem>>, %arg5: memref<64x128xbf16, #tpu.memory_space<vmem>>, %arg6: memref<1x128xf32, #tpu.memory_space<vmem>>, %arg7: memref<1x16x128xf32, #tpu.memory_space<vmem>>, %arg8: memref<16x128xf32, #tpu.memory_space<vmem>>) attributes {dimension_semantics = [#tpu.dimension_semantics<parallel>, #tpu.dimension_semantics<arbitrary>], iteration_bounds = array<i64: 2, 4>, scalar_prefetch = 0 : i64, scratch_operands = 1 : i64, tpu.core_type = #tpu.core_type<tc>, window_params = [{transform_indices = @transform_0, window_bounds = array<i64: 1, 16, 64>}, {transform_indices = @transform_1, window_bounds = array<i64: 1, 1, 16, 64>}, {pipeline_mode = #tpu.pipeline_mode<synchronous>, transform_indices = @transform_2, window_bounds = array<i64: 64, 128>}, {pipeline_mode = #tpu.pipeline_mode<synchronous>, transform_indices = @transform_3, window_bounds = array<i64: 64, 128>}, {pipeline_mode = #tpu.pipeline_mode<synchronous>, transform_indices = @transform_4, window_bounds = array<i64: 1, 128>}, {transform_indices = @transform_5, window_bounds = array<i64: 1, 16, 128>}]} {
    %c0_i32 = arith.constant 0 : i32
    %0 = arith.cmpi eq, %arg1, %c0_i32 : i32
    %1 = arith.extui %0 : i1 to i32
    %c0_i32_0 = arith.constant 0 : i32
    %2 = arith.cmpi ne, %1, %c0_i32_0 : i32
    scf.if %2 {
      %c0_14 = arith.constant 0 : index
      %c0_15 = arith.constant 0 : index
      %c0_16 = arith.constant 0 : index
      %21 = vector.load %arg2[%c0_14, %c0_15, %c0_16] : memref<1x16x64xf32, #tpu.memory_space<vmem>>, vector<1x16x64xf32>
      %22 = vector.shape_cast %21 : vector<1x16x64xf32> to vector<16x64xf32>
      %23 = arith.truncf %22 : vector<16x64xf32> to vector<16x64xbf16>
      %c0_17 = arith.constant 0 : index
      %c0_18 = arith.constant 0 : index
      %24 = vector.load %arg5[%c0_17, %c0_18] : memref<64x128xbf16, #tpu.memory_space<vmem>>, vector<64x128xbf16>
      %cst_19 = arith.constant dense<0.000000e+00> : vector<16x128xf32>
      %25 = tpu.matmul %23, %24, %cst_19 {dimension_numbers = #tpu.dot_dimension_numbers<[1], [0], [0], [1], [0, 0, 1, 1], [], []>} : vector<16x64xbf16>, vector<64x128xbf16>, vector<16x128xf32> -> vector<16x128xf32>
      %c0_20 = arith.constant 0 : index
      %c0_21 = arith.constant 0 : index
      %26 = vector.load %arg6[%c0_20, %c0_21] : memref<1x128xf32, #tpu.memory_space<vmem>>, vector<1x128xf32>
      %27 = vector.broadcast %26 : vector<1x128xf32> to vector<16x128xf32>
      %28 = arith.addf %25, %27 : vector<16x128xf32>
      %c0_22 = arith.constant 0 : index
      %c0_23 = arith.constant 0 : index
      %29 = vector.load %arg8[%c0_22, %c0_23] : memref<16x128xf32, #tpu.memory_space<vmem>>, vector<16x128xf32>
      tpu.vector_store %arg8[%c0_22, %c0_23], %28 {strides = array<i32>} : memref<16x128xf32, #tpu.memory_space<vmem>>, vector<16x128xf32>,
    } else {
    }
    %c0 = arith.constant 0 : index
    %c0_1 = arith.constant 0 : index
    %c0_2 = arith.constant 0 : index
    %c0_3 = arith.constant 0 : index
    %3 = vector.load %arg3[%c0, %c0_1, %c0_2, %c0_3] : memref<1x1x16x64xf32, #tpu.memory_space<vmem>>, vector<1x1x16x64xf32>
    %4 = vector.shape_cast %3 : vector<1x1x16x64xf32> to vector<16x64xf32>
    %5 = arith.truncf %4 : vector<16x64xf32> to vector<16x64xbf16>
    %c0_4 = arith.constant 0 : index
    %c0_5 = arith.constant 0 : index
    %6 = vector.load %arg4[%c0_4, %c0_5] : memref<64x128xbf16, #tpu.memory_space<vmem>>, vector<64x128xbf16>
    %cst = arith.constant dense<0.000000e+00> : vector<16x128xf32>
    %7 = tpu.matmul %5, %6, %cst {dimension_numbers = #tpu.dot_dimension_numbers<[1], [0], [0], [1], [0, 0, 1, 1], [], []>} : vector<16x64xbf16>, vector<64x128xbf16>, vector<16x128xf32> -> vector<16x128xf32>
    %c0_6 = arith.constant 0 : index
    %c0_7 = arith.constant 0 : index
    %8 = vector.load %arg8[%c0_6, %c0_7] : memref<16x128xf32, #tpu.memory_space<vmem>>, vector<16x128xf32>
    %9 = arith.addf %7, %8 : vector<16x128xf32>
    %cst_8 = arith.constant 0.000000e+00 : f32
    %10 = vector.broadcast %cst_8 : f32 to vector<16x128xf32>
    %11 = arith.cmpf oge, %9, %10 : vector<16x128xf32>
    %cst_9 = arith.constant 2.000000e-01 : f32
    %12 = vector.broadcast %cst_9 : f32 to vector<16x128xf32>
    %13 = arith.mulf %12, %9 : vector<16x128xf32>
    %14 = arith.select %11, %9, %13 : vector<16x128xi1>, vector<16x128xf32>
    %c0_i32_10 = arith.constant 0 : i32
    %15 = arith.cmpi eq, %arg1, %c0_i32_10 : i32
    %16 = arith.extui %15 : i1 to i32
    %c0_i32_11 = arith.constant 0 : i32
    %17 = arith.cmpi ne, %16, %c0_i32_11 : i32
    scf.if %17 {
      %c0_14 = arith.constant 0 : index
      %c0_15 = arith.constant 0 : index
      %c0_16 = arith.constant 0 : index
      %21 = vector.load %arg7[%c0_14, %c0_15, %c0_16] : memref<1x16x128xf32, #tpu.memory_space<vmem>>, vector<1x16x128xf32>
      %22 = vector.shape_cast %21 : vector<1x16x128xf32> to vector<16x128xf32>
      %23 = vector.shape_cast %14 : vector<16x128xf32> to vector<1x16x128xf32>
      tpu.vector_store %arg7[%c0_14, %c0_15, %c0_16], %23 {strides = array<i32>} : memref<1x16x128xf32, #tpu.memory_space<vmem>>, vector<1x16x128xf32>,
    } else {
    }
    %c0_i32_12 = arith.constant 0 : i32
    %18 = arith.cmpi sgt, %arg1, %c0_i32_12 : i32
    %19 = arith.extui %18 : i1 to i32
    %c0_i32_13 = arith.constant 0 : i32
    %20 = arith.cmpi ne, %19, %c0_i32_13 : i32
    scf.if %20 {
      %c0_14 = arith.constant 0 : index
      %c0_15 = arith.constant 0 : index
      %c0_16 = arith.constant 0 : index
      %21 = vector.load %arg7[%c0_14, %c0_15, %c0_16] : memref<1x16x128xf32, #tpu.memory_space<vmem>>, vector<1x16x128xf32>
      %22 = vector.shape_cast %21 : vector<1x16x128xf32> to vector<16x128xf32>
      %23 = arith.maximumf %22, %14 : vector<16x128xf32>
      %c0_17 = arith.constant 0 : index
      %c0_18 = arith.constant 0 : index
      %c0_19 = arith.constant 0 : index
      %24 = vector.load %arg7[%c0_17, %c0_18, %c0_19] : memref<1x16x128xf32, #tpu.memory_space<vmem>>, vector<1x16x128xf32>
      %25 = vector.shape_cast %24 : vector<1x16x128xf32> to vector<16x128xf32>
      %26 = vector.shape_cast %23 : vector<16x128xf32> to vector<1x16x128xf32>
      tpu.vector_store %arg7[%c0_17, %c0_18, %c0_19], %26 {strides = array<i32>} : memref<1x16x128xf32, #tpu.memory_space<vmem>>, vector<1x16x128xf32>,
    } else {
    }
    return
  }
  func.func @transform_0(%arg0: i32, %arg1: i32) -> (i32, i32, i32) {
    %c0_i32 = arith.constant 0 : i32
    %c0_i32_0 = arith.constant 0 : i32
    %c0_i32_1 = arith.constant 0 : i32
    return %arg0, %c0_i32, %c0_i32_0 : i32, i32, i32
  }
  func.func @transform_1(%arg0: i32, %arg1: i32) -> (i32, i32, i32, i32) {
    %c0_i32 = arith.constant 0 : i32
    %c0_i32_0 = arith.constant 0 : i32
    %c0_i32_1 = arith.constant 0 : i32
    return %arg0, %arg1, %c0_i32, %c0_i32_0 : i32, i32, i32, i32
  }
  func.func @transform_2(%arg0: i32, %arg1: i32) -> (i32, i32) {
    %c0_i32 = arith.constant 0 : i32
    %c0_i32_0 = arith.constant 0 : i32
    %c0_i32_1 = arith.constant 0 : i32
    return %c0_i32, %c0_i32_0 : i32, i32
  }
  func.func @transform_3(%arg0: i32, %arg1: i32) -> (i32, i32) {
    %c0_i32 = arith.constant 0 : i32
    %c0_i32_0 = arith.constant 0 : i32
    %c0_i32_1 = arith.constant 0 : i32
    return %c0_i32, %c0_i32_0 : i32, i32
  }
  func.func @transform_4(%arg0: i32, %arg1: i32) -> (i32, i32) {
    %c0_i32 = arith.constant 0 : i32
    %c0_i32_0 = arith.constant 0 : i32
    %c0_i32_1 = arith.constant 0 : i32
    return %c0_i32, %c0_i32_0 : i32, i32
  }
  func.func @transform_5(%arg0: i32, %arg1: i32) -> (i32, i32, i32) {
    %c0_i32 = arith.constant 0 : i32
    %c0_i32_0 = arith.constant 0 : i32
    %c0_i32_1 = arith.constant 0 : i32
    return %arg0, %c0_i32, %c0_i32_0 : i32, i32, i32
  }
}

module attributes {stable_mosaic.version = 11 : i64} {
  func.func @edge_conv_kernel(%arg0: i32, %arg1: i32, %arg2: memref<1x16x64xf32, #tpu.memory_space<vmem>>, %arg3: memref<1x1x16x64xf32, #tpu.memory_space<vmem>>, %arg4: memref<64x64xbf16, #tpu.memory_space<vmem>>, %arg5: memref<64x64xbf16, #tpu.memory_space<vmem>>, %arg6: memref<1x64xf32, #tpu.memory_space<vmem>>, %arg7: memref<1x16x64xf32, #tpu.memory_space<vmem>>, %arg8: memref<16x64xf32, #tpu.memory_space<vmem>>) attributes {dimension_semantics = [#tpu.dimension_semantics<parallel>, #tpu.dimension_semantics<arbitrary>], iteration_bounds = array<i64: 2, 4>, scalar_prefetch = 0 : i64, scratch_operands = 1 : i64, tpu.core_type = #tpu.core_type<tc>, window_params = [{transform_indices = @transform_0, window_bounds = array<i64: 1, 16, 64>}, {transform_indices = @transform_1, window_bounds = array<i64: 1, 1, 16, 64>}, {pipeline_mode = #tpu.pipeline_mode<synchronous>, transform_indices = @transform_2, window_bounds = array<i64: 64, 64>}, {pipeline_mode = #tpu.pipeline_mode<synchronous>, transform_indices = @transform_3, window_bounds = array<i64: 64, 64>}, {pipeline_mode = #tpu.pipeline_mode<synchronous>, transform_indices = @transform_4, window_bounds = array<i64: 1, 64>}, {transform_indices = @transform_5, window_bounds = array<i64: 1, 16, 64>}]} {
    %c0_i32 = arith.constant 0 : i32
    %0 = arith.cmpi eq, %arg1, %c0_i32 : i32
    %1 = arith.extui %0 : i1 to i32
    %c0_i32_0 = arith.constant 0 : i32
    %2 = arith.cmpi ne, %1, %c0_i32_0 : i32
    scf.if %2 {
      %c0_14 = arith.constant 0 : index
      %c0_15 = arith.constant 0 : index
      %c0_16 = arith.constant 0 : index
      %21 = vector.load %arg2[%c0_14, %c0_15, %c0_16] : memref<1x16x64xf32, #tpu.memory_space<vmem>>, vector<1x16x64xf32>
      %22 = vector.shape_cast %21 : vector<1x16x64xf32> to vector<16x64xf32>
      %23 = arith.truncf %22 : vector<16x64xf32> to vector<16x64xbf16>
      %c0_17 = arith.constant 0 : index
      %c0_18 = arith.constant 0 : index
      %24 = vector.load %arg5[%c0_17, %c0_18] : memref<64x64xbf16, #tpu.memory_space<vmem>>, vector<64x64xbf16>
      %cst_19 = arith.constant dense<0.000000e+00> : vector<16x64xf32>
      %25 = tpu.matmul %23, %24, %cst_19 {dimension_numbers = #tpu.dot_dimension_numbers<[1], [0], [0], [1], [0, 0, 1, 1], [], []>} : vector<16x64xbf16>, vector<64x64xbf16>, vector<16x64xf32> -> vector<16x64xf32>
      %c0_20 = arith.constant 0 : index
      %c0_21 = arith.constant 0 : index
      %26 = vector.load %arg6[%c0_20, %c0_21] : memref<1x64xf32, #tpu.memory_space<vmem>>, vector<1x64xf32>
      %27 = vector.broadcast %26 : vector<1x64xf32> to vector<16x64xf32>
      %28 = arith.addf %25, %27 : vector<16x64xf32>
      %c0_22 = arith.constant 0 : index
      %c0_23 = arith.constant 0 : index
      %29 = vector.load %arg8[%c0_22, %c0_23] : memref<16x64xf32, #tpu.memory_space<vmem>>, vector<16x64xf32>
      tpu.vector_store %arg8[%c0_22, %c0_23], %28 {strides = array<i32>} : memref<16x64xf32, #tpu.memory_space<vmem>>, vector<16x64xf32>,
    } else {
    }
    %c0 = arith.constant 0 : index
    %c0_1 = arith.constant 0 : index
    %c0_2 = arith.constant 0 : index
    %c0_3 = arith.constant 0 : index
    %3 = vector.load %arg3[%c0, %c0_1, %c0_2, %c0_3] : memref<1x1x16x64xf32, #tpu.memory_space<vmem>>, vector<1x1x16x64xf32>
    %4 = vector.shape_cast %3 : vector<1x1x16x64xf32> to vector<16x64xf32>
    %5 = arith.truncf %4 : vector<16x64xf32> to vector<16x64xbf16>
    %c0_4 = arith.constant 0 : index
    %c0_5 = arith.constant 0 : index
    %6 = vector.load %arg4[%c0_4, %c0_5] : memref<64x64xbf16, #tpu.memory_space<vmem>>, vector<64x64xbf16>
    %cst = arith.constant dense<0.000000e+00> : vector<16x64xf32>
    %7 = tpu.matmul %5, %6, %cst {dimension_numbers = #tpu.dot_dimension_numbers<[1], [0], [0], [1], [0, 0, 1, 1], [], []>} : vector<16x64xbf16>, vector<64x64xbf16>, vector<16x64xf32> -> vector<16x64xf32>
    %c0_6 = arith.constant 0 : index
    %c0_7 = arith.constant 0 : index
    %8 = vector.load %arg8[%c0_6, %c0_7] : memref<16x64xf32, #tpu.memory_space<vmem>>, vector<16x64xf32>
    %9 = arith.addf %7, %8 : vector<16x64xf32>
    %cst_8 = arith.constant 0.000000e+00 : f32
    %10 = vector.broadcast %cst_8 : f32 to vector<16x64xf32>
    %11 = arith.cmpf oge, %9, %10 : vector<16x64xf32>
    %cst_9 = arith.constant 2.000000e-01 : f32
    %12 = vector.broadcast %cst_9 : f32 to vector<16x64xf32>
    %13 = arith.mulf %12, %9 : vector<16x64xf32>
    %14 = arith.select %11, %9, %13 : vector<16x64xi1>, vector<16x64xf32>
    %c0_i32_10 = arith.constant 0 : i32
    %15 = arith.cmpi eq, %arg1, %c0_i32_10 : i32
    %16 = arith.extui %15 : i1 to i32
    %c0_i32_11 = arith.constant 0 : i32
    %17 = arith.cmpi ne, %16, %c0_i32_11 : i32
    scf.if %17 {
      %c0_14 = arith.constant 0 : index
      %c0_15 = arith.constant 0 : index
      %c0_16 = arith.constant 0 : index
      %21 = vector.load %arg7[%c0_14, %c0_15, %c0_16] : memref<1x16x64xf32, #tpu.memory_space<vmem>>, vector<1x16x64xf32>
      %22 = vector.shape_cast %21 : vector<1x16x64xf32> to vector<16x64xf32>
      %23 = vector.shape_cast %14 : vector<16x64xf32> to vector<1x16x64xf32>
      tpu.vector_store %arg7[%c0_14, %c0_15, %c0_16], %23 {strides = array<i32>} : memref<1x16x64xf32, #tpu.memory_space<vmem>>, vector<1x16x64xf32>,
    } else {
    }
    %c0_i32_12 = arith.constant 0 : i32
    %18 = arith.cmpi sgt, %arg1, %c0_i32_12 : i32
    %19 = arith.extui %18 : i1 to i32
    %c0_i32_13 = arith.constant 0 : i32
    %20 = arith.cmpi ne, %19, %c0_i32_13 : i32
    scf.if %20 {
      %c0_14 = arith.constant 0 : index
      %c0_15 = arith.constant 0 : index
      %c0_16 = arith.constant 0 : index
      %21 = vector.load %arg7[%c0_14, %c0_15, %c0_16] : memref<1x16x64xf32, #tpu.memory_space<vmem>>, vector<1x16x64xf32>
      %22 = vector.shape_cast %21 : vector<1x16x64xf32> to vector<16x64xf32>
      %23 = arith.maximumf %22, %14 : vector<16x64xf32>
      %c0_17 = arith.constant 0 : index
      %c0_18 = arith.constant 0 : index
      %c0_19 = arith.constant 0 : index
      %24 = vector.load %arg7[%c0_17, %c0_18, %c0_19] : memref<1x16x64xf32, #tpu.memory_space<vmem>>, vector<1x16x64xf32>
      %25 = vector.shape_cast %24 : vector<1x16x64xf32> to vector<16x64xf32>
      %26 = vector.shape_cast %23 : vector<16x64xf32> to vector<1x16x64xf32>
      tpu.vector_store %arg7[%c0_17, %c0_18, %c0_19], %26 {strides = array<i32>} : memref<1x16x64xf32, #tpu.memory_space<vmem>>, vector<1x16x64xf32>,
    } else {
    }
    return
  }
  func.func @transform_0(%arg0: i32, %arg1: i32) -> (i32, i32, i32) {
    %c0_i32 = arith.constant 0 : i32
    %c0_i32_0 = arith.constant 0 : i32
    %c0_i32_1 = arith.constant 0 : i32
    return %arg0, %c0_i32, %c0_i32_0 : i32, i32, i32
  }
  func.func @transform_1(%arg0: i32, %arg1: i32) -> (i32, i32, i32, i32) {
    %c0_i32 = arith.constant 0 : i32
    %c0_i32_0 = arith.constant 0 : i32
    %c0_i32_1 = arith.constant 0 : i32
    return %arg0, %arg1, %c0_i32, %c0_i32_0 : i32, i32, i32, i32
  }
  func.func @transform_2(%arg0: i32, %arg1: i32) -> (i32, i32) {
    %c0_i32 = arith.constant 0 : i32
    %c0_i32_0 = arith.constant 0 : i32
    %c0_i32_1 = arith.constant 0 : i32
    return %c0_i32, %c0_i32_0 : i32, i32
  }
  func.func @transform_3(%arg0: i32, %arg1: i32) -> (i32, i32) {
    %c0_i32 = arith.constant 0 : i32
    %c0_i32_0 = arith.constant 0 : i32
    %c0_i32_1 = arith.constant 0 : i32
    return %c0_i32, %c0_i32_0 : i32, i32
  }
  func.func @transform_4(%arg0: i32, %arg1: i32) -> (i32, i32) {
    %c0_i32 = arith.constant 0 : i32
    %c0_i32_0 = arith.constant 0 : i32
    %c0_i32_1 = arith.constant 0 : i32
    return %c0_i32, %c0_i32_0 : i32, i32
  }
  func.func @transform_5(%arg0: i32, %arg1: i32) -> (i32, i32, i32) {
    %c0_i32 = arith.constant 0 : i32
    %c0_i32_0 = arith.constant 0 : i32
    %c0_i32_1 = arith.constant 0 : i32
    return %arg0, %c0_i32, %c0_i32_0 : i32, i32, i32
  }
}

module attributes {stable_mosaic.version = 11 : i64} {
  func.func @pdist_kernel(%arg0: i32, %arg1: memref<1x16x128xf32, #tpu.memory_space<vmem>>, %arg2: memref<1x16x16xf32, #tpu.memory_space<vmem>>) attributes {dimension_semantics = [#tpu.dimension_semantics<parallel>], iteration_bounds = array<i64: 2>, scalar_prefetch = 0 : i64, scratch_operands = 0 : i64, tpu.core_type = #tpu.core_type<tc>, window_params = [{transform_indices = @transform_0, window_bounds = array<i64: 1, 16, 128>}, {transform_indices = @transform_1, window_bounds = array<i64: 1, 16, 16>}]} {
    %c0 = arith.constant 0 : index
    %c0_0 = arith.constant 0 : index
    %c0_1 = arith.constant 0 : index
    %0 = vector.load %arg1[%c0, %c0_0, %c0_1] : memref<1x16x128xf32, #tpu.memory_space<vmem>>, vector<1x16x128xf32>
    %1 = vector.shape_cast %0 : vector<1x16x128xf32> to vector<16x128xf32>
    %cst = arith.constant dense<0.000000e+00> : vector<16x16xf32>
    %2 = tpu.matmul %1, %1, %cst {dimension_numbers = #tpu.dot_dimension_numbers<[1], [1], [0], [0], [0, 0, 1, 0], [], []>} : vector<16x128xf32>, vector<16x128xf32>, vector<16x16xf32> -> vector<16x16xf32>
    %3 = arith.mulf %1, %1 : vector<16x128xf32>
    %cst_2 = arith.constant dense<0.000000e+00> : vector<16xf32>
    %4 = vector.multi_reduction <add>, %3, %cst_2 [1] : vector<16x128xf32> to vector<16xf32>
    %5 = vector.shape_cast %4 : vector<16xf32> to vector<16x1xf32>
    %cst_3 = arith.constant 1.000000e+00 : f32
    %6 = vector.broadcast %cst_3 : f32 to vector<1x128xf32>
    %cst_4 = arith.constant dense<0.000000e+00> : vector<1x16xf32>
    %7 = tpu.matmul %6, %3, %cst_4 {dimension_numbers = #tpu.dot_dimension_numbers<[1], [1], [0], [0], [0, 0, 1, 0], [], []>} : vector<1x128xf32>, vector<16x128xf32>, vector<1x16xf32> -> vector<1x16xf32>
    %cst_5 = arith.constant 2.000000e+00 : f32
    %8 = vector.broadcast %cst_5 : f32 to vector<16x16xf32>
    %9 = arith.mulf %8, %2 : vector<16x16xf32>
    %10 = vector.broadcast %5 : vector<16x1xf32> to vector<16x16xf32>
    %11 = arith.subf %9, %10 : vector<16x16xf32>
    %12 = vector.broadcast %7 : vector<1x16xf32> to vector<16x16xf32>
    %13 = arith.subf %11, %12 : vector<16x16xf32>
    %c0_6 = arith.constant 0 : index
    %c0_7 = arith.constant 0 : index
    %c0_8 = arith.constant 0 : index
    %14 = vector.load %arg2[%c0_6, %c0_7, %c0_8] : memref<1x16x16xf32, #tpu.memory_space<vmem>>, vector<1x16x16xf32>
    %15 = vector.shape_cast %14 : vector<1x16x16xf32> to vector<16x16xf32>
    %16 = vector.shape_cast %13 : vector<16x16xf32> to vector<1x16x16xf32>
    tpu.vector_store %arg2[%c0_6, %c0_7, %c0_8], %16 {strides = array<i32>} : memref<1x16x16xf32, #tpu.memory_space<vmem>>, vector<1x16x16xf32>,
    return
  }
  func.func @transform_0(%arg0: i32) -> (i32, i32, i32) {
    %c0_i32 = arith.constant 0 : i32
    %c0_i32_0 = arith.constant 0 : i32
    %c0_i32_1 = arith.constant 0 : i32
    return %arg0, %c0_i32, %c0_i32_0 : i32, i32, i32
  }
  func.func @transform_1(%arg0: i32) -> (i32, i32, i32) {
    %c0_i32 = arith.constant 0 : i32
    %c0_i32_0 = arith.constant 0 : i32
    %c0_i32_1 = arith.constant 0 : i32
    return %arg0, %c0_i32, %c0_i32_0 : i32, i32, i32
  }
}

module attributes {stable_mosaic.version = 11 : i64} {
  func.func @edge_conv_kernel(%arg0: i32, %arg1: i32, %arg2: memref<1x16x128xf32, #tpu.memory_space<vmem>>, %arg3: memref<1x1x16x128xf32, #tpu.memory_space<vmem>>, %arg4: memref<128x256xbf16, #tpu.memory_space<vmem>>, %arg5: memref<128x256xbf16, #tpu.memory_space<vmem>>, %arg6: memref<1x256xf32, #tpu.memory_space<vmem>>, %arg7: memref<1x16x256xf32, #tpu.memory_space<vmem>>, %arg8: memref<16x256xf32, #tpu.memory_space<vmem>>) attributes {dimension_semantics = [#tpu.dimension_semantics<parallel>, #tpu.dimension_semantics<arbitrary>], iteration_bounds = array<i64: 2, 4>, scalar_prefetch = 0 : i64, scratch_operands = 1 : i64, tpu.core_type = #tpu.core_type<tc>, window_params = [{transform_indices = @transform_0, window_bounds = array<i64: 1, 16, 128>}, {transform_indices = @transform_1, window_bounds = array<i64: 1, 1, 16, 128>}, {pipeline_mode = #tpu.pipeline_mode<synchronous>, transform_indices = @transform_2, window_bounds = array<i64: 128, 256>}, {pipeline_mode = #tpu.pipeline_mode<synchronous>, transform_indices = @transform_3, window_bounds = array<i64: 128, 256>}, {pipeline_mode = #tpu.pipeline_mode<synchronous>, transform_indices = @transform_4, window_bounds = array<i64: 1, 256>}, {transform_indices = @transform_5, window_bounds = array<i64: 1, 16, 256>}]} {
    %c0_i32 = arith.constant 0 : i32
    %0 = arith.cmpi eq, %arg1, %c0_i32 : i32
    %1 = arith.extui %0 : i1 to i32
    %c0_i32_0 = arith.constant 0 : i32
    %2 = arith.cmpi ne, %1, %c0_i32_0 : i32
    scf.if %2 {
      %c0_14 = arith.constant 0 : index
      %c0_15 = arith.constant 0 : index
      %c0_16 = arith.constant 0 : index
      %21 = vector.load %arg2[%c0_14, %c0_15, %c0_16] : memref<1x16x128xf32, #tpu.memory_space<vmem>>, vector<1x16x128xf32>
      %22 = vector.shape_cast %21 : vector<1x16x128xf32> to vector<16x128xf32>
      %23 = arith.truncf %22 : vector<16x128xf32> to vector<16x128xbf16>
      %c0_17 = arith.constant 0 : index
      %c0_18 = arith.constant 0 : index
      %24 = vector.load %arg5[%c0_17, %c0_18] : memref<128x256xbf16, #tpu.memory_space<vmem>>, vector<128x256xbf16>
      %cst_19 = arith.constant dense<0.000000e+00> : vector<16x256xf32>
      %25 = tpu.matmul %23, %24, %cst_19 {dimension_numbers = #tpu.dot_dimension_numbers<[1], [0], [0], [1], [0, 0, 1, 1], [], []>} : vector<16x128xbf16>, vector<128x256xbf16>, vector<16x256xf32> -> vector<16x256xf32>
      %c0_20 = arith.constant 0 : index
      %c0_21 = arith.constant 0 : index
      %26 = vector.load %arg6[%c0_20, %c0_21] : memref<1x256xf32, #tpu.memory_space<vmem>>, vector<1x256xf32>
      %27 = vector.broadcast %26 : vector<1x256xf32> to vector<16x256xf32>
      %28 = arith.addf %25, %27 : vector<16x256xf32>
      %c0_22 = arith.constant 0 : index
      %c0_23 = arith.constant 0 : index
      %29 = vector.load %arg8[%c0_22, %c0_23] : memref<16x256xf32, #tpu.memory_space<vmem>>, vector<16x256xf32>
      tpu.vector_store %arg8[%c0_22, %c0_23], %28 {strides = array<i32>} : memref<16x256xf32, #tpu.memory_space<vmem>>, vector<16x256xf32>,
    } else {
    }
    %c0 = arith.constant 0 : index
    %c0_1 = arith.constant 0 : index
    %c0_2 = arith.constant 0 : index
    %c0_3 = arith.constant 0 : index
    %3 = vector.load %arg3[%c0, %c0_1, %c0_2, %c0_3] : memref<1x1x16x128xf32, #tpu.memory_space<vmem>>, vector<1x1x16x128xf32>
    %4 = vector.shape_cast %3 : vector<1x1x16x128xf32> to vector<16x128xf32>
    %5 = arith.truncf %4 : vector<16x128xf32> to vector<16x128xbf16>
    %c0_4 = arith.constant 0 : index
    %c0_5 = arith.constant 0 : index
    %6 = vector.load %arg4[%c0_4, %c0_5] : memref<128x256xbf16, #tpu.memory_space<vmem>>, vector<128x256xbf16>
    %cst = arith.constant dense<0.000000e+00> : vector<16x256xf32>
    %7 = tpu.matmul %5, %6, %cst {dimension_numbers = #tpu.dot_dimension_numbers<[1], [0], [0], [1], [0, 0, 1, 1], [], []>} : vector<16x128xbf16>, vector<128x256xbf16>, vector<16x256xf32> -> vector<16x256xf32>
    %c0_6 = arith.constant 0 : index
    %c0_7 = arith.constant 0 : index
    %8 = vector.load %arg8[%c0_6, %c0_7] : memref<16x256xf32, #tpu.memory_space<vmem>>, vector<16x256xf32>
    %9 = arith.addf %7, %8 : vector<16x256xf32>
    %cst_8 = arith.constant 0.000000e+00 : f32
    %10 = vector.broadcast %cst_8 : f32 to vector<16x256xf32>
    %11 = arith.cmpf oge, %9, %10 : vector<16x256xf32>
    %cst_9 = arith.constant 2.000000e-01 : f32
    %12 = vector.broadcast %cst_9 : f32 to vector<16x256xf32>
    %13 = arith.mulf %12, %9 : vector<16x256xf32>
    %14 = arith.select %11, %9, %13 : vector<16x256xi1>, vector<16x256xf32>
    %c0_i32_10 = arith.constant 0 : i32
    %15 = arith.cmpi eq, %arg1, %c0_i32_10 : i32
    %16 = arith.extui %15 : i1 to i32
    %c0_i32_11 = arith.constant 0 : i32
    %17 = arith.cmpi ne, %16, %c0_i32_11 : i32
    scf.if %17 {
      %c0_14 = arith.constant 0 : index
      %c0_15 = arith.constant 0 : index
      %c0_16 = arith.constant 0 : index
      %21 = vector.load %arg7[%c0_14, %c0_15, %c0_16] : memref<1x16x256xf32, #tpu.memory_space<vmem>>, vector<1x16x256xf32>
      %22 = vector.shape_cast %21 : vector<1x16x256xf32> to vector<16x256xf32>
      %23 = vector.shape_cast %14 : vector<16x256xf32> to vector<1x16x256xf32>
      tpu.vector_store %arg7[%c0_14, %c0_15, %c0_16], %23 {strides = array<i32>} : memref<1x16x256xf32, #tpu.memory_space<vmem>>, vector<1x16x256xf32>,
    } else {
    }
    %c0_i32_12 = arith.constant 0 : i32
    %18 = arith.cmpi sgt, %arg1, %c0_i32_12 : i32
    %19 = arith.extui %18 : i1 to i32
    %c0_i32_13 = arith.constant 0 : i32
    %20 = arith.cmpi ne, %19, %c0_i32_13 : i32
    scf.if %20 {
      %c0_14 = arith.constant 0 : index
      %c0_15 = arith.constant 0 : index
      %c0_16 = arith.constant 0 : index
      %21 = vector.load %arg7[%c0_14, %c0_15, %c0_16] : memref<1x16x256xf32, #tpu.memory_space<vmem>>, vector<1x16x256xf32>
      %22 = vector.shape_cast %21 : vector<1x16x256xf32> to vector<16x256xf32>
      %23 = arith.maximumf %22, %14 : vector<16x256xf32>
      %c0_17 = arith.constant 0 : index
      %c0_18 = arith.constant 0 : index
      %c0_19 = arith.constant 0 : index
      %24 = vector.load %arg7[%c0_17, %c0_18, %c0_19] : memref<1x16x256xf32, #tpu.memory_space<vmem>>, vector<1x16x256xf32>
      %25 = vector.shape_cast %24 : vector<1x16x256xf32> to vector<16x256xf32>
      %26 = vector.shape_cast %23 : vector<16x256xf32> to vector<1x16x256xf32>
      tpu.vector_store %arg7[%c0_17, %c0_18, %c0_19], %26 {strides = array<i32>} : memref<1x16x256xf32, #tpu.memory_space<vmem>>, vector<1x16x256xf32>,
    } else {
    }
    return
  }
  func.func @transform_0(%arg0: i32, %arg1: i32) -> (i32, i32, i32) {
    %c0_i32 = arith.constant 0 : i32
    %c0_i32_0 = arith.constant 0 : i32
    %c0_i32_1 = arith.constant 0 : i32
    return %arg0, %c0_i32, %c0_i32_0 : i32, i32, i32
  }
  func.func @transform_1(%arg0: i32, %arg1: i32) -> (i32, i32, i32, i32) {
    %c0_i32 = arith.constant 0 : i32
    %c0_i32_0 = arith.constant 0 : i32
    %c0_i32_1 = arith.constant 0 : i32
    return %arg0, %arg1, %c0_i32, %c0_i32_0 : i32, i32, i32, i32
  }
  func.func @transform_2(%arg0: i32, %arg1: i32) -> (i32, i32) {
    %c0_i32 = arith.constant 0 : i32
    %c0_i32_0 = arith.constant 0 : i32
    %c0_i32_1 = arith.constant 0 : i32
    return %c0_i32, %c0_i32_0 : i32, i32
  }
  func.func @transform_3(%arg0: i32, %arg1: i32) -> (i32, i32) {
    %c0_i32 = arith.constant 0 : i32
    %c0_i32_0 = arith.constant 0 : i32
    %c0_i32_1 = arith.constant 0 : i32
    return %c0_i32, %c0_i32_0 : i32, i32
  }
  func.func @transform_4(%arg0: i32, %arg1: i32) -> (i32, i32) {
    %c0_i32 = arith.constant 0 : i32
    %c0_i32_0 = arith.constant 0 : i32
    %c0_i32_1 = arith.constant 0 : i32
    return %c0_i32, %c0_i32_0 : i32, i32
  }
  func.func @transform_5(%arg0: i32, %arg1: i32) -> (i32, i32, i32) {
    %c0_i32 = arith.constant 0 : i32
    %c0_i32_0 = arith.constant 0 : i32
    %c0_i32_1 = arith.constant 0 : i32
    return %arg0, %c0_i32, %c0_i32_0 : i32, i32, i32
  }
}

module attributes {stable_mosaic.version = 11 : i64} {
  func.func @conv5_pool_kernel(%arg0: i32, %arg1: memref<1x16x64xf32, #tpu.memory_space<vmem>>, %arg2: memref<1x16x64xf32, #tpu.memory_space<vmem>>, %arg3: memref<1x16x128xf32, #tpu.memory_space<vmem>>, %arg4: memref<1x16x256xf32, #tpu.memory_space<vmem>>, %arg5: memref<64x64xbf16, #tpu.memory_space<vmem>>, %arg6: memref<64x64xbf16, #tpu.memory_space<vmem>>, %arg7: memref<128x64xbf16, #tpu.memory_space<vmem>>, %arg8: memref<256x64xbf16, #tpu.memory_space<vmem>>, %arg9: memref<1x64xf32, #tpu.memory_space<vmem>>, %arg10: memref<1x1x128xf32, #tpu.memory_space<vmem>>) attributes {dimension_semantics = [#tpu.dimension_semantics<parallel>], iteration_bounds = array<i64: 2>, scalar_prefetch = 0 : i64, scratch_operands = 0 : i64, tpu.core_type = #tpu.core_type<tc>, window_params = [{transform_indices = @transform_0, window_bounds = array<i64: 1, 16, 64>}, {transform_indices = @transform_1, window_bounds = array<i64: 1, 16, 64>}, {transform_indices = @transform_2, window_bounds = array<i64: 1, 16, 128>}, {transform_indices = @transform_3, window_bounds = array<i64: 1, 16, 256>}, {pipeline_mode = #tpu.pipeline_mode<synchronous>, transform_indices = @transform_4, window_bounds = array<i64: 64, 64>}, {pipeline_mode = #tpu.pipeline_mode<synchronous>, transform_indices = @transform_5, window_bounds = array<i64: 64, 64>}, {pipeline_mode = #tpu.pipeline_mode<synchronous>, transform_indices = @transform_6, window_bounds = array<i64: 128, 64>}, {pipeline_mode = #tpu.pipeline_mode<synchronous>, transform_indices = @transform_7, window_bounds = array<i64: 256, 64>}, {pipeline_mode = #tpu.pipeline_mode<synchronous>, transform_indices = @transform_8, window_bounds = array<i64: 1, 64>}, {transform_indices = @transform_9, window_bounds = array<i64: 1, 1, 128>}]} {
    %c0 = arith.constant 0 : index
    %c0_0 = arith.constant 0 : index
    %c0_1 = arith.constant 0 : index
    %0 = vector.load %arg1[%c0, %c0_0, %c0_1] : memref<1x16x64xf32, #tpu.memory_space<vmem>>, vector<1x16x64xf32>
    %1 = vector.shape_cast %0 : vector<1x16x64xf32> to vector<16x64xf32>
    %2 = arith.truncf %1 : vector<16x64xf32> to vector<16x64xbf16>
    %c0_2 = arith.constant 0 : index
    %c0_3 = arith.constant 0 : index
    %3 = vector.load %arg5[%c0_2, %c0_3] : memref<64x64xbf16, #tpu.memory_space<vmem>>, vector<64x64xbf16>
    %cst = arith.constant dense<0.000000e+00> : vector<16x64xf32>
    %4 = tpu.matmul %2, %3, %cst {dimension_numbers = #tpu.dot_dimension_numbers<[1], [0], [0], [1], [0, 0, 1, 1], [], []>} : vector<16x64xbf16>, vector<64x64xbf16>, vector<16x64xf32> -> vector<16x64xf32>
    %c0_4 = arith.constant 0 : index
    %c0_5 = arith.constant 0 : index
    %c0_6 = arith.constant 0 : index
    %5 = vector.load %arg2[%c0_4, %c0_5, %c0_6] : memref<1x16x64xf32, #tpu.memory_space<vmem>>, vector<1x16x64xf32>
    %6 = vector.shape_cast %5 : vector<1x16x64xf32> to vector<16x64xf32>
    %7 = arith.truncf %6 : vector<16x64xf32> to vector<16x64xbf16>
    %c0_7 = arith.constant 0 : index
    %c0_8 = arith.constant 0 : index
    %8 = vector.load %arg6[%c0_7, %c0_8] : memref<64x64xbf16, #tpu.memory_space<vmem>>, vector<64x64xbf16>
    %cst_9 = arith.constant dense<0.000000e+00> : vector<16x64xf32>
    %9 = tpu.matmul %7, %8, %cst_9 {dimension_numbers = #tpu.dot_dimension_numbers<[1], [0], [0], [1], [0, 0, 1, 1], [], []>} : vector<16x64xbf16>, vector<64x64xbf16>, vector<16x64xf32> -> vector<16x64xf32>
    %10 = arith.addf %4, %9 : vector<16x64xf32>
    %c0_10 = arith.constant 0 : index
    %c0_11 = arith.constant 0 : index
    %c0_12 = arith.constant 0 : index
    %11 = vector.load %arg3[%c0_10, %c0_11, %c0_12] : memref<1x16x128xf32, #tpu.memory_space<vmem>>, vector<1x16x128xf32>
    %12 = vector.shape_cast %11 : vector<1x16x128xf32> to vector<16x128xf32>
    %13 = arith.truncf %12 : vector<16x128xf32> to vector<16x128xbf16>
    %c0_13 = arith.constant 0 : index
    %c0_14 = arith.constant 0 : index
    %14 = vector.load %arg7[%c0_13, %c0_14] : memref<128x64xbf16, #tpu.memory_space<vmem>>, vector<128x64xbf16>
    %cst_15 = arith.constant dense<0.000000e+00> : vector<16x64xf32>
    %15 = tpu.matmul %13, %14, %cst_15 {dimension_numbers = #tpu.dot_dimension_numbers<[1], [0], [0], [1], [0, 0, 1, 1], [], []>} : vector<16x128xbf16>, vector<128x64xbf16>, vector<16x64xf32> -> vector<16x64xf32>
    %16 = arith.addf %10, %15 : vector<16x64xf32>
    %c0_16 = arith.constant 0 : index
    %c0_17 = arith.constant 0 : index
    %c0_18 = arith.constant 0 : index
    %17 = vector.load %arg4[%c0_16, %c0_17, %c0_18] : memref<1x16x256xf32, #tpu.memory_space<vmem>>, vector<1x16x256xf32>
    %18 = vector.shape_cast %17 : vector<1x16x256xf32> to vector<16x256xf32>
    %19 = arith.truncf %18 : vector<16x256xf32> to vector<16x256xbf16>
    %c0_19 = arith.constant 0 : index
    %c0_20 = arith.constant 0 : index
    %20 = vector.load %arg8[%c0_19, %c0_20] : memref<256x64xbf16, #tpu.memory_space<vmem>>, vector<256x64xbf16>
    %cst_21 = arith.constant dense<0.000000e+00> : vector<16x64xf32>
    %21 = tpu.matmul %19, %20, %cst_21 {dimension_numbers = #tpu.dot_dimension_numbers<[1], [0], [0], [1], [0, 0, 1, 1], [], []>} : vector<16x256xbf16>, vector<256x64xbf16>, vector<16x64xf32> -> vector<16x64xf32>
    %22 = arith.addf %16, %21 : vector<16x64xf32>
    %c0_22 = arith.constant 0 : index
    %c0_23 = arith.constant 0 : index
    %23 = vector.load %arg9[%c0_22, %c0_23] : memref<1x64xf32, #tpu.memory_space<vmem>>, vector<1x64xf32>
    %24 = vector.broadcast %23 : vector<1x64xf32> to vector<16x64xf32>
    %25 = arith.addf %22, %24 : vector<16x64xf32>
    %cst_24 = arith.constant 0.000000e+00 : f32
    %26 = vector.broadcast %cst_24 : f32 to vector<16x64xf32>
    %27 = arith.cmpf oge, %25, %26 : vector<16x64xf32>
    %cst_25 = arith.constant 2.000000e-01 : f32
    %28 = vector.broadcast %cst_25 : f32 to vector<16x64xf32>
    %29 = arith.mulf %28, %25 : vector<16x64xf32>
    %30 = arith.select %27, %25, %29 : vector<16x64xi1>, vector<16x64xf32>
    %cst_26 = arith.constant dense<0xFF800000> : vector<64xf32>
    %31 = vector.multi_reduction <maximumf>, %30, %cst_26 [0] : vector<16x64xf32> to vector<64xf32>
    %32 = vector.shape_cast %31 : vector<64xf32> to vector<1x64xf32>
    %c0_27 = arith.constant 0 : index
    %c0_28 = arith.constant 0 : index
    %c0_29 = arith.constant 0 : index
    %33 = vector.load %arg10[%c0_27, %c0_28, %c0_29] : memref<1x1x128xf32, #tpu.memory_space<vmem>>, vector<1x1x64xf32>
    %34 = vector.shape_cast %33 : vector<1x1x64xf32> to vector<1x64xf32>
    %35 = vector.shape_cast %32 : vector<1x64xf32> to vector<1x1x64xf32>
    tpu.vector_store %arg10[%c0_27, %c0_28, %c0_29], %35 {strides = array<i32>} : memref<1x1x128xf32, #tpu.memory_space<vmem>>, vector<1x1x64xf32>,
    %cst_30 = arith.constant dense<0.000000e+00> : vector<64xf32>
    %36 = vector.multi_reduction <add>, %30, %cst_30 [0] : vector<16x64xf32> to vector<64xf32>
    %37 = vector.shape_cast %36 : vector<64xf32> to vector<1x64xf32>
    %cst_31 = arith.constant 6.250000e-02 : f32
    %38 = vector.broadcast %cst_31 : f32 to vector<1x64xf32>
    %39 = arith.mulf %37, %38 : vector<1x64xf32>
    %c0_32 = arith.constant 0 : index
    %c0_33 = arith.constant 0 : index
    %c64 = arith.constant 64 : index
    %40 = vector.load %arg10[%c0_32, %c0_33, %c64] : memref<1x1x128xf32, #tpu.memory_space<vmem>>, vector<1x1x64xf32>
    %41 = vector.shape_cast %40 : vector<1x1x64xf32> to vector<1x64xf32>
    %42 = vector.shape_cast %39 : vector<1x64xf32> to vector<1x1x64xf32>
    tpu.vector_store %arg10[%c0_32, %c0_33, %c64], %42 {strides = array<i32>} : memref<1x1x128xf32, #tpu.memory_space<vmem>>, vector<1x1x64xf32>,
    return
  }
  func.func @transform_0(%arg0: i32) -> (i32, i32, i32) {
    %c0_i32 = arith.constant 0 : i32
    %c0_i32_0 = arith.constant 0 : i32
    %c0_i32_1 = arith.constant 0 : i32
    return %arg0, %c0_i32, %c0_i32_0 : i32, i32, i32
  }
  func.func @transform_1(%arg0: i32) -> (i32, i32, i32) {
    %c0_i32 = arith.constant 0 : i32
    %c0_i32_0 = arith.constant 0 : i32
    %c0_i32_1 = arith.constant 0 : i32
    return %arg0, %c0_i32, %c0_i32_0 : i32, i32, i32
  }
  func.func @transform_2(%arg0: i32) -> (i32, i32, i32) {
    %c0_i32 = arith.constant 0 : i32
    %c0_i32_0 = arith.constant 0 : i32
    %c0_i32_1 = arith.constant 0 : i32
    return %arg0, %c0_i32, %c0_i32_0 : i32, i32, i32
  }
  func.func @transform_3(%arg0: i32) -> (i32, i32, i32) {
    %c0_i32 = arith.constant 0 : i32
    %c0_i32_0 = arith.constant 0 : i32
    %c0_i32_1 = arith.constant 0 : i32
    return %arg0, %c0_i32, %c0_i32_0 : i32, i32, i32
  }
  func.func @transform_4(%arg0: i32) -> (i32, i32) {
    %c0_i32 = arith.constant 0 : i32
    %c0_i32_0 = arith.constant 0 : i32
    %c0_i32_1 = arith.constant 0 : i32
    return %c0_i32, %c0_i32_0 : i32, i32
  }
  func.func @transform_5(%arg0: i32) -> (i32, i32) {
    %c0_i32 = arith.constant 0 : i32
    %c0_i32_0 = arith.constant 0 : i32
    %c0_i32_1 = arith.constant 0 : i32
    return %c0_i32, %c0_i32_0 : i32, i32
  }
  func.func @transform_6(%arg0: i32) -> (i32, i32) {
    %c0_i32 = arith.constant 0 : i32
    %c0_i32_0 = arith.constant 0 : i32
    %c0_i32_1 = arith.constant 0 : i32
    return %c0_i32, %c0_i32_0 : i32, i32
  }
  func.func @transform_7(%arg0: i32) -> (i32, i32) {
    %c0_i32 = arith.constant 0 : i32
    %c0_i32_0 = arith.constant 0 : i32
    %c0_i32_1 = arith.constant 0 : i32
    return %c0_i32, %c0_i32_0 : i32, i32
  }
  func.func @transform_8(%arg0: i32) -> (i32, i32) {
    %c0_i32 = arith.constant 0 : i32
    %c0_i32_0 = arith.constant 0 : i32
    %c0_i32_1 = arith.constant 0 : i32
    return %c0_i32, %c0_i32_0 : i32, i32
  }
  func.func @transform_9(%arg0: i32) -> (i32, i32, i32) {
    %c0_i32 = arith.constant 0 : i32
    %c0_i32_0 = arith.constant 0 : i32
    %c0_i32_1 = arith.constant 0 : i32
    return %arg0, %c0_i32, %c0_i32_0 : i32, i32, i32
  }
}

module attributes {stable_mosaic.version = 11 : i64} {
  func.func @mlp_head_kernel(%arg0: memref<2x128xf32, #tpu.memory_space<vmem>>, %arg1: memref<128x512xbf16, #tpu.memory_space<vmem>>, %arg2: memref<1x512xf32, #tpu.memory_space<vmem>>, %arg3: memref<512x256xbf16, #tpu.memory_space<vmem>>, %arg4: memref<1x256xf32, #tpu.memory_space<vmem>>, %arg5: memref<256x40xbf16, #tpu.memory_space<vmem>>, %arg6: memref<1x40xf32, #tpu.memory_space<vmem>>, %arg7: memref<2x40xf32, #tpu.memory_space<vmem>>) attributes {dimension_semantics = [], scalar_prefetch = 0 : i64, scratch_operands = 0 : i64, tpu.core_type = #tpu.core_type<tc>} {
    %c0 = arith.constant 0 : index
    %c0_0 = arith.constant 0 : index
    %0 = vector.load %arg0[%c0, %c0_0] : memref<2x128xf32, #tpu.memory_space<vmem>>, vector<2x128xf32>
    %1 = arith.truncf %0 : vector<2x128xf32> to vector<2x128xbf16>
    %c0_1 = arith.constant 0 : index
    %c0_2 = arith.constant 0 : index
    %2 = vector.load %arg1[%c0_1, %c0_2] : memref<128x512xbf16, #tpu.memory_space<vmem>>, vector<128x512xbf16>
    %cst = arith.constant dense<0.000000e+00> : vector<2x512xf32>
    %3 = tpu.matmul %1, %2, %cst {dimension_numbers = #tpu.dot_dimension_numbers<[1], [0], [0], [1], [0, 0, 1, 1], [], []>} : vector<2x128xbf16>, vector<128x512xbf16>, vector<2x512xf32> -> vector<2x512xf32>
    %c0_3 = arith.constant 0 : index
    %c0_4 = arith.constant 0 : index
    %4 = vector.load %arg2[%c0_3, %c0_4] : memref<1x512xf32, #tpu.memory_space<vmem>>, vector<1x512xf32>
    %5 = vector.broadcast %4 : vector<1x512xf32> to vector<2x512xf32>
    %6 = arith.addf %3, %5 : vector<2x512xf32>
    %cst_5 = arith.constant 0.000000e+00 : f32
    %7 = vector.broadcast %cst_5 : f32 to vector<2x512xf32>
    %8 = arith.cmpf oge, %6, %7 : vector<2x512xf32>
    %cst_6 = arith.constant 2.000000e-01 : f32
    %9 = vector.broadcast %cst_6 : f32 to vector<2x512xf32>
    %10 = arith.mulf %9, %6 : vector<2x512xf32>
    %11 = arith.select %8, %6, %10 : vector<2x512xi1>, vector<2x512xf32>
    %12 = arith.truncf %11 : vector<2x512xf32> to vector<2x512xbf16>
    %c0_7 = arith.constant 0 : index
    %c0_8 = arith.constant 0 : index
    %13 = vector.load %arg3[%c0_7, %c0_8] : memref<512x256xbf16, #tpu.memory_space<vmem>>, vector<512x256xbf16>
    %cst_9 = arith.constant dense<0.000000e+00> : vector<2x256xf32>
    %14 = tpu.matmul %12, %13, %cst_9 {dimension_numbers = #tpu.dot_dimension_numbers<[1], [0], [0], [1], [0, 0, 1, 1], [], []>} : vector<2x512xbf16>, vector<512x256xbf16>, vector<2x256xf32> -> vector<2x256xf32>
    %c0_10 = arith.constant 0 : index
    %c0_11 = arith.constant 0 : index
    %15 = vector.load %arg4[%c0_10, %c0_11] : memref<1x256xf32, #tpu.memory_space<vmem>>, vector<1x256xf32>
    %16 = vector.broadcast %15 : vector<1x256xf32> to vector<2x256xf32>
    %17 = arith.addf %14, %16 : vector<2x256xf32>
    %cst_12 = arith.constant 0.000000e+00 : f32
    %18 = vector.broadcast %cst_12 : f32 to vector<2x256xf32>
    %19 = arith.cmpf oge, %17, %18 : vector<2x256xf32>
    %cst_13 = arith.constant 2.000000e-01 : f32
    %20 = vector.broadcast %cst_13 : f32 to vector<2x256xf32>
    %21 = arith.mulf %20, %17 : vector<2x256xf32>
    %22 = arith.select %19, %17, %21 : vector<2x256xi1>, vector<2x256xf32>
    %23 = arith.truncf %22 : vector<2x256xf32> to vector<2x256xbf16>
    %c0_14 = arith.constant 0 : index
    %c0_15 = arith.constant 0 : index
    %24 = vector.load %arg5[%c0_14, %c0_15] : memref<256x40xbf16, #tpu.memory_space<vmem>>, vector<256x40xbf16>
    %cst_16 = arith.constant dense<0.000000e+00> : vector<2x40xf32>
    %25 = tpu.matmul %23, %24, %cst_16 {dimension_numbers = #tpu.dot_dimension_numbers<[1], [0], [0], [1], [0, 0, 1, 1], [], []>} : vector<2x256xbf16>, vector<256x40xbf16>, vector<2x40xf32> -> vector<2x40xf32>
    %c0_17 = arith.constant 0 : index
    %c0_18 = arith.constant 0 : index
    %26 = vector.load %arg6[%c0_17, %c0_18] : memref<1x40xf32, #tpu.memory_space<vmem>>, vector<1x40xf32>
    %27 = vector.broadcast %26 : vector<1x40xf32> to vector<2x40xf32>
    %28 = arith.addf %25, %27 : vector<2x40xf32>
    %c0_19 = arith.constant 0 : index
    %c0_20 = arith.constant 0 : index
    %29 = vector.load %arg7[%c0_19, %c0_20] : memref<2x40xf32, #tpu.memory_space<vmem>>, vector<2x40xf32>
    tpu.vector_store %arg7[%c0_19, %c0_20], %28 {strides = array<i32>} : memref<2x40xf32, #tpu.memory_space<vmem>>, vector<2x40xf32>,
    return
  }
}

</mosaic_0001>

<bundles_post_ra>
// kernel: dgcnn_forward.10
= control target key start
LH: loop header
LB: loop body
LE: loop exit
PB: predicated region body
PF: predicated region fallthrough
CT: control target
= control target key end

     0   :  { %s441_s6 = smov 0   ;;  %s472_s0 = inlined_call_operand.vmem [shape: f32[2,16,3], index: 0, kind: input, shape index: {}]   ;;  %s473_s1 = inlined_call_operand.vmem [shape: f32[2,16,16], index: 1, kind: output, shape index: {}]  }
   0x1 LB: > { %s356_s7 = sadd.s32 4294967295, %s425_s6   ;;  %p360_p0 = scmp.ge.s32.totalorder %s425_s6, 1  ;;  %s425_s6 = sphi %s441_s6, %s11_s6  }
   0x2   : > { %p87_p1 = scmp.lt.s32.totalorder %s425_s6, 3 }
   0x4   : > { %p88_p2 = pnand %p360_p0, %p87_p1 }
   0x5   : > { %p107_p3 = scmp.lt.s32.totalorder (!%p88_p2), %s356_s7, 1  ;;  %v427_v0 = vmov (!%p88_p2), 0.0|0.0   ;;  %vm428_vm0 = vmmov (!%p88_p2), 0   ;;  %v429_v1 = vmov (!%p88_p2), 0.0   ;;  %vm119_vm1 = vcmask (!%p88_p2), 23552  }
   0x6   : > { %91 = sbr.rel (%p88_p2) target bundleno = 247 (0xf7), region = 24  ;;  %403 = vmatprep.subr.bf16.mxu1 (!%p88_p2), %v427_v0  ;;  %394 = vmatprep.mubr.msk.f32.mxu1 (!%p88_p2), %vm428_vm0, %v429_v1  ;;  %vm398_vm2 = vmpackc.low (!%p88_p2), %vm119_vm1, %vm119_vm1  ;;  %v430_v10 = vmov (!%p88_p2), 1.0   ;;  %v292_v11 = vlaneseq (!%p88_p2)  ;;  %vm298_vm3 = vcmask (!%p88_p2), 130048  }
   0x8   : > { %v293_v13 = vshrl.u32 (!%p88_p2), %v292_v11, 7 }
   0xa   : > { %v294_v14 = vsub.s32 (!%p88_p2), 0, %v293_v13 }
   0xd   : > { %s475_s7 = smov (!%p107_p3, %s356_s7), 1 }
   0xe   : > { %s374_s8 = sshll.u32 %s475_s7, 4 }
   0xf   : > { %s111_s11 = scalar_lea.vmem %s472_s0, %s374_s8  ;;  %s116_s14 = scalar_lea.vmem %s473_s1, %s374_s8 }
  0x10   : > { %v117_v2 = vld [vmem:[%s111_s11] sm:$0xff]  ;;  %v118_v3 = vld [vmem:[%s111_s11 + $0x8] sm:$0xff] }
  0x11   : > { %v397_v4 = vpack.c.bf16 %v118_v3, %v117_v2  ;;  %v201_v5 = vmul.f32 %v117_v2, %v117_v2  ;;  %v202_v6 = vmul.f32 %v118_v3, %v118_v3  ;;  %387 = vmatprep.mubr.msk.f32.mxu0 %vm119_vm1, %v117_v2 }
  0x13   : > { %399 = vmatprep.subr.msk.bf16.mxu0 %vm398_vm2, %v397_v4  ;;  %v404_v7 = vpack.c.bf16 %v202_v6, %v201_v5  ;;  %v203_v8 = vsel %vm119_vm1, %v201_v5, 0.0  ;;  %v206_v9 = vsel %vm119_vm1, %v202_v6, 0.0 }
  0x14   : > { %402 = vmatpush3.bf16.xpose.msk.msra.mxu0 %vm398_vm2, %v397_v4  ;;  %204 = vadd.xlane.f32.xlu0 %v203_v8 }
  0x15   : > { %406 = vmatpush3.bf16.xpose.msk.msra.mxu1 %vm398_vm2, %v404_v7 }
  0x18   : > { %207 = vadd.xlane.f32.xlu0 %v206_v9 }
  0x1b   : > { %388 = vmatmul.mubr.msk.f32.vlgmr.msra.gmra.mrb[0].mxu0 %vm119_vm1, %v118_v3 }
  0x1c   : > { %395 = vmatmul.mubr.msk.f32.vlgmr.msra.gmra.mrb[0].mxu1 %vm119_vm1, %v430_v10 }
  0xa1   : > { %v205_v12 = vpop.xlane.xlu0 %204 }
  0xa5   : > { %v208_v16 = vpop.xlane.xlu0 %207 }
  0xee   : > { %v389_v15 = vpop.f32.mrb[0].mxu0 }
  0xef   : > { %v289_v17 = vmul.f32 2.0, %v389_v15  ;;  %v192_v18 = vpop.f32.mrb[1].mxu0  ;;  %v284_v19 = vpop.f32.mrb[0].mxu1 }
  0xf0   : > { %v288_v20 = vmul.f32 2.0, %v192_v18  ;;  %v295_v21 = vrot.slane %v284_v19, %v294_v14  ;;  %v396_v22 = vpop.f32.mrb[1].mxu1 }
  0xf1   : > { %v291_v23 = vsub.f32 %v289_v17, %v208_v16 }
  0xf2   : > { %v290_v24 = vsub.f32 %v288_v20, %v205_v12 }
  0xf3   : > { %v297_v25 = vsub.f32 %v291_v23, %v295_v21 }
  0xf4   : > { %v296_v26 = vsub.f32 %v290_v24, %v295_v21 }
  0xf5   : > { %300 = vst.msk [vmem:[%s116_s14 + $0x8] sm:$0xff] %vm298_vm3, %v297_v25 }
  0xf6   : > { %299 = vst.msk [vmem:[%s116_s14] sm:$0xff] %vm298_vm3, %v296_v26 }
  0xf7 PF: > { %s11_s6 = sadd.s32 1, %s425_s6  }
  0xf8   : > { %p8_p4 = scmp.ge.s32.totalorder %s11_s6, 4  }
  0xfa   :  { %10 = sbr.rel (!%p8_p4) target bundleno = 1 (0x1), region = 54 }

// kernel: dgcnn_forward.11
= control target key start
LH: loop header
LB: loop body
LE: loop exit
PB: predicated region body
PF: predicated region fallthrough
CT: control target
= control target key end

     0   :  { %s670_s18 = smov 0   ;;  %s672_s19 = smov 0   ;;  %s755_s0 = inlined_call_operand.vmem [shape: f32[2,16,3], index: 0, kind: input, shape index: {}]   ;;  %s756_s1 = inlined_call_operand.vmem [shape: f32[2,4,16,3], index: 1, kind: input, shape index: {}]   ;;  %s757_s2 = inlined_call_operand.vmem [shape: bf16[3,64], index: 2, kind: input, shape index: {}]   ;;  %s758_s3 = inlined_call_operand.vmem [shape: bf16[3,64], index: 3, kind: input, shape index: {}]   ;;  %s759_s4 = inlined_call_operand.vmem [shape: f32[1,64], index: 4, kind: input, shape index: {}]   ;;  %s760_s5 = inlined_call_operand.vmem [shape: f32[2,16,64], index: 5, kind: output, shape index: {}]  }
   0x1   :  { %s674_s20 = smov 0   ;;  %s676_s21 = smov 0  }
   0x2   :  { %s678_s22 = smov 0  }
   0x3 LB: > { %s24_s23 = sadd.s32 1, %s624_s20  ;;  %s27_s24 = sadd.s32 1, %s628_s21  ;;  %s632_s22 = sphi %s678_s22, %s15_s22   ;;  %s628_s21 = sphi %s676_s21, %s764_s21   ;;  %s624_s20 = sphi %s674_s20, %s763_s20   ;;  %s620_s19 = sphi %s672_s19, %s762_s19   ;;  %s616_s18 = sphi %s670_s18, %s761_s18  }
   0x4   : > { %p25_p0 = scmp.ge.s32.totalorder %s24_s23, 4  ;;  %p514_p1 = scmp.ge.s32.totalorder %s632_s22, 1 }
   0x5   : > { %p215_p2 = scmp.lt.s32.totalorder %s632_s22, 9 }
   0x6   : > { %s766_s23 = smov (%p25_p0, %s24_s23), 0  ;;  %s768_s24 = smov (!%p25_p0, %s27_s24), %s628_s21 }
   0x7   : > { %p216_p3 = pnand %p514_p1, %p215_p2  ;;  %p29_p4 = scmp.ge.s32.totalorder %s768_s24, 2 }
   0x8   : > { %p252_p5 = scmp.lt.s32.totalorder (!%p216_p3), %s620_s19, 1  ;;  %p259_p6 = scmp.lt.s32.totalorder (!%p216_p3), %s616_s18, 3 }
   0x9   : > { %s770_s24 = smov (%p29_p4, %s768_s24), 0  ;;  %219 = sbr.rel (%p216_p3) target bundleno = 482 (0x1e2), region = 40 }
   0xa   : > { %p522_p7 = scmp.ne.s32.totalorder (!%p216_p3), %s616_s18, 0 }
  0x10   : > { %s772_s19 = smov (!%p252_p5, %s620_s19), 1  ;;  %275 = sbr.rel (%p522_p7) target bundleno = 244 (0xf4), region = 44 }
  0x11   : > { %s260_s25 = scalar_select %p259_p6, %s616_s18, 3 }
  0x12   : > { %s530_s26 = sshll.u32 %s772_s19, 4  ;;  %s518_s27 = sshll.u32 %s772_s19, 3  ;;  %v279_v0 = vld [vmem:[%s758_s3] sm:$0x3] (!%p522_p7)  ;;  %vm291_vm0 = vcmask (!%p522_p7), 1040384   ;;  %vm292_vm1 = vcmask (!%p522_p7), 1041408  }
  0x13   : > { %s256_s30 = scalar_lea.vmem %s755_s0, %s530_s26  ;;  %s517_s6 = sshll.u32 %s260_s25, 1  ;;  %v634_v1 = vmov (!%p522_p7), 0.0   ;;  %v635_v2 = vmov (!%p522_p7), 65535   ;;  %vm636_vm2 = vmmov (!%p522_p7), 0   ;;  %vm287_vm3 = vcmask (!%p522_p7), 23552  }
  0x14   : > { %s263_s7 = sadd.s32 %s518_s27, %s517_s6  ;;  %s710_s10 = scalar_lea.vmem %s760_s5, %s530_s26  ;;  %536 = vmatprep.subr.bf16.mxu0 (!%p522_p7), %v634_v1  ;;  %v293_v3 = vsel (!%p522_p7), %vm291_vm0, 4294967295, %v635_v2  ;;  %v276_v4 = vld [vmem:[%s256_s30] sm:$0xff] (!%p522_p7)  ;;  %v277_v5 = vld [vmem:[%s256_s30 + $0x8] sm:$0xff] (!%p522_p7)  ;;  %538 = vmatprep.mubr.msk.bf16.mxu0 (!%p522_p7), %vm636_vm2, %v634_v1  ;;  %vm339_vm4 = vcmask (!%p522_p7), 523264  }
  0x15   : > { %s519_s11 = sshll.u32 %s263_s7, 3  ;;  %v294_v6 = vsel (!%p522_p7), %vm292_vm1, %v293_v3, 0  ;;  %v278_v8 = vpack.c.bf16 (!%p522_p7), %v277_v5, %v276_v4  ;;  %v523_v9 = vld [vmem:[%s759_s4] ss:$0 sm:$0xff] (!%p522_p7) }
  0x16   : > { %s715_s14 = scalar_lea.vmem %s756_s1, %s519_s11  ;;  %v296_v7 = vand.u32 (!%p522_p7), %v294_v6, %v279_v0 }
  0x18   : > { %537 = vmatpush3.bf16.msra.mxu0 %v296_v7 }
  0x1b   : > { %539 = vmatmul.mubr.msk.bf16.vlgmr.msra.gmra.mrb[0].mxu0 %vm287_vm3, %v278_v8 }
  0xee   : > { %v332_v10 = vpop.f32.mrb[0].mxu0 }
  0xef   : > { %v333_v11 = vadd.f32 %v523_v9, %v332_v10  ;;  %v540_v12 = vpop.f32.mrb[1].mxu0 }
  0xf0   : > { %v335_v13 = vpop.f32.mrb[2].mxu0 }
  0xf1   : > { %340 = vst.msk [vmem:[#allocation2] sm:$0xff] %vm339_vm4, %v333_v11  ;;  %v336_v14 = vadd.f32 %v523_v9, %v335_v13  ;;  %v541_v15 = vpop.f32.mrb[3].mxu0 }
  0xf3   : > { %341 = vst.msk [vmem:[#allocation2 + $0x8] sm:$0xff] %vm339_vm4, %v336_v14 }
  0xf4 PF: > { %v345_v16 = vld [vmem:[%s757_s2] sm:$0x3]  ;;  %vm352_vm5 = vcmask 1040384   ;;  %vm353_vm6 = vcmask 1041408   ;;  %v637_v17 = vmov 0.0   ;;  %v638_v18 = vmov 65535  }
  0xf5   : > { %542 = vmatprep.subr.bf16.mxu0 %v637_v17  ;;  %v354_v19 = vsel %vm352_vm5, 4294967295, %v638_v18  ;;  %v342_v20 = vld [vmem:[%s715_s14] sm:$0xff]  ;;  %v343_v21 = vld [vmem:[%s715_s14 + $0x8] sm:$0xff]  ;;  %vm639_vm7 = vmmov 0   ;;  %vm348_vm8 = vcmask 23552   ;;  %vm409_vm11 = vcmask (!%p522_p7), 523264  }
  0xf6   : > { %v355_v22 = vsel %vm353_vm6, %v354_v19, 0  ;;  %544 = vmatprep.mubr.msk.bf16.mxu0 %vm639_vm7, %v637_v17  ;;  %v344_v24 = vpack.c.bf16 %v343_v21, %v342_v20 }
  0xf7   : > { %v357_v23 = vand.u32 %v355_v22, %v345_v16 }
  0xf8   : > { %v346_v25 = vld [vmem:[#allocation2] sm:$0xff] }
  0xf9   : > { %543 = vmatpush3.bf16.msra.mxu0 %v357_v23 }
  0xfa   : > { %v347_v27 = vld [vmem:[#allocation2 + $0x8] sm:$0xff] }
  0xfc   : > { %545 = vmatmul.mubr.msk.bf16.vlgmr.msra.gmra.mrb[0].mxu0 %vm348_vm8, %v344_v24 }
 0x1cf   : > { %v393_v26 = vpop.f32.mrb[0].mxu0 }
 0x1d0   : > { %v394_v28 = vadd.f32 %v393_v26, %v346_v25  ;;  %v546_v29 = vpop.f32.mrb[1].mxu0  ;;  %408 = sbr.rel (%p522_p7) target bundleno = 472 (0x1d8), region = 48 }
 0x1d1   : > { %v396_v30 = vpop.f32.mrb[2].mxu0 }
 0x1d2   : > { %vm400_vm9 = vcmp.ge.f32.partialorder %v394_v28, 0.0  ;;  %v402_v31 = vmul.f32 0.2, %v394_v28  ;;  %v397_v32 = vadd.f32 %v396_v30, %v347_v27  ;;  %v547_v33 = vpop.f32.mrb[3].mxu0 }
 0x1d4   : > { %v404_v34 = vsel %vm400_vm9, %v394_v28, %v402_v31  ;;  %vm401_vm10 = vcmp.ge.f32.partialorder %v397_v32, 0.0  ;;  %v403_v35 = vmul.f32 0.2, %v397_v32 }
 0x1d5   : > { %410 = vst.msk [vmem:[%s710_s10] sm:$0xff] (!%p522_p7), %vm409_vm11, %v404_v34 }
 0x1d6   : > { %v405_v36 = vsel %vm401_vm10, %v397_v32, %v403_v35 }
 0x1d7   : > { %411 = vst.msk [vmem:[%s710_s10 + $0x8] sm:$0xff] %vm409_vm11, %v405_v36 }
 0x1d8 PF: > { %p527_p8 = scmp.le.s32.totalorder %s616_s18, 0 }
 0x1d9   : > { %vm420_vm12 = vcmask (!%p527_p8), 523264  }
 0x1da   : > { %415 = sbr.rel (%p527_p8) target bundleno = 482 (0x1e2), region = 52 }
 0x1dd   : > { %v416_v37 = vld [vmem:[%s710_s10] sm:$0xff] (!%p527_p8) }
 0x1de   : > { %v417_v38 = vld [vmem:[%s710_s10 + $0x8] sm:$0xff] (!%p527_p8)  ;;  %v418_v39 = vmax.f32 (!%p527_p8), %v416_v37, %v404_v34 }
 0x1df   : > { %v419_v40 = vmax.f32 (!%p527_p8), %v417_v38, %v405_v36 }
 0x1e0   : > { %421 = vst.msk [vmem:[%s710_s10] sm:$0xff] (!%p527_p8), %vm420_vm12, %v418_v39 }
 0x1e1   : > { %422 = vst.msk [vmem:[%s710_s10 + $0x8] sm:$0xff] %vm420_vm12, %v419_v40 }
 0x1e2 PF: > { %s15_s22 = sadd.s32 1, %s632_s22   ;;  %s761_s18 = smov %s624_s20 }
 0x1e3   : > { %p12_p9 = scmp.ge.s32.totalorder %s15_s22, 10   ;;  %s762_s19 = smov %s628_s21 }
 0x1e4   : > { %s763_s20 = smov %s766_s23  ;;  %s764_s21 = smov %s770_s24 }
 0x1e5   :  { %14 = sbr.rel (!%p12_p9) target bundleno = 3 (0x3), region = 85 }

// kernel: dgcnn_forward.12
= control target key start
LH: loop header
LB: loop body
LE: loop exit
PB: predicated region body
PF: predicated region fallthrough
CT: control target
= control target key end

     0   :  { %s441_s6 = smov 0   ;;  %s472_s0 = inlined_call_operand.vmem [shape: f32[2,16,64], index: 0, kind: input, shape index: {}]   ;;  %s473_s1 = inlined_call_operand.vmem [shape: f32[2,16,16], index: 1, kind: output, shape index: {}]  }
   0x1 LB: > { %s356_s7 = sadd.s32 4294967295, %s425_s6   ;;  %p360_p0 = scmp.ge.s32.totalorder %s425_s6, 1  ;;  %s425_s6 = sphi %s441_s6, %s11_s6  }
   0x2   : > { %p87_p1 = scmp.lt.s32.totalorder %s425_s6, 3 }
   0x4   : > { %p88_p2 = pnand %p360_p0, %p87_p1 }
   0x5   : > { %p107_p3 = scmp.lt.s32.totalorder (!%p88_p2), %s356_s7, 1  ;;  %v427_v0 = vmov (!%p88_p2), 0.0|0.0   ;;  %vm428_vm0 = vmmov (!%p88_p2), 0   ;;  %v429_v1 = vmov (!%p88_p2), 0.0   ;;  %vm119_vm1 = vcmask (!%p88_p2), 523264  }
   0x6   : > { %91 = sbr.rel (%p88_p2) target bundleno = 247 (0xf7), region = 24  ;;  %403 = vmatprep.subr.bf16.mxu1 (!%p88_p2), %v427_v0  ;;  %394 = vmatprep.mubr.msk.f32.mxu1 (!%p88_p2), %vm428_vm0, %v429_v1  ;;  %vm398_vm2 = vmpackc.low (!%p88_p2), %vm119_vm1, %vm119_vm1  ;;  %v430_v10 = vmov (!%p88_p2), 1.0   ;;  %v292_v11 = vlaneseq (!%p88_p2)  ;;  %vm298_vm3 = vcmask (!%p88_p2), 130048  }
   0x8   : > { %v293_v13 = vshrl.u32 (!%p88_p2), %v292_v11, 7 }
   0xa   : > { %v294_v14 = vsub.s32 (!%p88_p2), 0, %v293_v13 }
   0xd   : > { %s475_s7 = smov (!%p107_p3, %s356_s7), 1 }
   0xe   : > { %s374_s8 = sshll.u32 %s475_s7, 4 }
   0xf   : > { %s111_s11 = scalar_lea.vmem %s472_s0, %s374_s8  ;;  %s116_s14 = scalar_lea.vmem %s473_s1, %s374_s8 }
  0x10   : > { %v117_v2 = vld [vmem:[%s111_s11] sm:$0xff]  ;;  %v118_v3 = vld [vmem:[%s111_s11 + $0x8] sm:$0xff] }
  0x11   : > { %v397_v4 = vpack.c.bf16 %v118_v3, %v117_v2  ;;  %v201_v5 = vmul.f32 %v117_v2, %v117_v2  ;;  %v202_v6 = vmul.f32 %v118_v3, %v118_v3  ;;  %387 = vmatprep.mubr.msk.f32.mxu0 %vm119_vm1, %v117_v2 }
  0x13   : > { %399 = vmatprep.subr.msk.bf16.mxu0 %vm398_vm2, %v397_v4  ;;  %v404_v7 = vpack.c.bf16 %v202_v6, %v201_v5  ;;  %v203_v8 = vsel %vm119_vm1, %v201_v5, 0.0  ;;  %v206_v9 = vsel %vm119_vm1, %v202_v6, 0.0 }
  0x14   : > { %402 = vmatpush3.bf16.xpose.msk.msra.mxu0 %vm398_vm2, %v397_v4  ;;  %204 = vadd.xlane.f32.xlu0 %v203_v8 }
  0x15   : > { %406 = vmatpush3.bf16.xpose.msk.msra.mxu1 %vm398_vm2, %v404_v7 }
  0x18   : > { %207 = vadd.xlane.f32.xlu0 %v206_v9 }
  0x1b   : > { %388 = vmatmul.mubr.msk.f32.vlgmr.msra.gmra.mrb[0].mxu0 %vm119_vm1, %v118_v3 }
  0x1c   : > { %395 = vmatmul.mubr.msk.f32.vlgmr.msra.gmra.mrb[0].mxu1 %vm119_vm1, %v430_v10 }
  0xa1   : > { %v205_v12 = vpop.xlane.xlu0 %204 }
  0xa5   : > { %v208_v16 = vpop.xlane.xlu0 %207 }
  0xee   : > { %v389_v15 = vpop.f32.mrb[0].mxu0 }
  0xef   : > { %v289_v17 = vmul.f32 2.0, %v389_v15  ;;  %v192_v18 = vpop.f32.mrb[1].mxu0  ;;  %v284_v19 = vpop.f32.mrb[0].mxu1 }
  0xf0   : > { %v288_v20 = vmul.f32 2.0, %v192_v18  ;;  %v295_v21 = vrot.slane %v284_v19, %v294_v14  ;;  %v396_v22 = vpop.f32.mrb[1].mxu1 }
  0xf1   : > { %v291_v23 = vsub.f32 %v289_v17, %v208_v16 }
  0xf2   : > { %v290_v24 = vsub.f32 %v288_v20, %v205_v12 }
  0xf3   : > { %v297_v25 = vsub.f32 %v291_v23, %v295_v21 }
  0xf4   : > { %v296_v26 = vsub.f32 %v290_v24, %v295_v21 }
  0xf5   : > { %300 = vst.msk [vmem:[%s116_s14 + $0x8] sm:$0xff] %vm298_vm3, %v297_v25 }
  0xf6   : > { %299 = vst.msk [vmem:[%s116_s14] sm:$0xff] %vm298_vm3, %v296_v26 }
  0xf7 PF: > { %s11_s6 = sadd.s32 1, %s425_s6  }
  0xf8   : > { %p8_p4 = scmp.ge.s32.totalorder %s11_s6, 4  }
  0xfa   :  { %10 = sbr.rel (!%p8_p4) target bundleno = 1 (0x1), region = 54 }

// kernel: dgcnn_forward.13
= control target key start
LH: loop header
LB: loop body
LE: loop exit
PB: predicated region body
PF: predicated region fallthrough
CT: control target
= control target key end

     0   :  { %s745_s18 = smov 0   ;;  %s747_s19 = smov 0   ;;  %s853_s0 = inlined_call_operand.vmem [shape: f32[2,16,64], index: 0, kind: input, shape index: {}]   ;;  %s854_s1 = inlined_call_operand.vmem [shape: f32[2,4,16,64], index: 1, kind: input, shape index: {}]   ;;  %s855_s2 = inlined_call_operand.vmem [shape: bf16[64,64], index: 2, kind: input, shape index: {}]   ;;  %s856_s3 = inlined_call_operand.vmem [shape: bf16[64,64], index: 3, kind: input, shape index: {}]   ;;  %s857_s4 = inlined_call_operand.vmem [shape: f32[1,64], index: 4, kind: input, shape index: {}]   ;;  %s858_s5 = inlined_call_operand.vmem [shape: f32[2,16,64], index: 5, kind: output, shape index: {}]  }
   0x1   :  { %s749_s20 = smov 0   ;;  %s751_s21 = smov 0  }
   0x2   :  { %s753_s22 = smov 0  }
   0x3 LB: > { %s24_s23 = sadd.s32 1, %s701_s20  ;;  %s27_s24 = sadd.s32 1, %s705_s21  ;;  %s709_s22 = sphi %s753_s22, %s15_s22   ;;  %s705_s21 = sphi %s751_s21, %s862_s21   ;;  %s701_s20 = sphi %s749_s20, %s861_s20   ;;  %s697_s19 = sphi %s747_s19, %s860_s19   ;;  %s693_s18 = sphi %s745_s18, %s859_s18  }
   0x4   : > { %p25_p0 = scmp.ge.s32.totalorder %s24_s23, 4  ;;  %p559_p1 = scmp.ge.s32.totalorder %s709_s22, 1 }
   0x5   : > { %p215_p2 = scmp.lt.s32.totalorder %s709_s22, 9 }
   0x6   : > { %s864_s23 = smov (%p25_p0, %s24_s23), 0  ;;  %s866_s24 = smov (!%p25_p0, %s27_s24), %s705_s21 }
   0x7   : > { %p216_p3 = pnand %p559_p1, %p215_p2  ;;  %p29_p4 = scmp.ge.s32.totalorder %s866_s24, 2 }
   0x8   : > { %p252_p5 = scmp.lt.s32.totalorder (!%p216_p3), %s697_s19, 1  ;;  %p259_p6 = scmp.lt.s32.totalorder (!%p216_p3), %s693_s18, 3 }
   0x9   : > { %s868_s24 = smov (%p29_p4, %s866_s24), 0  ;;  %219 = sbr.rel (%p216_p3) target bundleno = 499 (0x1f3), region = 40 }
   0xa   : > { %p567_p7 = scmp.ne.s32.totalorder (!%p216_p3), %s693_s18, 0 }
  0x10   : > { %s870_s19 = smov (!%p252_p5, %s697_s19), 1  ;;  %275 = sbr.rel (%p567_p7) target bundleno = 252 (0xfc), region = 44 }
  0x11   : > { %s260_s25 = scalar_select %p259_p6, %s693_s18, 3 }
  0x12   : > { %s583_s26 = sshll.u32 %s870_s19, 4  ;;  %s563_s27 = sshll.u32 %s870_s19, 3  ;;  %v663_v0 = vld [vmem:[%s856_s3] sm:$0xff] (!%p567_p7)   ;;  %v711_v1 = vmov (!%p567_p7), 0.0   ;;  %v664_v2 = vld [vmem:[%s856_s3 + $0x8] sm:$0xff] (!%p567_p7)   ;;  %vm712_vm0 = vmmov (!%p567_p7), 0  }
  0x13   : > { %s256_s30 = scalar_lea.vmem %s853_s0, %s583_s26  ;;  %s562_s6 = sshll.u32 %s260_s25, 1  ;;  %595 = vmatprep.subr.bf16.mxu0 (!%p567_p7), %v711_v1  ;;  %603 = vmatprep.mubr.msk.bf16.mxu0 (!%p567_p7), %vm712_vm0, %v711_v1  ;;  %v665_v3 = vld [vmem:[%s856_s3 + $0x10] sm:$0xff] (!%p567_p7)   ;;  %v666_v4 = vld [vmem:[%s856_s3 + $0x18] sm:$0xff] (!%p567_p7)   ;;  %vm318_vm1 = vcmask (!%p567_p7), 523264   ;;  %v568_v8 = vld [vmem:[%s857_s4] ss:$0 sm:$0xff] (!%p567_p7) }
  0x14   : > { %s263_s7 = sadd.s32 %s563_s27, %s562_s6  ;;  %s785_s10 = scalar_lea.vmem %s858_s5, %s583_s26  ;;  %596 = vmatpush3.bf16.msra.mxu0 (!%p567_p7), %v663_v0  ;;  %v276_v5 = vld [vmem:[%s256_s30] sm:$0xff] (!%p567_p7)  ;;  %v277_v6 = vld [vmem:[%s256_s30 + $0x8] sm:$0xff] (!%p567_p7) }
  0x15   : > { %s564_s11 = sshll.u32 %s263_s7, 3  ;;  %597 = vmatprep.subr.bf16.mxu0 (!%p567_p7), %v711_v1  ;;  %v278_v7 = vpack.c.bf16 (!%p567_p7), %v277_v6, %v276_v5 }
  0x16   : > { %s790_s14 = scalar_lea.vmem %s854_s1, %s564_s11 }
  0x18   : > { %598 = vmatpush3.bf16.msra.mxu0 %v664_v2 }
  0x19   : > { %599 = vmatprep.subr.bf16.mxu0 %v711_v1 }
  0x1c   : > { %600 = vmatpush3.bf16.msra.mxu0 %v665_v3 }
  0x1d   : > { %601 = vmatprep.subr.bf16.mxu0 %v711_v1 }
  0x20   : > { %602 = vmatpush3.bf16.msra.mxu0 %v666_v4 }
  0x23   : > { %604 = vmatmul.mubr.msk.bf16.vlgmr.msra.gmra.mrb[0].mxu0 %vm318_vm1, %v278_v7 }
  0xf6   : > { %v356_v9 = vpop.f32.mrb[0].mxu0 }
  0xf7   : > { %v357_v10 = vadd.f32 %v568_v8, %v356_v9  ;;  %v605_v11 = vpop.f32.mrb[1].mxu0 }
  0xf8   : > { %v359_v12 = vpop.f32.mrb[2].mxu0 }
  0xf9   : > { %363 = vst.msk [vmem:[#allocation2] sm:$0xff] %vm318_vm1, %v357_v10  ;;  %v360_v13 = vadd.f32 %v568_v8, %v359_v12  ;;  %v606_v14 = vpop.f32.mrb[3].mxu0 }
  0xfb   : > { %364 = vst.msk [vmem:[#allocation2 + $0x8] sm:$0xff] %vm318_vm1, %v360_v13 }
  0xfc PF: > { %v667_v15 = vld [vmem:[%s855_s2] sm:$0xff]   ;;  %v713_v16 = vmov 0.0   ;;  %v668_v17 = vld [vmem:[%s855_s2 + $0x8] sm:$0xff]   ;;  %vm714_vm2 = vmmov 0   ;;  %v669_v18 = vld [vmem:[%s855_s2 + $0x10] sm:$0xff]   ;;  %vm402_vm3 = vcmask 523264  }
  0xfd   : > { %607 = vmatprep.subr.bf16.mxu0 %v713_v16  ;;  %615 = vmatprep.mubr.msk.bf16.mxu0 %vm714_vm2, %v713_v16  ;;  %v670_v19 = vld [vmem:[%s855_s2 + $0x18] sm:$0xff]   ;;  %v365_v20 = vld [vmem:[%s790_s14] sm:$0xff]  ;;  %v366_v21 = vld [vmem:[%s790_s14 + $0x8] sm:$0xff] }
  0xfe   : > { %608 = vmatpush3.bf16.msra.mxu0 %v667_v15  ;;  %v367_v22 = vpack.c.bf16 %v366_v21, %v365_v20 }
  0xff   : > { %609 = vmatprep.subr.bf16.mxu0 %v713_v16 }
 0x100   : > { %v376_v23 = vld [vmem:[#allocation2] sm:$0xff] }
 0x102   : > { %610 = vmatpush3.bf16.msra.mxu0 %v668_v17  ;;  %v377_v25 = vld [vmem:[#allocation2 + $0x8] sm:$0xff] }
 0x103   : > { %611 = vmatprep.subr.bf16.mxu0 %v713_v16 }
 0x106   : > { %612 = vmatpush3.bf16.msra.mxu0 %v669_v18 }
 0x107   : > { %613 = vmatprep.subr.bf16.mxu0 %v713_v16 }
 0x10a   : > { %614 = vmatpush3.bf16.msra.mxu0 %v670_v19 }
 0x10d   : > { %616 = vmatmul.mubr.msk.bf16.vlgmr.msra.gmra.mrb[0].mxu0 %vm402_vm3, %v367_v22 }
 0x1e0   : > { %v440_v24 = vpop.f32.mrb[0].mxu0 }
 0x1e1   : > { %v441_v26 = vadd.f32 %v440_v24, %v376_v23  ;;  %v617_v27 = vpop.f32.mrb[1].mxu0  ;;  %455 = sbr.rel (%p567_p7) target bundleno = 489 (0x1e9), region = 48 }
 0x1e2   : > { %v443_v28 = vpop.f32.mrb[2].mxu0 }
 0x1e3   : > { %vm447_vm4 = vcmp.ge.f32.partialorder %v441_v26, 0.0  ;;  %v449_v29 = vmul.f32 0.2, %v441_v26  ;;  %v444_v30 = vadd.f32 %v443_v28, %v377_v25  ;;  %v618_v31 = vpop.f32.mrb[3].mxu0 }
 0x1e5   : > { %v451_v32 = vsel %vm447_vm4, %v441_v26, %v449_v29  ;;  %vm448_vm5 = vcmp.ge.f32.partialorder %v444_v30, 0.0  ;;  %v450_v33 = vmul.f32 0.2, %v444_v30 }
 0x1e6   : > { %456 = vst.msk [vmem:[%s785_s10] sm:$0xff] (!%p567_p7), %vm402_vm3, %v451_v32 }
 0x1e7   : > { %v452_v34 = vsel %vm448_vm5, %v444_v30, %v450_v33 }
 0x1e8   : > { %457 = vst.msk [vmem:[%s785_s10 + $0x8] sm:$0xff] %vm402_vm3, %v452_v34 }
 0x1e9 PF: > { %p580_p8 = scmp.le.s32.totalorder %s693_s18, 0 }
 0x1eb   : > { %461 = sbr.rel (%p580_p8) target bundleno = 499 (0x1f3), region = 52 }
 0x1ee   : > { %v462_v35 = vld [vmem:[%s785_s10] sm:$0xff] (!%p580_p8) }
 0x1ef   : > { %v463_v36 = vld [vmem:[%s785_s10 + $0x8] sm:$0xff] (!%p580_p8)  ;;  %v464_v37 = vmax.f32 (!%p580_p8), %v462_v35, %v451_v32 }
 0x1f0   : > { %v465_v38 = vmax.f32 (!%p580_p8), %v463_v36, %v452_v34 }
 0x1f1   : > { %466 = vst.msk [vmem:[%s785_s10] sm:$0xff] (!%p580_p8), %vm402_vm3, %v464_v37 }
 0x1f2   : > { %467 = vst.msk [vmem:[%s785_s10 + $0x8] sm:$0xff] %vm402_vm3, %v465_v38 }
 0x1f3 PF: > { %s15_s22 = sadd.s32 1, %s709_s22   ;;  %s859_s18 = smov %s701_s20 }
 0x1f4   : > { %p12_p9 = scmp.ge.s32.totalorder %s15_s22, 10   ;;  %s860_s19 = smov %s705_s21 }
 0x1f5   : > { %s861_s20 = smov %s864_s23  ;;  %s862_s21 = smov %s868_s24 }
 0x1f6   :  { %14 = sbr.rel (!%p12_p9) target bundleno = 3 (0x3), region = 85 }

// kernel: dgcnn_forward.15
= control target key start
LH: loop header
LB: loop body
LE: loop exit
PB: predicated region body
PF: predicated region fallthrough
CT: control target
= control target key end

     0   :  { %s745_s18 = smov 0   ;;  %s747_s19 = smov 0   ;;  %s848_s0 = inlined_call_operand.vmem [shape: f32[2,16,64], index: 0, kind: input, shape index: {}]   ;;  %s849_s1 = inlined_call_operand.vmem [shape: f32[2,4,16,64], index: 1, kind: input, shape index: {}]   ;;  %s850_s2 = inlined_call_operand.vmem [shape: bf16[64,128], index: 2, kind: input, shape index: {}]   ;;  %s851_s3 = inlined_call_operand.vmem [shape: bf16[64,128], index: 3, kind: input, shape index: {}]   ;;  %s852_s4 = inlined_call_operand.vmem [shape: f32[1,128], index: 4, kind: input, shape index: {}]   ;;  %s853_s5 = inlined_call_operand.vmem [shape: f32[2,16,128], index: 5, kind: output, shape index: {}]  }
   0x1   :  { %s749_s20 = smov 0   ;;  %s751_s21 = smov 0  }
   0x2   :  { %s753_s22 = smov 0  }
   0x3 LB: > { %s24_s23 = sadd.s32 1, %s701_s20  ;;  %s27_s24 = sadd.s32 1, %s705_s21  ;;  %s709_s22 = sphi %s753_s22, %s15_s22   ;;  %s705_s21 = sphi %s751_s21, %s857_s21   ;;  %s701_s20 = sphi %s749_s20, %s856_s20   ;;  %s697_s19 = sphi %s747_s19, %s855_s19   ;;  %s693_s18 = sphi %s745_s18, %s854_s18  }
   0x4   : > { %p25_p0 = scmp.ge.s32.totalorder %s24_s23, 4  ;;  %p559_p1 = scmp.ge.s32.totalorder %s709_s22, 1 }
   0x5   : > { %p215_p2 = scmp.lt.s32.totalorder %s709_s22, 9 }
   0x6   : > { %s859_s23 = smov (%p25_p0, %s24_s23), 0  ;;  %s861_s24 = smov (!%p25_p0, %s27_s24), %s705_s21 }
   0x7   : > { %p216_p3 = pnand %p559_p1, %p215_p2  ;;  %p29_p4 = scmp.ge.s32.totalorder %s861_s24, 2 }
   0x8   : > { %p252_p5 = scmp.lt.s32.totalorder (!%p216_p3), %s697_s19, 1  ;;  %p259_p6 = scmp.lt.s32.totalorder (!%p216_p3), %s693_s18, 3 }
   0x9   : > { %s863_s24 = smov (%p29_p4, %s861_s24), 0  ;;  %219 = sbr.rel (%p216_p3) target bundleno = 499 (0x1f3), region = 40 }
   0xa   : > { %p567_p7 = scmp.ne.s32.totalorder (!%p216_p3), %s693_s18, 0 }
  0x10   : > { %s865_s19 = smov (!%p252_p5, %s697_s19), 1  ;;  %275 = sbr.rel (%p567_p7) target bundleno = 252 (0xfc), region = 44 }
  0x11   : > { %s260_s25 = scalar_select %p259_p6, %s693_s18, 3 }
  0x12   : > { %s583_s26 = sshll.u32 %s865_s19, 4  ;;  %s563_s27 = sshll.u32 %s865_s19, 3  ;;  %v663_v0 = vld [vmem:[%s851_s3] sm:$0xff] (!%p567_p7)   ;;  %v711_v1 = vmov (!%p567_p7), 0.0   ;;  %v664_v2 = vld [vmem:[%s851_s3 + $0x8] sm:$0xff] (!%p567_p7)   ;;  %vm712_vm0 = vmmov (!%p567_p7), 0  }
  0x13   : > { %s256_s30 = scalar_lea.vmem %s848_s0, %s583_s26  ;;  %s562_s6 = sshll.u32 %s260_s25, 1  ;;  %595 = vmatprep.subr.bf16.mxu0 (!%p567_p7), %v711_v1  ;;  %603 = vmatprep.mubr.msk.bf16.mxu0 (!%p567_p7), %vm712_vm0, %v711_v1  ;;  %v665_v3 = vld [vmem:[%s851_s3 + $0x10] sm:$0xff] (!%p567_p7)   ;;  %v666_v4 = vld [vmem:[%s851_s3 + $0x18] sm:$0xff] (!%p567_p7)   ;;  %vm318_vm1 = vcmask (!%p567_p7), 523264   ;;  %v568_v8 = vld [vmem:[%s852_s4] ss:$0 sm:$0xff] (!%p567_p7) }
  0x14   : > { %s263_s7 = sadd.s32 %s563_s27, %s562_s6  ;;  %s785_s10 = scalar_lea.vmem %s853_s5, %s583_s26  ;;  %596 = vmatpush3.bf16.msra.mxu0 (!%p567_p7), %v663_v0  ;;  %v276_v5 = vld [vmem:[%s256_s30] sm:$0xff] (!%p567_p7)  ;;  %v277_v6 = vld [vmem:[%s256_s30 + $0x8] sm:$0xff] (!%p567_p7) }
  0x15   : > { %s564_s11 = sshll.u32 %s263_s7, 3  ;;  %597 = vmatprep.subr.bf16.mxu0 (!%p567_p7), %v711_v1  ;;  %v278_v7 = vpack.c.bf16 (!%p567_p7), %v277_v6, %v276_v5 }
  0x16   : > { %s790_s14 = scalar_lea.vmem %s849_s1, %s564_s11 }
  0x18   : > { %598 = vmatpush3.bf16.msra.mxu0 %v664_v2 }
  0x19   : > { %599 = vmatprep.subr.bf16.mxu0 %v711_v1 }
  0x1c   : > { %600 = vmatpush3.bf16.msra.mxu0 %v665_v3 }
  0x1d   : > { %601 = vmatprep.subr.bf16.mxu0 %v711_v1 }
  0x20   : > { %602 = vmatpush3.bf16.msra.mxu0 %v666_v4 }
  0x23   : > { %604 = vmatmul.mubr.msk.bf16.vlgmr.msra.gmra.mrb[0].mxu0 %vm318_vm1, %v278_v7 }
  0xf6   : > { %v356_v9 = vpop.f32.mrb[0].mxu0 }
  0xf7   : > { %v357_v10 = vadd.f32 %v568_v8, %v356_v9  ;;  %v605_v11 = vpop.f32.mrb[1].mxu0 }
  0xf8   : > { %v359_v12 = vpop.f32.mrb[2].mxu0 }
  0xf9   : > { %363 = vst [vmem:[#allocation2] sm:$0xff] %v357_v10  ;;  %v360_v13 = vadd.f32 %v568_v8, %v359_v12  ;;  %v606_v14 = vpop.f32.mrb[3].mxu0 }
  0xfb   : > { %364 = vst [vmem:[#allocation2 + $0x8] sm:$0xff] %v360_v13 }
  0xfc PF: > { %v667_v15 = vld [vmem:[%s850_s2] sm:$0xff]   ;;  %v713_v16 = vmov 0.0   ;;  %v668_v17 = vld [vmem:[%s850_s2 + $0x8] sm:$0xff]   ;;  %vm714_vm2 = vmmov 0   ;;  %v669_v18 = vld [vmem:[%s850_s2 + $0x10] sm:$0xff]   ;;  %vm402_vm3 = vcmask 523264  }
  0xfd   : > { %607 = vmatprep.subr.bf16.mxu0 %v713_v16  ;;  %615 = vmatprep.mubr.msk.bf16.mxu0 %vm714_vm2, %v713_v16  ;;  %v670_v19 = vld [vmem:[%s850_s2 + $0x18] sm:$0xff]   ;;  %v365_v20 = vld [vmem:[%s790_s14] sm:$0xff]  ;;  %v366_v21 = vld [vmem:[%s790_s14 + $0x8] sm:$0xff] }
  0xfe   : > { %608 = vmatpush3.bf16.msra.mxu0 %v667_v15  ;;  %v367_v22 = vpack.c.bf16 %v366_v21, %v365_v20 }
  0xff   : > { %609 = vmatprep.subr.bf16.mxu0 %v713_v16 }
 0x100   : > { %v376_v23 = vld [vmem:[#allocation2] sm:$0xff] }
 0x102   : > { %610 = vmatpush3.bf16.msra.mxu0 %v668_v17  ;;  %v377_v25 = vld [vmem:[#allocation2 + $0x8] sm:$0xff] }
 0x103   : > { %611 = vmatprep.subr.bf16.mxu0 %v713_v16 }
 0x106   : > { %612 = vmatpush3.bf16.msra.mxu0 %v669_v18 }
 0x107   : > { %613 = vmatprep.subr.bf16.mxu0 %v713_v16 }
 0x10a   : > { %614 = vmatpush3.bf16.msra.mxu0 %v670_v19 }
 0x10d   : > { %616 = vmatmul.mubr.msk.bf16.vlgmr.msra.gmra.mrb[0].mxu0 %vm402_vm3, %v367_v22 }
 0x1e0   : > { %v440_v24 = vpop.f32.mrb[0].mxu0 }
 0x1e1   : > { %v441_v26 = vadd.f32 %v440_v24, %v376_v23  ;;  %v617_v27 = vpop.f32.mrb[1].mxu0  ;;  %455 = sbr.rel (%p567_p7) target bundleno = 489 (0x1e9), region = 48 }
 0x1e2   : > { %v443_v28 = vpop.f32.mrb[2].mxu0 }
 0x1e3   : > { %vm447_vm4 = vcmp.ge.f32.partialorder %v441_v26, 0.0  ;;  %v449_v29 = vmul.f32 0.2, %v441_v26  ;;  %v444_v30 = vadd.f32 %v443_v28, %v377_v25  ;;  %v618_v31 = vpop.f32.mrb[3].mxu0 }
 0x1e5   : > { %v451_v32 = vsel %vm447_vm4, %v441_v26, %v449_v29  ;;  %vm448_vm5 = vcmp.ge.f32.partialorder %v444_v30, 0.0  ;;  %v450_v33 = vmul.f32 0.2, %v444_v30 }
 0x1e6   : > { %456 = vst [vmem:[%s785_s10] sm:$0xff] (!%p567_p7), %v451_v32 }
 0x1e7   : > { %v452_v34 = vsel %vm448_vm5, %v444_v30, %v450_v33 }
 0x1e8   : > { %457 = vst [vmem:[%s785_s10 + $0x8] sm:$0xff] %v452_v34 }
 0x1e9 PF: > { %p580_p8 = scmp.le.s32.totalorder %s693_s18, 0 }
 0x1eb   : > { %461 = sbr.rel (%p580_p8) target bundleno = 499 (0x1f3), region = 52 }
 0x1ee   : > { %v462_v35 = vld [vmem:[%s785_s10] sm:$0xff] (!%p580_p8) }
 0x1ef   : > { %v463_v36 = vld [vmem:[%s785_s10 + $0x8] sm:$0xff] (!%p580_p8)  ;;  %v464_v37 = vmax.f32 (!%p580_p8), %v462_v35, %v451_v32 }
 0x1f0   : > { %v465_v38 = vmax.f32 (!%p580_p8), %v463_v36, %v452_v34 }
 0x1f1   : > { %466 = vst [vmem:[%s785_s10] sm:$0xff] (!%p580_p8), %v464_v37 }
 0x1f2   : > { %467 = vst [vmem:[%s785_s10 + $0x8] sm:$0xff] %v465_v38 }
 0x1f3 PF: > { %s15_s22 = sadd.s32 1, %s709_s22   ;;  %s854_s18 = smov %s701_s20 }
 0x1f4   : > { %p12_p9 = scmp.ge.s32.totalorder %s15_s22, 10   ;;  %s855_s19 = smov %s705_s21 }
 0x1f5   : > { %s856_s20 = smov %s859_s23  ;;  %s857_s21 = smov %s863_s24 }
 0x1f6   :  { %14 = sbr.rel (!%p12_p9) target bundleno = 3 (0x3), region = 85 }

// kernel: dgcnn_forward.16
= control target key start
LH: loop header
LB: loop body
LE: loop exit
PB: predicated region body
PF: predicated region fallthrough
CT: control target
= control target key end

     0   :  { %s413_s6 = smov 0   ;;  %s437_s0 = inlined_call_operand.vmem [shape: f32[2,16,128], index: 0, kind: input, shape index: {}]   ;;  %s438_s1 = inlined_call_operand.vmem [shape: f32[2,16,16], index: 1, kind: output, shape index: {}]  }
   0x1 LB: > { %s338_s7 = sadd.s32 4294967295, %s397_s6   ;;  %p342_p0 = scmp.ge.s32.totalorder %s397_s6, 1  ;;  %s397_s6 = sphi %s413_s6, %s11_s6  }
   0x2   : > { %p87_p1 = scmp.lt.s32.totalorder %s397_s6, 3 }
   0x4   : > { %p88_p2 = pnand %p342_p0, %p87_p1 }
   0x5   : > { %p107_p3 = scmp.lt.s32.totalorder (!%p88_p2), %s338_s7, 1  ;;  %v399_v0 = vmov (!%p88_p2), 0.0|0.0   ;;  %vm400_vm0 = vmmov (!%p88_p2), 0   ;;  %v401_v1 = vmov (!%p88_p2), 0.0   ;;  %v402_v8 = vmov (!%p88_p2), 1.0  }
   0x6   : > { %91 = sbr.rel (%p88_p2) target bundleno = 247 (0xf7), region = 24  ;;  %376 = vmatprep.subr.bf16.mxu1 (!%p88_p2), %v399_v0  ;;  %369 = vmatprep.mubr.msk.f32.mxu1 (!%p88_p2), %vm400_vm0, %v401_v1  ;;  %v274_v9 = vlaneseq (!%p88_p2)  ;;  %vm280_vm1 = vcmask (!%p88_p2), 130048  }
   0x8   : > { %v275_v11 = vshrl.u32 (!%p88_p2), %v274_v9, 7 }
   0xa   : > { %v276_v12 = vsub.s32 (!%p88_p2), 0, %v275_v11 }
   0xd   : > { %s440_s7 = smov (!%p107_p3, %s338_s7), 1 }
   0xe   : > { %s349_s8 = sshll.u32 %s440_s7, 4 }
   0xf   : > { %s111_s11 = scalar_lea.vmem %s437_s0, %s349_s8  ;;  %s116_s14 = scalar_lea.vmem %s438_s1, %s349_s8 }
  0x10   : > { %v117_v2 = vld [vmem:[%s111_s11] sm:$0xff]  ;;  %v118_v3 = vld [vmem:[%s111_s11 + $0x8] sm:$0xff] }
  0x11   : > { %v372_v4 = vpack.c.bf16 %v118_v3, %v117_v2  ;;  %v194_v5 = vmul.f32 %v117_v2, %v117_v2  ;;  %v195_v6 = vmul.f32 %v118_v3, %v118_v3  ;;  %362 = vmatprep.mubr.f32.mxu0 %v117_v2 }
  0x13   : > { %373 = vmatprep.subr.bf16.mxu0 %v372_v4  ;;  %v377_v7 = vpack.c.bf16 %v195_v6, %v194_v5  ;;  %196 = vadd.xlane.f32.xlu0 %v194_v5 }
  0x14   : > { %375 = vmatpush3.bf16.xpose.msra.mxu0 %v372_v4 }
  0x15   : > { %378 = vmatpush3.bf16.xpose.msra.mxu1 %v377_v7 }
  0x17   : > { %198 = vadd.xlane.f32.xlu0 %v195_v6 }
  0x1b   : > { %363 = vmatmul.mubr.f32.vlgmr.msra.gmra.mrb[0].mxu0 %v118_v3 }
  0x1c   : > { %370 = vmatmul.mubr.f32.vlgmr.msra.gmra.mrb[0].mxu1 %v402_v8 }
  0xa0   : > { %v197_v10 = vpop.xlane.xlu0 %196 }
  0xa4   : > { %v199_v14 = vpop.xlane.xlu0 %198 }
  0xee   : > { %v364_v13 = vpop.f32.mrb[0].mxu0 }
  0xef   : > { %v271_v15 = vmul.f32 2.0, %v364_v13  ;;  %v185_v16 = vpop.f32.mrb[1].mxu0  ;;  %v266_v17 = vpop.f32.mrb[0].mxu1 }
  0xf0   : > { %v270_v18 = vmul.f32 2.0, %v185_v16  ;;  %v277_v19 = vrot.slane %v266_v17, %v276_v12  ;;  %v371_v20 = vpop.f32.mrb[1].mxu1 }
  0xf1   : > { %v273_v21 = vsub.f32 %v271_v15, %v199_v14 }
  0xf2   : > { %v272_v22 = vsub.f32 %v270_v18, %v197_v10 }
  0xf3   : > { %v279_v23 = vsub.f32 %v273_v21, %v277_v19 }
  0xf4   : > { %v278_v24 = vsub.f32 %v272_v22, %v277_v19 }
  0xf5   : > { %282 = vst.msk [vmem:[%s116_s14 + $0x8] sm:$0xff] %vm280_vm1, %v279_v23 }
  0xf6   : > { %281 = vst.msk [vmem:[%s116_s14] sm:$0xff] %vm280_vm1, %v278_v24 }
  0xf7 PF: > { %s11_s6 = sadd.s32 1, %s397_s6  }
  0xf8   : > { %p8_p4 = scmp.ge.s32.totalorder %s11_s6, 4  }
  0xfa   :  { %10 = sbr.rel (!%p8_p4) target bundleno = 1 (0x1), region = 54 }

// kernel: dgcnn_forward.17
= control target key start
LH: loop header
LB: loop body
LE: loop exit
PB: predicated region body
PF: predicated region fallthrough
CT: control target
= control target key end

     0   :  { %s915_s18 = smov 0   ;;  %s917_s19 = smov 0   ;;  %s1100_s0 = inlined_call_operand.vmem [shape: f32[2,16,128], index: 0, kind: input, shape index: {}]   ;;  %s1101_s1 = inlined_call_operand.vmem [shape: f32[2,4,16,128], index: 1, kind: input, shape index: {}]   ;;  %s1102_s2 = inlined_call_operand.vmem [shape: bf16[128,256], index: 2, kind: input, shape index: {}]   ;;  %s1103_s3 = inlined_call_operand.vmem [shape: bf16[128,256], index: 3, kind: input, shape index: {}]   ;;  %s1104_s4 = inlined_call_operand.vmem [shape: f32[1,256], index: 4, kind: input, shape index: {}]   ;;  %s1105_s5 = inlined_call_operand.vmem [shape: f32[2,16,256], index: 5, kind: output, shape index: {}]  }
   0x1   :  { %s919_s20 = smov 0   ;;  %s921_s21 = smov 0  }
   0x2   :  { %s923_s22 = smov 0  }
   0x3 LB: > { %s24_s23 = sadd.s32 1, %s873_s20  ;;  %s27_s24 = sadd.s32 1, %s877_s21  ;;  %s881_s22 = sphi %s923_s22, %s15_s22   ;;  %s877_s21 = sphi %s921_s21, %s1109_s21   ;;  %s873_s20 = sphi %s919_s20, %s1108_s20   ;;  %s869_s19 = sphi %s917_s19, %s1107_s19   ;;  %s865_s18 = sphi %s915_s18, %s1106_s18  }
   0x4   : > { %p25_p0 = scmp.ge.s32.totalorder %s24_s23, 4  ;;  %p706_p1 = scmp.ge.s32.totalorder %s881_s22, 1 }
   0x5   : > { %p215_p2 = scmp.lt.s32.totalorder %s881_s22, 9 }
   0x6   : > { %s1111_s23 = smov (%p25_p0, %s24_s23), 0  ;;  %s1113_s24 = smov (!%p25_p0, %s27_s24), %s877_s21 }
   0x7   : > { %p216_p3 = pnand %p706_p1, %p215_p2  ;;  %p29_p4 = scmp.ge.s32.totalorder %s1113_s24, 2 }
   0x8   : > { %p252_p5 = scmp.lt.s32.totalorder (!%p216_p3), %s869_s19, 1  ;;  %p259_p6 = scmp.lt.s32.totalorder (!%p216_p3), %s865_s18, 3 }
   0x9   : > { %s1115_s24 = smov (%p29_p4, %s1113_s24), 0  ;;  %219 = sbr.rel (%p216_p3) target bundleno = 533 (0x215), region = 40 }
   0xa   : > { %p714_p7 = scmp.ne.s32.totalorder (!%p216_p3), %s865_s18, 0 }
  0x10   : > { %s1117_s19 = smov (!%p252_p5, %s869_s19), 1  ;;  %275 = sbr.rel (%p714_p7) target bundleno = 269 (0x10d), region = 44 }
  0x11   : > { %s260_s25 = scalar_select %p259_p6, %s865_s18, 3 }
  0x12   : > { %s751_s26 = sshll.u32 %s1117_s19, 4  ;;  %s710_s27 = sshll.u32 %s1117_s19, 3  ;;  %v795_v0 = vld [vmem:[%s1103_s3 + $0x4] ss:$8 sps:$4 sm:$0xff] (!%p714_p7)   ;;  %v797_v1 = vld [vmem:[%s1103_s3] ss:$8 sps:$4 sm:$0xff] (!%p714_p7)   ;;  %v297_v20 = vlaneseq (!%p714_p7) }
  0x13   : > { %s952_s30 = scalar_lea.vmem %s1100_s0, %s751_s26  ;;  %s709_s6 = sshll.u32 %s260_s25, 1  ;;  %v883_v2 = vmov (!%p714_p7), 0   ;;  %387 = vmatprep.subr.bf16.mxu0 (!%p714_p7), %v795_v0  ;;  %v798_v3 = vld [vmem:[%s1103_s3 + $0x14] ss:$8 sps:$4 sm:$0xff] (!%p714_p7)   ;;  %v800_v4 = vld [vmem:[%s1103_s3 + $0x10] ss:$8 sps:$4 sm:$0xff] (!%p714_p7)  }
  0x14   : > { %s263_s7 = sadd.s32 %s710_s27, %s709_s6  ;;  %s752_s8 = sshll.u32 %s1117_s19, 5  ;;  %419 = vmatprep.mubr.bf16.mxu0 (!%p714_p7), %v883_v2  ;;  %388 = vmatpush1.bf16.msra.mxu0 (!%p714_p7), %v797_v1  ;;  %v801_v5 = vld [vmem:[%s1103_s3 + $0x24] ss:$8 sps:$4 sm:$0xff] (!%p714_p7)   ;;  %v803_v6 = vld [vmem:[%s1103_s3 + $0x20] ss:$8 sps:$4 sm:$0xff] (!%p714_p7)   ;;  %v298_v21 = vshrl.u32 (!%p714_p7), %v297_v20, 7 }
  0x15   : > { %s711_s9 = sshll.u32 %s263_s7, 3  ;;  %s957_s12 = scalar_lea.vmem %s1105_s5, %s752_s8  ;;  %389 = vmatprep.subr.bf16.mxu0 (!%p714_p7), %v798_v3  ;;  %v804_v7 = vld [vmem:[%s1103_s3 + $0x34] ss:$8 sps:$4 sm:$0xff] (!%p714_p7)   ;;  %v806_v8 = vld [vmem:[%s1103_s3 + $0x30] ss:$8 sps:$4 sm:$0xff] (!%p714_p7)   ;;  %v276_v17 = vld [vmem:[%s952_s30] sm:$0xff] (!%p714_p7) }
  0x16   : > { %s962_s15 = scalar_lea.vmem %s1101_s1, %s711_s9  ;;  %v807_v9 = vld [vmem:[%s1103_s3 + $0x44] ss:$8 sps:$4 sm:$0xff] (!%p714_p7)   ;;  %v809_v10 = vld [vmem:[%s1103_s3 + $0x40] ss:$8 sps:$4 sm:$0xff] (!%p714_p7)   ;;  %v810_v11 = vld [vmem:[%s1103_s3 + $0x54] ss:$8 sps:$4 sm:$0xff] (!%p714_p7)  }
  0x17   : > { %v812_v12 = vld [vmem:[%s1103_s3 + $0x50] ss:$8 sps:$4 sm:$0xff]   ;;  %v813_v13 = vld [vmem:[%s1103_s3 + $0x64] ss:$8 sps:$4 sm:$0xff]   ;;  %v815_v14 = vld [vmem:[%s1103_s3 + $0x60] ss:$8 sps:$4 sm:$0xff]  }
  0x18   : > { %390 = vmatpush1.bf16.msra.mxu0 %v800_v4  ;;  %v816_v15 = vld [vmem:[%s1103_s3 + $0x74] ss:$8 sps:$4 sm:$0xff]   ;;  %v818_v16 = vld [vmem:[%s1103_s3 + $0x70] ss:$8 sps:$4 sm:$0xff]   ;;  %v277_v18 = vld [vmem:[%s952_s30 + $0x8] sm:$0xff]  ;;  %v299_v22 = vsub.s32 0, %v298_v21 }
  0x19   : > { %391 = vmatprep.subr.bf16.mxu0 %v801_v5  ;;  %v278_v19 = vpack.c.bf16 %v277_v18, %v276_v17  ;;  %v295_v23 = vld [vmem:[%s1104_s4] sm:$0x3]  ;;  %v303_v24 = vsub.s32 1, %v298_v21 }
  0x1a   : > { %v300_v25 = vrot.slane %v295_v23, %v299_v22 }
  0x1b   : > { %v304_v26 = vrot.slane %v295_v23, %v303_v24 }
  0x1c   : > { %392 = vmatpush1.bf16.msra.mxu0 %v803_v6 }
  0x1d   : > { %393 = vmatprep.subr.bf16.mxu0 %v804_v7 }
  0x20   : > { %394 = vmatpush1.bf16.msra.mxu0 %v806_v8 }
  0x21   : > { %395 = vmatprep.subr.bf16.mxu0 %v807_v9 }
  0x24   : > { %396 = vmatpush1.bf16.msra.mxu0 %v809_v10 }
  0x25   : > { %397 = vmatprep.subr.bf16.mxu0 %v810_v11 }
  0x28   : > { %398 = vmatpush1.bf16.msra.mxu0 %v812_v12 }
  0x29   : > { %399 = vmatprep.subr.bf16.mxu0 %v813_v13 }
  0x2c   : > { %400 = vmatpush1.bf16.msra.mxu0 %v815_v14 }
  0x2d   : > { %401 = vmatprep.subr.bf16.mxu0 %v816_v15 }
  0x30   : > { %402 = vmatpush1.bf16.msra.mxu0 %v818_v16 }
  0x33   : > { %420 = vmatmul.mubr.bf16.vlgmr.msra.gmra.mrb[0].mxu0 %v278_v19 }
 0x106   : > { %v421_v27 = vpop.f32.mrb[0].mxu0 }
 0x107   : > { %v422_v28 = vadd.f32 %v421_v27, %v300_v25  ;;  %v423_v29 = vpop.f32.mrb[1].mxu0 }
 0x108   : > { %v424_v30 = vadd.f32 %v423_v29, %v304_v26  ;;  %v425_v31 = vpop.f32.mrb[2].mxu0 }
 0x109   : > { %430 = vst [vmem:[#allocation2] sm:$0xff] %v422_v28  ;;  %v426_v32 = vadd.f32 %v425_v31, %v300_v25  ;;  %v427_v33 = vpop.f32.mrb[3].mxu0 }
 0x10a   : > { %431 = vst [vmem:[#allocation2 + $0x8] sm:$0xff] %v424_v30  ;;  %v428_v34 = vadd.f32 %v427_v33, %v304_v26 }
 0x10b   : > { %432 = vst [vmem:[#allocation2 + $0x10] sm:$0xff] %v426_v32 }
 0x10c   : > { %433 = vst [vmem:[#allocation2 + $0x18] sm:$0xff] %v428_v34 }
 0x10d PF: > { %v819_v35 = vld [vmem:[%s1102_s2 + $0x4] ss:$8 sps:$4 sm:$0xff]   ;;  %v821_v36 = vld [vmem:[%s1102_s2] ss:$8 sps:$4 sm:$0xff]   ;;  %v884_v37 = vmov 0  }
 0x10e   : > { %569 = vmatprep.mubr.bf16.mxu0 %v884_v37  ;;  %537 = vmatprep.subr.bf16.mxu0 %v819_v35  ;;  %v822_v38 = vld [vmem:[%s1102_s2 + $0x14] ss:$8 sps:$4 sm:$0xff]   ;;  %v824_v39 = vld [vmem:[%s1102_s2 + $0x10] ss:$8 sps:$4 sm:$0xff]   ;;  %v825_v40 = vld [vmem:[%s1102_s2 + $0x24] ss:$8 sps:$4 sm:$0xff]  }
 0x10f   : > { %538 = vmatpush1.bf16.msra.mxu0 %v821_v36  ;;  %v827_v41 = vld [vmem:[%s1102_s2 + $0x20] ss:$8 sps:$4 sm:$0xff]   ;;  %v828_v42 = vld [vmem:[%s1102_s2 + $0x34] ss:$8 sps:$4 sm:$0xff]   ;;  %v830_v43 = vld [vmem:[%s1102_s2 + $0x30] ss:$8 sps:$4 sm:$0xff]  }
 0x110   : > { %539 = vmatprep.subr.bf16.mxu0 %v822_v38  ;;  %v831_v44 = vld [vmem:[%s1102_s2 + $0x44] ss:$8 sps:$4 sm:$0xff]   ;;  %v833_v45 = vld [vmem:[%s1102_s2 + $0x40] ss:$8 sps:$4 sm:$0xff]   ;;  %v834_v46 = vld [vmem:[%s1102_s2 + $0x54] ss:$8 sps:$4 sm:$0xff]  }
 0x111   : > { %v836_v47 = vld [vmem:[%s1102_s2 + $0x50] ss:$8 sps:$4 sm:$0xff]   ;;  %v837_v48 = vld [vmem:[%s1102_s2 + $0x64] ss:$8 sps:$4 sm:$0xff]   ;;  %v839_v49 = vld [vmem:[%s1102_s2 + $0x60] ss:$8 sps:$4 sm:$0xff]  }
 0x112   : > { %v840_v50 = vld [vmem:[%s1102_s2 + $0x74] ss:$8 sps:$4 sm:$0xff]   ;;  %v842_v51 = vld [vmem:[%s1102_s2 + $0x70] ss:$8 sps:$4 sm:$0xff]   ;;  %v434_v52 = vld [vmem:[%s962_s15] sm:$0xff] }
 0x113   : > { %540 = vmatpush1.bf16.msra.mxu0 %v824_v39  ;;  %v435_v53 = vld [vmem:[%s962_s15 + $0x8] sm:$0xff]  ;;  %v453_v55 = vld [vmem:[#allocation2] sm:$0xff]  ;;  %v455_v58 = vld [vmem:[#allocation2 + $0x10] sm:$0xff] }
 0x114   : > { %541 = vmatprep.subr.bf16.mxu0 %v825_v40  ;;  %v436_v54 = vpack.c.bf16 %v435_v53, %v434_v52  ;;  %v454_v56 = vld [vmem:[#allocation2 + $0x8] sm:$0xff]  ;;  %v456_v61 = vld [vmem:[#allocation2 + $0x18] sm:$0xff] }
 0x117   : > { %542 = vmatpush1.bf16.msra.mxu0 %v827_v41 }
 0x118   : > { %543 = vmatprep.subr.bf16.mxu0 %v828_v42 }
 0x11b   : > { %544 = vmatpush1.bf16.msra.mxu0 %v830_v43 }
 0x11c   : > { %545 = vmatprep.subr.bf16.mxu0 %v831_v44 }
 0x11f   : > { %546 = vmatpush1.bf16.msra.mxu0 %v833_v45 }
 0x120   : > { %547 = vmatprep.subr.bf16.mxu0 %v834_v46 }
 0x123   : > { %548 = vmatpush1.bf16.msra.mxu0 %v836_v47 }
 0x124   : > { %549 = vmatprep.subr.bf16.mxu0 %v837_v48 }
 0x127   : > { %550 = vmatpush1.bf16.msra.mxu0 %v839_v49 }
 0x128   : > { %551 = vmatprep.subr.bf16.mxu0 %v840_v50 }
 0x12b   : > { %552 = vmatpush1.bf16.msra.mxu0 %v842_v51 }
 0x12e   : > { %570 = vmatmul.mubr.bf16.vlgmr.msra.gmra.mrb[0].mxu0 %v436_v54 }
 0x201   : > { %v571_v57 = vpop.f32.mrb[0].mxu0 }
 0x202   : > { %v572_v59 = vadd.f32 %v571_v57, %v453_v55  ;;  %v573_v60 = vpop.f32.mrb[1].mxu0 }
 0x203   : > { %v574_v62 = vadd.f32 %v573_v60, %v454_v56  ;;  %v575_v63 = vpop.f32.mrb[2].mxu0  ;;  %594 = sbr.rel (%p714_p7) target bundleno = 523 (0x20b), region = 48 }
 0x204   : > { %vm580_vm0 = vcmp.ge.f32.partialorder %v572_v59, 0.0  ;;  %v584_v0 = vmul.f32 0.2, %v572_v59  ;;  %v576_v1 = vadd.f32 %v575_v63, %v455_v58  ;;  %v577_v2 = vpop.f32.mrb[3].mxu0 }
 0x205   : > { %vm581_vm1 = vcmp.ge.f32.partialorder %v574_v62, 0.0  ;;  %v585_v3 = vmul.f32 0.2, %v574_v62  ;;  %v578_v4 = vadd.f32 %v577_v2, %v456_v61 }
 0x206   : > { %v588_v5 = vsel %vm580_vm0, %v572_v59, %v584_v0  ;;  %vm582_vm2 = vcmp.ge.f32.partialorder %v576_v1, 0.0  ;;  %v586_v6 = vmul.f32 0.2, %v576_v1 }
 0x207   : > { %v589_v7 = vsel %vm581_vm1, %v574_v62, %v585_v3  ;;  %vm583_vm3 = vcmp.ge.f32.partialorder %v578_v4, 0.0  ;;  %v587_v8 = vmul.f32 0.2, %v578_v4  ;;  %595 = vst [vmem:[%s957_s12] sm:$0xff] (!%p714_p7), %v588_v5 }
 0x208   : > { %v590_v9 = vsel %vm582_vm2, %v576_v1, %v586_v6  ;;  %596 = vst [vmem:[%s957_s12 + $0x8] sm:$0xff] (!%p714_p7), %v589_v7 }
 0x209   : > { %v591_v10 = vsel %vm583_vm3, %v578_v4, %v587_v8  ;;  %597 = vst [vmem:[%s957_s12 + $0x10] sm:$0xff] (!%p714_p7), %v590_v9 }
 0x20a   : > { %598 = vst [vmem:[%s957_s12 + $0x18] sm:$0xff] %v591_v10 }
 0x20b PF: > { %p748_p8 = scmp.le.s32.totalorder %s865_s18, 0 }
 0x20d   : > { %602 = sbr.rel (%p748_p8) target bundleno = 533 (0x215), region = 52 }
 0x20f   : > { %v603_v11 = vld [vmem:[%s957_s12] sm:$0xff] (!%p748_p8) }
 0x210   : > { %v604_v12 = vld [vmem:[%s957_s12 + $0x8] sm:$0xff] (!%p748_p8)  ;;  %v607_v14 = vmax.f32 (!%p748_p8), %v603_v11, %v588_v5 }
 0x211   : > { %v605_v13 = vld [vmem:[%s957_s12 + $0x10] sm:$0xff] (!%p748_p8)  ;;  %v608_v15 = vmax.f32 (!%p748_p8), %v604_v12, %v589_v7  ;;  %v606_v17 = vld [vmem:[%s957_s12 + $0x18] sm:$0xff] (!%p748_p8) }
 0x212   : > { %v609_v16 = vmax.f32 (!%p748_p8), %v605_v13, %v590_v9  ;;  %v610_v18 = vmax.f32 (!%p748_p8), %v606_v17, %v591_v10  ;;  %611 = vst [vmem:[%s957_s12] sm:$0xff] (!%p748_p8), %v607_v14 }
 0x213   : > { %612 = vst [vmem:[%s957_s12 + $0x8] sm:$0xff] (!%p748_p8), %v608_v15 }
 0x214   : > { %613 = vst [vmem:[%s957_s12 + $0x10] sm:$0xff] %v609_v16  ;;  %614 = vst [vmem:[%s957_s12 + $0x18] sm:$0xff] %v610_v18 }
 0x215 PF: > { %s15_s22 = sadd.s32 1, %s881_s22   ;;  %s1106_s18 = smov %s873_s20 }
 0x216   : > { %p12_p9 = scmp.ge.s32.totalorder %s15_s22, 10   ;;  %s1107_s19 = smov %s877_s21 }
 0x217   : > { %s1108_s20 = smov %s1111_s23  ;;  %s1109_s21 = smov %s1115_s24 }
 0x218   :  { %14 = sbr.rel (!%p12_p9) target bundleno = 3 (0x3), region = 85 }

// kernel: dgcnn_forward.18
= control target key start
LH: loop header
LB: loop body
LE: loop exit
PB: predicated region body
PF: predicated region fallthrough
CT: control target
= control target key end

     0   :  { %s1204_s30 = smov 0   ;;  %s1373_s0 = inlined_call_operand.vmem [shape: f32[2,16,64], index: 0, kind: input, shape index: {}]   ;;  %s1374_s1 = inlined_call_operand.vmem [shape: f32[2,16,64], index: 1, kind: input, shape index: {}]   ;;  %s1375_s2 = inlined_call_operand.vmem [shape: f32[2,16,128], index: 2, kind: input, shape index: {}]   ;;  %s1376_s3 = inlined_call_operand.vmem [shape: f32[2,16,256], index: 3, kind: input, shape index: {}]   ;;  %s1377_s4 = inlined_call_operand.vmem [shape: bf16[64,64], index: 4, kind: input, shape index: {}]   ;;  %s1378_s5 = inlined_call_operand.vmem [shape: bf16[64,64], index: 5, kind: input, shape index: {}]   ;;  %s1379_s6 = inlined_call_operand.vmem [shape: bf16[128,64], index: 6, kind: input, shape index: {}]   ;;  %s1380_s7 = inlined_call_operand.vmem [shape: bf16[256,64], index: 7, kind: input, shape index: {}]   ;;  %s1381_s8 = inlined_call_operand.vmem [shape: f32[1,64], index: 8, kind: input, shape index: {}]   ;;  %s1382_s9 = inlined_call_operand.vmem [shape: f32[2,1,128], index: 9, kind: output, shape index: {}]  }
   0x1 LB: > { %s961_s10 = sadd.s32 4294967295, %s1149_s30   ;;  %p965_p0 = scmp.ge.s32.totalorder %s1149_s30, 1  ;;  %s1149_s30 = sphi %s1204_s30, %s19_s30  }
   0x2   : > { %p317_p1 = scmp.lt.s32.totalorder %s1149_s30, 3 }
   0x4   : > { %p318_p2 = pnand %p965_p0, %p317_p1 }
   0x5   : > { %v1111_v0 = vld [vmem:[%s1378_s5] sm:$0xff] (!%p318_p2)   ;;  %v1151_v1 = vmov (!%p318_p2), 0.0   ;;  %v1113_v3 = vld [vmem:[%s1378_s5 + $0x8] sm:$0xff] (!%p318_p2)   ;;  %vm1152_vm0 = vmmov (!%p318_p2), 0   ;;  %p366_p3 = scmp.lt.s32.totalorder (!%p318_p2), %s961_s10, 1  ;;  %v1115_v5 = vld [vmem:[%s1378_s5 + $0x10] sm:$0xff] (!%p318_p2)  }
   0x6   : > { %321 = sbr.rel (%p318_p2) target bundleno = 412 (0x19c), region = 56  ;;  %1056 = vmatprep.subr.bf16.mxu0 (!%p318_p2), %v1151_v1  ;;  %1068 = vmatprep.subr.bf16.mxu1 (!%p318_p2), %v1151_v1  ;;  %v1112_v2 = vld [vmem:[%s1377_s4] sm:$0xff] (!%p318_p2)   ;;  %v1114_v4 = vld [vmem:[%s1377_s4 + $0x8] sm:$0xff] (!%p318_p2)   ;;  %v1116_v6 = vld [vmem:[%s1377_s4 + $0x10] sm:$0xff] (!%p318_p2)   ;;  %vm436_vm1 = vcmask (!%p318_p2), 523264   ;;  %vm860_vm4 = vcmask (!%p318_p2), 516096  }
   0x7   : > { %1057 = vmatpush3.bf16.msra.mxu0 (!%p318_p2), %v1111_v0  ;;  %1064 = vmatprep.mubr.msk.bf16.mxu0 (!%p318_p2), %vm1152_vm0, %v1151_v1  ;;  %v1117_v7 = vld [vmem:[%s1378_s5 + $0x18] sm:$0xff] (!%p318_p2)   ;;  %v1119_v13 = vld [vmem:[%s1380_s7 + $0x40] sm:$0xff] (!%p318_p2)   ;;  %v1122_v18 = vld [vmem:[%s1380_s7 + $0x48] sm:$0xff] (!%p318_p2)   ;;  %s1153_s20 = smov (!%p318_p2), 64   ;;  %vm876_vm5 = vcmask (!%p318_p2), 1040896  }
   0x8   : > { %1069 = vmatpush3.bf16.msra.mxu1 (!%p318_p2), %v1112_v2  ;;  %1058 = vmatprep.subr.bf16.mxu0 (!%p318_p2), %v1151_v1  ;;  %v1118_v9 = vld [vmem:[%s1377_s4 + $0x18] sm:$0xff] (!%p318_p2)   ;;  %v1120_v16 = vld [vmem:[%s1379_s6] sm:$0xff] (!%p318_p2)   ;;  %v1123_v19 = vld [vmem:[%s1379_s6 + $0x8] sm:$0xff] (!%p318_p2)  }
   0x9   : > { %1070 = vmatprep.subr.bf16.mxu1 (!%p318_p2), %v1151_v1  ;;  %1076 = vmatprep.mubr.msk.bf16.mxu1 (!%p318_p2), %vm1152_vm0, %v1151_v1  ;;  %v1121_v17 = vld [vmem:[%s1380_s7] sm:$0xff] (!%p318_p2)   ;;  %v1124_v20 = vld [vmem:[%s1380_s7 + $0x8] sm:$0xff] (!%p318_p2)   ;;  %v1125_v21 = vld [vmem:[%s1380_s7 + $0x50] sm:$0xff] (!%p318_p2)  }
   0xa   : > { %v1126_v22 = vld [vmem:[%s1379_s6 + $0x10] sm:$0xff] (!%p318_p2)   ;;  %v1128_v24 = vld [vmem:[%s1380_s7 + $0x58] sm:$0xff] (!%p318_p2)   ;;  %v1131_v27 = vld [vmem:[%s1380_s7 + $0x60] sm:$0xff] (!%p318_p2)  }
   0xb   : > { %1059 = vmatpush3.bf16.msra.mxu0 (!%p318_p2), %v1113_v3  ;;  %v1127_v23 = vld [vmem:[%s1380_s7 + $0x10] sm:$0xff] (!%p318_p2)   ;;  %v1129_v25 = vld [vmem:[%s1379_s6 + $0x18] sm:$0xff] (!%p318_p2)   ;;  %v1132_v28 = vld [vmem:[%s1379_s6 + $0x20] sm:$0xff] (!%p318_p2)  }
   0xc   : > { %1071 = vmatpush3.bf16.msra.mxu1 (!%p318_p2), %v1114_v4  ;;  %1060 = vmatprep.subr.bf16.mxu0 (!%p318_p2), %v1151_v1  ;;  %v1130_v26 = vld [vmem:[%s1380_s7 + $0x18] sm:$0xff] (!%p318_p2)   ;;  %v1133_v29 = vld [vmem:[%s1380_s7 + $0x20] sm:$0xff] (!%p318_p2)   ;;  %v1134_v30 = vld [vmem:[%s1380_s7 + $0x68] sm:$0xff] (!%p318_p2)  }
   0xd   : > { %s1384_s10 = smov (!%p366_p3, %s961_s10), 1  ;;  %1072 = vmatprep.subr.bf16.mxu1 %v1151_v1  ;;  %v1135_v33 = vld [vmem:[%s1379_s6 + $0x28] sm:$0xff]   ;;  %v1137_v36 = vld [vmem:[%s1380_s7 + $0x70] sm:$0xff]   ;;  %v1140_v39 = vld [vmem:[%s1380_s7 + $0x78] sm:$0xff]  }
   0xe   : > { %s1238_s21 = sshll.u32 %s1384_s10, 4  ;;  %s1014_s22 = sshll.u32 %s1384_s10, 5  ;;  %v1136_v35 = vld [vmem:[%s1380_s7 + $0x28] sm:$0xff]   ;;  %v1138_v37 = vld [vmem:[%s1379_s6 + $0x30] sm:$0xff]   ;;  %v1141_v40 = vld [vmem:[%s1379_s6 + $0x38] sm:$0xff]  }
   0xf   : > { %s375_s26 = scalar_lea.vmem %s1374_s1, %s1238_s21  ;;  %s370_s29 = scalar_lea.vmem %s1373_s0, %s1238_s21  ;;  %1061 = vmatpush3.bf16.msra.mxu0 %v1115_v5  ;;  %v1139_v38 = vld [vmem:[%s1380_s7 + $0x30] sm:$0xff]   ;;  %v1142_v43 = vld [vmem:[%s1380_s7 + $0x38] sm:$0xff]   ;;  %v1008_v4 = vld [vmem:[%s1381_s8] ss:$0 sm:$0xff] }
  0x10   : > { %v401_v8 = vld [vmem:[%s375_s26] sm:$0xff]  ;;  %v402_v10 = vld [vmem:[%s375_s26 + $0x8] sm:$0xff]  ;;  %1073 = vmatpush3.bf16.msra.mxu1 %v1116_v6  ;;  %1062 = vmatprep.subr.bf16.mxu0 %v1151_v1  ;;  %s380_s28 = scalar_lea.vmem %s1375_s2, %s1238_s21  ;;  %s388_s19 = scalar_lea.vmem %s1382_s9, %s1384_s10 }
  0x11   : > { %v390_v11 = vld [vmem:[%s370_s29] sm:$0xff]  ;;  %v391_v12 = vld [vmem:[%s370_s29 + $0x8] sm:$0xff]  ;;  %1074 = vmatprep.subr.bf16.mxu1 %v1151_v1  ;;  %v403_v14 = vpack.c.bf16 %v402_v10, %v401_v8  ;;  %s1315_s29 = scalar_lea.vmem %s1376_s3, %s1014_s22 }
  0x12   : > { %v392_v15 = vpack.c.bf16 %v391_v12, %v390_v11  ;;  %v660_v31 = vld [vmem:[%s1315_s29 + $0x8] sm:$0xff]  ;;  %v662_v32 = vld [vmem:[%s1315_s29 + $0x18] sm:$0xff]  ;;  %v549_v41 = vld [vmem:[%s380_s28] sm:$0xff] }
  0x13   : > { %1063 = vmatpush3.bf16.msra.mxu0 %v1117_v7  ;;  %v664_v34 = vpack.c.bf16 %v662_v32, %v660_v31  ;;  %v550_v42 = vld [vmem:[%s380_s28 + $0x8] sm:$0xff]  ;;  %v659_v44 = vld [vmem:[%s1315_s29] sm:$0xff]  ;;  %v661_v45 = vld [vmem:[%s1315_s29 + $0x10] sm:$0xff] }
  0x14   : > { %1075 = vmatpush3.bf16.msra.mxu1 %v1118_v9  ;;  %1080 = vmatprep.subr.bf16.mxu0 %v1151_v1  ;;  %v551_v46 = vpack.c.bf16 %v550_v42, %v549_v41  ;;  %v663_v47 = vpack.c.bf16 %v661_v45, %v659_v44 }
  0x15   : > { %1034 = vmatprep.subr.bf16.mxu1 %v1119_v13 }
  0x16   : > { %1065 = vmatmul.mubr.msk.bf16.vlgmr.msra.gmra.mrb[0].mxu0 %vm436_vm1, %v403_v14 }
  0x17   : > { %1077 = vmatmul.mubr.msk.bf16.vlgmr.msra.gmra.mrb[0].mxu1 %vm436_vm1, %v392_v15  ;;  %1081 = vmatpush3.bf16.msra.mxu0 %v1120_v16 }
  0x18   : > { %1035 = vmatpush3.bf16.msra.mxu1 %v1121_v17  ;;  %1082 = vmatprep.subr.bf16.mxu0 %v1151_v1 }
  0x19   : > { %1036 = vmatprep.subr.bf16.mxu1 %v1122_v18  ;;  %1096 = vmatprep.mubr.msk.bf16.mxu0 %vm1152_vm0, %v1151_v1 }
  0x1a   : > { %825 = vmatprep.mubr.bf16.mxu1 %v664_v34 }
  0x1b   : > { %1083 = vmatpush3.bf16.msra.mxu0 %v1123_v19 }
  0x1c   : > { %1037 = vmatpush3.bf16.msra.mxu1 %v1124_v20  ;;  %1084 = vmatprep.subr.bf16.mxu0 %v1151_v1 }
  0x1d   : > { %1038 = vmatprep.subr.bf16.mxu1 %v1125_v21 }
  0x1f   : > { %1085 = vmatpush3.bf16.msra.mxu0 %v1126_v22 }
  0x20   : > { %1039 = vmatpush3.bf16.msra.mxu1 %v1127_v23  ;;  %1086 = vmatprep.subr.bf16.mxu0 %v1151_v1 }
  0x21   : > { %1040 = vmatprep.subr.bf16.mxu1 %v1128_v24 }
  0x23   : > { %1087 = vmatpush3.bf16.msra.mxu0 %v1129_v25 }
  0x24   : > { %1041 = vmatpush3.bf16.msra.mxu1 %v1130_v26  ;;  %1088 = vmatprep.subr.bf16.mxu0 %v1151_v1 }
  0x25   : > { %1042 = vmatprep.subr.bf16.mxu1 %v1131_v27 }
  0x27   : > { %1089 = vmatpush3.bf16.msra.mxu0 %v1132_v28 }
  0x28   : > { %1043 = vmatpush3.bf16.msra.mxu1 %v1133_v29  ;;  %1090 = vmatprep.subr.bf16.mxu0 %v1151_v1 }
  0x29   : > { %1044 = vmatprep.subr.bf16.mxu1 %v1134_v30 }
  0x2b   : > { %1091 = vmatpush3.bf16.msra.mxu0 %v1135_v33 }
  0x2c   : > { %1045 = vmatpush3.bf16.msra.mxu1 %v1136_v35  ;;  %1092 = vmatprep.subr.bf16.mxu0 %v1151_v1 }
  0x2d   : > { %1046 = vmatprep.subr.bf16.mxu1 %v1137_v36 }
  0x2f   : > { %1093 = vmatpush3.bf16.msra.mxu0 %v1138_v37 }
  0x30   : > { %1047 = vmatpush3.bf16.msra.mxu1 %v1139_v38  ;;  %1094 = vmatprep.subr.bf16.mxu0 %v1151_v1 }
  0x31   : > { %1048 = vmatprep.subr.bf16.mxu1 %v1140_v39 }
  0x33   : > { %1095 = vmatpush3.bf16.msra.mxu0 %v1141_v40 }
  0x34   : > { %1049 = vmatpush3.bf16.msra.mxu1 %v1142_v43 }
  0x36   : > { %1097 = vmatmul.mubr.bf16.vlgmr.msra.gmra.mrb[4].mxu0 %v551_v46 }
  0x37   : > { %826 = vmatmul.mubr.bf16.vlgmr.msra.gmra.mrb[4].mxu1 %v663_v47 }
  0xe9   : > { %v474_v48 = vpop.f32.mrb[0].mxu0 }
  0xea   : > { %v542_v49 = vpop.f32.mrb[0].mxu1  ;;  %v1066_v50 = vpop.f32.mrb[1].mxu0 }
  0xeb   : > { %v543_v51 = vadd.f32 %v542_v49, %v474_v48  ;;  %v1078_v52 = vpop.f32.mrb[1].mxu1  ;;  %v477_v53 = vpop.f32.mrb[2].mxu0 }
  0xec   : > { %v545_v54 = vpop.f32.mrb[2].mxu1  ;;  %v1067_v55 = vpop.f32.mrb[3].mxu0 }
  0xed   : > { %v546_v56 = vadd.f32 %v545_v54, %v477_v53  ;;  %v1079_v57 = vpop.f32.mrb[3].mxu1 }
 0x109   : > { %v650_v58 = vpop.f32.mrb[4].mxu0 }
 0x10a   : > { %v657_v59 = vadd.f32 %v650_v58, %v543_v51  ;;  %v1050_v60 = vpop.f32.mrb[4].mxu1  ;;  %v1098_v61 = vpop.f32.mrb[5].mxu0 }
 0x10b   : > { %v1051_v62 = vpop.f32.mrb[5].mxu1  ;;  %v653_v63 = vpop.f32.mrb[6].mxu0 }
 0x10c   : > { %v1052_v0 = vadd.f32 %v1051_v62, %v1050_v60  ;;  %v658_v1 = vadd.f32 %v653_v63, %v546_v56  ;;  %v1053_v2 = vpop.f32.mrb[6].mxu1  ;;  %v1099_v3 = vpop.f32.mrb[7].mxu0 }
 0x10d   : > { %v1054_v5 = vpop.f32.mrb[7].mxu1 }
 0x10e   : > { %v834_v6 = vadd.f32 %v1052_v0, %v657_v59  ;;  %v1055_v7 = vadd.f32 %v1054_v5, %v1053_v2 }
 0x110   : > { %v843_v8 = vadd.f32 %v1008_v4, %v834_v6  ;;  %v835_v9 = vadd.f32 %v1055_v7, %v658_v1 }
 0x112   : > { %vm845_vm2 = vcmp.ge.f32.partialorder %v843_v8, 0.0  ;;  %v847_v10 = vmul.f32 0.2, %v843_v8  ;;  %v844_v11 = vadd.f32 %v1008_v4, %v835_v9 }
 0x114   : > { %v849_v12 = vsel %vm845_vm2, %v843_v8, %v847_v10  ;;  %vm846_vm3 = vcmp.ge.f32.partialorder %v844_v11, 0.0  ;;  %v848_v13 = vmul.f32 0.2, %v844_v11 }
 0x115   : > { %v851_v15 = vsel %vm436_vm1, %v849_v12, -inf  ;;  %v862_v17 = vsel %vm436_vm1, %v849_v12, 0.0 }
 0x116   : > { %v850_v14 = vsel %vm846_vm3, %v844_v11, %v848_v13 }
 0x117   : > { %v852_v16 = vsel %vm436_vm1, %v850_v14, -inf  ;;  %v863_v18 = vsel %vm436_vm1, %v850_v14, 0.0 }
 0x118   : > { %v853_v19 = vmax.f32 %v851_v15, %v852_v16  ;;  %v864_v20 = vadd.f32 %v863_v18, %v862_v17 }
 0x11a   : > { %v854_v21 = vrot.slane %v853_v19, 4  ;;  %v865_v22 = vrot.slane %v864_v20, 4 }
 0x11c   : > { %v855_v23 = vmax.f32 %v853_v19, %v854_v21  ;;  %v866_v24 = vadd.f32 %v865_v22, %v864_v20 }
 0x11e   : > { %v856_v25 = vrot.slane %v855_v23, 2  ;;  %v867_v26 = vrot.slane %v866_v24, 2 }
 0x120   : > { %v868_v27 = vadd.f32 %v867_v26, %v866_v24  ;;  %v857_v28 = vmax.f32 %v855_v23, %v856_v25 }
 0x122   : > { %v869_v29 = vrot.slane %v868_v27, 1  ;;  %v858_v30 = vrot.slane %v857_v28, 1 }
 0x124   : > { %v870_v31 = vadd.f32 %v869_v29, %v868_v27  ;;  %v859_v32 = vmax.f32 %v857_v28, %v858_v30 }
 0x126   : > { %v871_v33 = vmul.f32 0.0625, %v870_v31  ;;  %861 = vst.msk [vmem:[%s388_s19] sm:$0x1] %vm860_vm4, %v859_v32 }
 0x128   : > { %873 = vrot.lane.b32.xlu0 %v871_v33, %s1153_s20 }
 0x19a   : > { %v874_v34 = vpop.permute.xlu0 %873 }
 0x19b   : > { %877 = vst.msk [vmem:[%s388_s19] sm:$0x1] %vm876_vm5, %v874_v34 }
 0x19c PF: > { %s19_s30 = sadd.s32 1, %s1149_s30  }
 0x19d   : > { %p16_p4 = scmp.ge.s32.totalorder %s19_s30, 4  }
 0x19f   :  { %18 = sbr.rel (!%p16_p4) target bundleno = 1 (0x1), region = 95 }

// kernel: dgcnn_forward.19
= control target key start
LH: loop header
LB: loop body
LE: loop exit
PB: predicated region body
PF: predicated region fallthrough
CT: control target
= control target key end

     0   :  { %v1346_v2 = vmov 0   ;;  %s1772_s0 = inlined_call_operand.vmem [shape: f32[2,128], index: 0, kind: input, shape index: {}]   ;;  %s1773_s1 = inlined_call_operand.vmem [shape: bf16[128,512], index: 1, kind: input, shape index: {}]   ;;  %s1774_s2 = inlined_call_operand.vmem [shape: f32[1,512], index: 2, kind: input, shape index: {}]   ;;  %s1775_s3 = inlined_call_operand.vmem [shape: bf16[512,256], index: 3, kind: input, shape index: {}]   ;;  %s1776_s4 = inlined_call_operand.vmem [shape: f32[1,256], index: 4, kind: input, shape index: {}]   ;;  %s1777_s5 = inlined_call_operand.vmem [shape: bf16[256,40], index: 5, kind: input, shape index: {}]   ;;  %s1778_s6 = inlined_call_operand.vmem [shape: f32[1,40], index: 6, kind: input, shape index: {}]   ;;  %s1779_s7 = inlined_call_operand.hbm [shape: f32[2,40], index: 7, kind: output, shape index: {}]  }
   0x1   :  { %v1162_v0 = vld [vmem:[%s1773_s1 + $0x4] ss:$16 sps:$4 sm:$0xff]   ;;  %v1164_v1 = vld [vmem:[%s1773_s1] ss:$16 sps:$4 sm:$0xff]   ;;  %276 = vmatprep.mubr.bf16.mxu1 %v1346_v2  ;;  %v1188_v23 = vld [vmem:[%s1773_s1 + $0xc] ss:$16 sps:$4 sm:$0xff]  }
   0x2   :  { %244 = vmatprep.subr.bf16.mxu1 %v1162_v0  ;;  %v1165_v3 = vld [vmem:[%s1773_s1 + $0x24] ss:$16 sps:$4 sm:$0xff]   ;;  %v1167_v4 = vld [vmem:[%s1773_s1 + $0x20] ss:$16 sps:$4 sm:$0xff]   ;;  %v1186_v27 = vld [vmem:[%s1773_s1 + $0x8] ss:$16 sps:$4 sm:$0xff]  }
   0x3   :  { %245 = vmatpush1.bf16.msra.mxu1 %v1164_v1  ;;  %v1168_v5 = vld [vmem:[%s1773_s1 + $0x44] ss:$16 sps:$4 sm:$0xff]   ;;  %v1170_v6 = vld [vmem:[%s1773_s1 + $0x40] ss:$16 sps:$4 sm:$0xff]   ;;  %v1191_v28 = vld [vmem:[%s1773_s1 + $0x2c] ss:$16 sps:$4 sm:$0xff]  }
   0x4   :  { %246 = vmatprep.subr.bf16.mxu1 %v1165_v3  ;;  %v1171_v7 = vld [vmem:[%s1773_s1 + $0x64] ss:$16 sps:$4 sm:$0xff]   ;;  %v1173_v8 = vld [vmem:[%s1773_s1 + $0x60] ss:$16 sps:$4 sm:$0xff]   ;;  %v1189_v31 = vld [vmem:[%s1773_s1 + $0x28] ss:$16 sps:$4 sm:$0xff]  }
   0x5   :  { %v1174_v9 = vld [vmem:[%s1773_s1 + $0x84] ss:$16 sps:$4 sm:$0xff]   ;;  %v1176_v10 = vld [vmem:[%s1773_s1 + $0x80] ss:$16 sps:$4 sm:$0xff]   ;;  %v1194_v32 = vld [vmem:[%s1773_s1 + $0x4c] ss:$16 sps:$4 sm:$0xff]  }
   0x6   :  { %v1177_v11 = vld [vmem:[%s1773_s1 + $0xa4] ss:$16 sps:$4 sm:$0xff]   ;;  %v1179_v12 = vld [vmem:[%s1773_s1 + $0xa0] ss:$16 sps:$4 sm:$0xff]   ;;  %v1192_v34 = vld [vmem:[%s1773_s1 + $0x48] ss:$16 sps:$4 sm:$0xff]  }
   0x7   :  { %247 = vmatpush1.bf16.msra.mxu1 %v1167_v4  ;;  %v1180_v13 = vld [vmem:[%s1773_s1 + $0xc4] ss:$16 sps:$4 sm:$0xff]   ;;  %v1182_v14 = vld [vmem:[%s1773_s1 + $0xc0] ss:$16 sps:$4 sm:$0xff]   ;;  %v1197_v36 = vld [vmem:[%s1773_s1 + $0x6c] ss:$16 sps:$4 sm:$0xff]  }
   0x8   :  { %248 = vmatprep.subr.bf16.mxu1 %v1168_v5  ;;  %v1210_v15 = vld [vmem:[%s1775_s3 + $0x4] ss:$8 sps:$4 sm:$0xff]   ;;  %v1212_v16 = vld [vmem:[%s1775_s3] ss:$8 sps:$4 sm:$0xff]   ;;  %v1213_v17 = vld [vmem:[%s1775_s3 + $0x14] ss:$8 sps:$4 sm:$0xff]  }
   0x9   :  { %v1183_v18 = vld [vmem:[%s1773_s1 + $0xe4] ss:$16 sps:$4 sm:$0xff]   ;;  %738 = vmatprep.subr.bf16.mxu0 %v1210_v15  ;;  %v1215_v19 = vld [vmem:[%s1775_s3 + $0x10] ss:$8 sps:$4 sm:$0xff]   ;;  %v28_v22 = vld [vmem:[%s1772_s0] sm:$0x3] }
   0xa   :  { %739 = vmatpush1.bf16.msra.mxu0 %v1212_v16  ;;  %v1185_v20 = vld [vmem:[%s1773_s1 + $0xe0] ss:$16 sps:$4 sm:$0xff]   ;;  %v1216_v21 = vld [vmem:[%s1775_s3 + $0x24] ss:$8 sps:$4 sm:$0xff]   ;;  %v1460_v25 = vpack.c.bf16 %v28_v22, %v28_v22  ;;  %v1219_v26 = vld [vmem:[%s1775_s3 + $0x34] ss:$8 sps:$4 sm:$0xff]  }
   0xb   :  { %249 = vmatpush1.bf16.msra.mxu1 %v1170_v6  ;;  %740 = vmatprep.subr.bf16.mxu0 %v1213_v17  ;;  %v1218_v24 = vld [vmem:[%s1775_s3 + $0x20] ss:$8 sps:$4 sm:$0xff]   ;;  %v1221_v29 = vld [vmem:[%s1775_s3 + $0x30] ss:$8 sps:$4 sm:$0xff]   ;;  %v1222_v30 = vld [vmem:[%s1775_s3 + $0x44] ss:$8 sps:$4 sm:$0xff]  }
   0xc   :  { %250 = vmatprep.subr.bf16.mxu1 %v1171_v7  ;;  %v1224_v33 = vld [vmem:[%s1775_s3 + $0x40] ss:$8 sps:$4 sm:$0xff]   ;;  %v1225_v35 = vld [vmem:[%s1775_s3 + $0x54] ss:$8 sps:$4 sm:$0xff]   ;;  %v1227_v37 = vld [vmem:[%s1775_s3 + $0x50] ss:$8 sps:$4 sm:$0xff]  }
   0xd   :  { %v1228_v38 = vld [vmem:[%s1775_s3 + $0x64] ss:$8 sps:$4 sm:$0xff]   ;;  %v1195_v39 = vld [vmem:[%s1773_s1 + $0x68] ss:$16 sps:$4 sm:$0xff]   ;;  %v1231_v42 = vld [vmem:[%s1775_s3 + $0x74] ss:$8 sps:$4 sm:$0xff]  }
   0xe   :  { %741 = vmatpush1.bf16.msra.mxu0 %v1215_v19  ;;  %v1200_v40 = vld [vmem:[%s1773_s1 + $0x8c] ss:$16 sps:$4 sm:$0xff]   ;;  %v1230_v41 = vld [vmem:[%s1775_s3 + $0x60] ss:$8 sps:$4 sm:$0xff]   ;;  %v1233_v45 = vld [vmem:[%s1775_s3 + $0x70] ss:$8 sps:$4 sm:$0xff]  }
   0xf   :  { %251 = vmatpush1.bf16.msra.mxu1 %v1173_v8  ;;  %742 = vmatprep.subr.bf16.mxu0 %v1216_v21  ;;  %v1198_v43 = vld [vmem:[%s1773_s1 + $0x88] ss:$16 sps:$4 sm:$0xff]   ;;  %v1203_v44 = vld [vmem:[%s1773_s1 + $0xac] ss:$16 sps:$4 sm:$0xff]  }
  0x10   :  { %252 = vmatprep.subr.bf16.mxu1 %v1174_v9  ;;  %v1234_v46 = vld [vmem:[%s1775_s3 + $0x84] ss:$8 sps:$4 sm:$0xff]   ;;  %v1201_v47 = vld [vmem:[%s1773_s1 + $0xa8] ss:$16 sps:$4 sm:$0xff]   ;;  %v1237_v50 = vld [vmem:[%s1775_s3 + $0x94] ss:$8 sps:$4 sm:$0xff]  }
  0x11   :  { %v1206_v48 = vld [vmem:[%s1773_s1 + $0xcc] ss:$16 sps:$4 sm:$0xff]   ;;  %v1236_v49 = vld [vmem:[%s1775_s3 + $0x80] ss:$8 sps:$4 sm:$0xff]   ;;  %v1239_v53 = vld [vmem:[%s1775_s3 + $0x90] ss:$8 sps:$4 sm:$0xff]  }
  0x12   :  { %743 = vmatpush1.bf16.msra.mxu0 %v1218_v24  ;;  %v1204_v51 = vld [vmem:[%s1773_s1 + $0xc8] ss:$16 sps:$4 sm:$0xff]   ;;  %v1209_v52 = vld [vmem:[%s1773_s1 + $0xec] ss:$16 sps:$4 sm:$0xff]  }
  0x13   :  { %253 = vmatpush1.bf16.msra.mxu1 %v1176_v10  ;;  %744 = vmatprep.subr.bf16.mxu0 %v1219_v26  ;;  %v1240_v54 = vld [vmem:[%s1775_s3 + $0xa4] ss:$8 sps:$4 sm:$0xff]   ;;  %v1207_v55 = vld [vmem:[%s1773_s1 + $0xe8] ss:$16 sps:$4 sm:$0xff]   ;;  %v1243_v57 = vld [vmem:[%s1775_s3 + $0xb4] ss:$8 sps:$4 sm:$0xff]  }
  0x14   :  { %254 = vmatprep.subr.bf16.mxu1 %v1177_v11  ;;  %v1242_v56 = vld [vmem:[%s1775_s3 + $0xa0] ss:$8 sps:$4 sm:$0xff]  }
  0x16   :  { %745 = vmatpush1.bf16.msra.mxu0 %v1221_v29 }
  0x17   :  { %255 = vmatpush1.bf16.msra.mxu1 %v1179_v12  ;;  %746 = vmatprep.subr.bf16.mxu0 %v1222_v30 }
  0x18   :  { %256 = vmatprep.subr.bf16.mxu1 %v1180_v13 }
  0x1a   :  { %747 = vmatpush1.bf16.msra.mxu0 %v1224_v33 }
  0x1b   :  { %257 = vmatpush1.bf16.msra.mxu1 %v1182_v14  ;;  %748 = vmatprep.subr.bf16.mxu0 %v1225_v35 }
  0x1c   :  { %258 = vmatprep.subr.bf16.mxu1 %v1183_v18 }
  0x1e   :  { %749 = vmatpush1.bf16.msra.mxu0 %v1227_v37 }
  0x1f   :  { %259 = vmatpush1.bf16.msra.mxu1 %v1185_v20  ;;  %750 = vmatprep.subr.bf16.mxu0 %v1228_v38 }
  0x20   :  { %285 = vmatprep.subr.bf16.mxu1 %v1188_v23 }
  0x22   :  { %277 = vmatmul.mubr.bf16.vlgmr.msra.gmra.mrb[0].mxu1 %v1460_v25  ;;  %751 = vmatpush1.bf16.msra.mxu0 %v1230_v41 }
  0x23   :  { %286 = vmatpush1.bf16.msra.mxu1 %v1186_v27  ;;  %317 = vmatprep.mubr.bf16.mxu1 %v1346_v2 }
  0x24   :  { %287 = vmatprep.subr.bf16.mxu1 %v1191_v28  ;;  %752 = vmatprep.subr.bf16.mxu0 %v1231_v42 }
  0x26   :  { %753 = vmatpush1.bf16.msra.mxu0 %v1233_v45 }
  0x27   :  { %288 = vmatpush1.bf16.msra.mxu1 %v1189_v31  ;;  %754 = vmatprep.subr.bf16.mxu0 %v1234_v46 }
  0x28   :  { %289 = vmatprep.subr.bf16.mxu1 %v1194_v32 }
  0x2a   :  { %755 = vmatpush1.bf16.msra.mxu0 %v1236_v49 }
  0x2b   :  { %290 = vmatpush1.bf16.msra.mxu1 %v1192_v34  ;;  %756 = vmatprep.subr.bf16.mxu0 %v1237_v50 }
  0x2c   :  { %291 = vmatprep.subr.bf16.mxu1 %v1197_v36 }
  0x2e   :  { %757 = vmatpush1.bf16.msra.mxu0 %v1239_v53 }
  0x2f   :  { %292 = vmatpush1.bf16.msra.mxu1 %v1195_v39  ;;  %758 = vmatprep.subr.bf16.mxu0 %v1240_v54 }
  0x30   :  { %293 = vmatprep.subr.bf16.mxu1 %v1200_v40 }
  0x33   :  { %294 = vmatpush1.bf16.msra.mxu1 %v1198_v43 }
  0x34   :  { %295 = vmatprep.subr.bf16.mxu1 %v1203_v44 }
  0x37   :  { %296 = vmatpush1.bf16.msra.mxu1 %v1201_v47 }
  0x38   :  { %297 = vmatprep.subr.bf16.mxu1 %v1206_v48 }
  0x3b   :  { %298 = vmatpush1.bf16.msra.mxu1 %v1204_v51 }
  0x3c   :  { %299 = vmatprep.subr.bf16.mxu1 %v1209_v52 }
  0x3f   :  { %300 = vmatpush1.bf16.msra.mxu1 %v1207_v55 }
  0x40   :  { %12 = vsyncpa [#allocation3], 0  ;;  %759 = vmatpush1.bf16.msra.mxu0 %v1242_v56  ;;  %v1245_v58 = vld [vmem:[%s1775_s3 + $0xb0] ss:$8 sps:$4 sm:$0xff]   ;;  %v1246_v59 = vld [vmem:[%s1775_s3 + $0xc4] ss:$8 sps:$4 sm:$0xff]   ;;  %v64_v16 = vlaneseq }
  0x41   :  { %760 = vmatprep.subr.bf16.mxu0 %v1243_v57  ;;  %v1248_v60 = vld [vmem:[%s1775_s3 + $0xc0] ss:$8 sps:$4 sm:$0xff]   ;;  %v1249_v61 = vld [vmem:[%s1775_s3 + $0xd4] ss:$8 sps:$4 sm:$0xff]   ;;  %v1251_v62 = vld [vmem:[%s1775_s3 + $0xd0] ss:$8 sps:$4 sm:$0xff]  }
  0x42   :  { %318 = vmatmul.mubr.bf16.vlgmr.msra.gmra.mrb[4].mxu1 %v1460_v25  ;;  %v1252_v63 = vld [vmem:[%s1775_s3 + $0xe4] ss:$8 sps:$4 sm:$0xff]   ;;  %v1254_v0 = vld [vmem:[%s1775_s3 + $0xe0] ss:$8 sps:$4 sm:$0xff]   ;;  %v1255_v1 = vld [vmem:[%s1775_s3 + $0xf4] ss:$8 sps:$4 sm:$0xff]  }
  0x43   :  { %v1257_v2 = vld [vmem:[%s1775_s3 + $0xf0] ss:$8 sps:$4 sm:$0xff]   ;;  %v1260_v3 = vld [vmem:[%s1775_s3 + $0x104] ss:$8 sps:$4 sm:$0xff]   ;;  %v1626_v17 = vshrl.u32 %v64_v16, 7  ;;  %s1347_s30 = smov [#allocation2]  }
  0x44   :  { %761 = vmatpush1.bf16.msra.mxu0 %v1245_v58  ;;  %v1306_v4 = vld [vmem:[%s1777_s5 + $0x40] sm:$0xff]   ;;  %v1308_v6 = vld [vmem:[%s1777_s5 + $0x48] sm:$0xff]   ;;  %v1310_v8 = vld [vmem:[%s1777_s5 + $0x50] sm:$0xff]   ;;  %s1011_s8 = sshll.u32 %s1347_s30, 4  ;;  %vm1003_vm6 = vcmask 320512   ;;  %s1012_s8 = int_to_ptr.vmem [resolvable:$true] %s1011_s8 }
  0x45   :  { %762 = vmatprep.subr.bf16.mxu0 %v1246_v59  ;;  %v1307_v5 = vld [vmem:[%s1777_s5] sm:$0xff]   ;;  %1132 = vmatprep.subr.bf16.mxu1 %v1306_v4  ;;  %v1309_v7 = vld [vmem:[%s1777_s5 + $0x8] sm:$0xff]   ;;  %v1311_v9 = vld [vmem:[%s1777_s5 + $0x10] sm:$0xff]   ;;  %v66_v18 = vsub.s32 0, %v1626_v17  ;;  %v70_v20 = vsub.s32 1, %v1626_v17  ;;  %v78_v45 = vsub.s32 3, %v1626_v17  ;;  %p1327_p1 = scmp.lt.s32.totalorder %s1012_s8, %s1012_s8 }
  0x46   :  { %1133 = vmatpush3.bf16.msra.mxu1 %v1307_v5  ;;  %v1312_v10 = vld [vmem:[%s1777_s5 + $0x58] sm:$0xff]   ;;  %v1314_v12 = vld [vmem:[%s1777_s5 + $0x60] sm:$0xff]   ;;  %v1316_v14 = vld [vmem:[%s1777_s5 + $0x68] sm:$0xff]   ;;  %v74_v5 = vsub.s32 2, %v1626_v17  ;;  %s1322_s9 = scalar_lea.vmem %s1012_s8, 32 }
  0x47   :  { %1134 = vmatprep.subr.bf16.mxu1 %v1308_v6  ;;  %v1313_v11 = vld [vmem:[%s1777_s5 + $0x18] sm:$0xff]   ;;  %v1315_v13 = vld [vmem:[%s1777_s5 + $0x20] sm:$0xff]   ;;  %v1317_v15 = vld [vmem:[%s1777_s5 + $0x28] sm:$0xff]   ;;  %p1323_p0 = scmp.ne.s32.totalorder %s1012_s8, %s1322_s9  ;;  %p1328_p2 = scmp.lt.s32.totalorder %s1322_s9, %s1322_s9 }
  0x48   :  { %763 = vmatpush1.bf16.msra.mxu0 %v1248_v60  ;;  %v1632_v19 = vld [vmem:[%s1774_s2] sm:$0xf]  ;;  %v1263_v36 = vld [vmem:[%s1775_s3 + $0x114] ss:$8 sps:$4 sm:$0xff]   ;;  %v1261_v37 = vld [vmem:[%s1775_s3 + $0x110] ss:$8 sps:$4 sm:$0xff]  }
  0x49   :  { %764 = vmatprep.subr.bf16.mxu0 %v1249_v61  ;;  %v67_v21 = vrot.slane %v1632_v19, %v66_v18  ;;  %v71_v22 = vrot.slane %v1632_v19, %v70_v20  ;;  %v1258_v34 = vld [vmem:[%s1775_s3 + $0x100] ss:$8 sps:$4 sm:$0xff]   ;;  %v1266_v38 = vld [vmem:[%s1775_s3 + $0x124] ss:$8 sps:$4 sm:$0xff]   ;;  %v1269_v40 = vld [vmem:[%s1775_s3 + $0x134] ss:$8 sps:$4 sm:$0xff]   ;;  %v79_v48 = vrot.slane %v1632_v19, %v78_v45  ;;  %p1329_p3 = por %p1328_p2, %p1327_p1 }
  0x4a   :  { %1135 = vmatpush3.bf16.msra.mxu1 %v1309_v7  ;;  %v1264_v39 = vld [vmem:[%s1775_s3 + $0x120] ss:$8 sps:$4 sm:$0xff]   ;;  %v1267_v41 = vld [vmem:[%s1775_s3 + $0x130] ss:$8 sps:$4 sm:$0xff]   ;;  %v1272_v42 = vld [vmem:[%s1775_s3 + $0x144] ss:$8 sps:$4 sm:$0xff]  }
  0x4b   :  { %1136 = vmatprep.subr.bf16.mxu1 %v1310_v8  ;;  %v1270_v43 = vld [vmem:[%s1775_s3 + $0x140] ss:$8 sps:$4 sm:$0xff]   ;;  %v1275_v44 = vld [vmem:[%s1775_s3 + $0x154] ss:$8 sps:$4 sm:$0xff]   ;;  %v1273_v46 = vld [vmem:[%s1775_s3 + $0x150] ss:$8 sps:$4 sm:$0xff]   ;;  %v75_v8 = vrot.slane %v1632_v19, %v74_v5  ;;  %p1330_p4 = pnand %p1329_p3, %p1323_p0 }
  0x4c   :  { %765 = vmatpush1.bf16.msra.mxu0 %v1251_v62  ;;  %v1278_v47 = vld [vmem:[%s1775_s3 + $0x164] ss:$8 sps:$4 sm:$0xff]   ;;  %v1276_v49 = vld [vmem:[%s1775_s3 + $0x160] ss:$8 sps:$4 sm:$0xff]   ;;  %v1281_v50 = vld [vmem:[%s1775_s3 + $0x174] ss:$8 sps:$4 sm:$0xff]  }
  0x4d   :  { %766 = vmatprep.subr.bf16.mxu0 %v1252_v63  ;;  %v1279_v55 = vld [vmem:[%s1775_s3 + $0x170] ss:$8 sps:$4 sm:$0xff]   ;;  %v1284_v57 = vld [vmem:[%s1775_s3 + $0x184] ss:$8 sps:$4 sm:$0xff]   ;;  %v1282_v60 = vld [vmem:[%s1775_s3 + $0x180] ss:$8 sps:$4 sm:$0xff]  }
  0x4e   :  { %1137 = vmatpush3.bf16.msra.mxu1 %v1311_v9  ;;  %v1287_v62 = vld [vmem:[%s1775_s3 + $0x194] ss:$8 sps:$4 sm:$0xff]   ;;  %v1285_v63 = vld [vmem:[%s1775_s3 + $0x190] ss:$8 sps:$4 sm:$0xff]   ;;  %v1296_v4 = vld [vmem:[%s1775_s3 + $0x1c4] ss:$8 sps:$4 sm:$0xff]  }
  0x4f   :  { %1138 = vmatprep.subr.bf16.mxu1 %v1312_v10  ;;  %v1294_v6 = vld [vmem:[%s1775_s3 + $0x1c0] ss:$8 sps:$4 sm:$0xff]   ;;  %v1299_v7 = vld [vmem:[%s1775_s3 + $0x1d4] ss:$8 sps:$4 sm:$0xff]   ;;  %v1297_v9 = vld [vmem:[%s1775_s3 + $0x1d0] ss:$8 sps:$4 sm:$0xff]  }
  0x50   :  { %767 = vmatpush1.bf16.msra.mxu0 %v1254_v0  ;;  %v1290_v0 = vld [vmem:[%s1775_s3 + $0x1a4] ss:$8 sps:$4 sm:$0xff]   ;;  %v1115_v17 = vld [vmem:[%s1778_s6] ss:$0 sm:$0xff] }
  0x51   :  { %768 = vmatprep.subr.bf16.mxu0 %v1255_v1  ;;  %v1288_v1 = vld [vmem:[%s1775_s3 + $0x1a0] ss:$8 sps:$4 sm:$0xff]   ;;  %v1302_v10 = vld [vmem:[%s1775_s3 + $0x1e4] ss:$8 sps:$4 sm:$0xff]  }
  0x52   :  { %1139 = vmatpush3.bf16.msra.mxu1 %v1313_v11 }
  0x53   :  { %1140 = vmatprep.subr.bf16.mxu1 %v1314_v12  ;;  %v1300_v12 = vld [vmem:[%s1775_s3 + $0x1e0] ss:$8 sps:$4 sm:$0xff]  }
  0x54   :  { %769 = vmatpush1.bf16.msra.mxu0 %v1257_v2  ;;  %v1293_v2 = vld [vmem:[%s1775_s3 + $0x1b4] ss:$8 sps:$4 sm:$0xff]  }
  0x55   :  { %779 = vmatprep.subr.bf16.mxu0 %v1260_v3  ;;  %v1291_v3 = vld [vmem:[%s1775_s3 + $0x1b0] ss:$8 sps:$4 sm:$0xff]  }
  0x56   :  { %1141 = vmatpush3.bf16.msra.mxu1 %v1315_v13  ;;  %v1305_v13 = vld [vmem:[%s1775_s3 + $0x1f4] ss:$8 sps:$4 sm:$0xff]  }
  0x57   :  { %1142 = vmatprep.subr.bf16.mxu1 %v1316_v14 }
  0x5a   :  { %1143 = vmatpush3.bf16.msra.mxu1 %v1317_v15  ;;  %v1303_v15 = vld [vmem:[%s1775_s3 + $0x1f0] ss:$8 sps:$4 sm:$0xff]  }
  0xf5   :  { %v278_v23 = vpop.f32.mrb[0].mxu1 }
  0xf6   :  { %v279_v24 = vadd.f32 %v278_v23, %v67_v21  ;;  %v280_v25 = vpop.f32.mrb[1].mxu1  ;;  %v1318_v21 = vld [vmem:[%s1777_s5 + $0x70] sm:$0xff]   ;;  %v1320_v23 = vld [vmem:[%s1777_s5 + $0x78] sm:$0xff]  }
  0xf7   :  { %v281_v26 = vadd.f32 %v280_v25, %v71_v22  ;;  %v282_v27 = vpop.f32.mrb[2].mxu1  ;;  %v1319_v22 = vld [vmem:[%s1777_s5 + $0x30] sm:$0xff]   ;;  %1144 = vmatprep.subr.bf16.mxu1 %v1318_v21  ;;  %v406_v25 = vld [vmem:[%s1776_s4] sm:$0x3] }
  0xf8   :  { %vm326_vm0 = vcmp.ge.f32.partialorder %v279_v24, 0.0  ;;  %v330_v28 = vmul.f32 0.2, %v279_v24  ;;  %v283_v29 = vpop.f32.mrb[3].mxu1  ;;  %1145 = vmatpush3.bf16.msra.mxu1 %v1319_v22  ;;  %v415_v27 = vrot.slane %v406_v25, %v70_v20 }
  0xf9   :  { %vm327_vm1 = vcmp.ge.f32.partialorder %v281_v26, 0.0  ;;  %v331_v30 = vmul.f32 0.2, %v281_v26  ;;  %1146 = vmatprep.subr.bf16.mxu1 %v1320_v23 }
  0xfa   :  { %v334_v31 = vsel %vm326_vm0, %v279_v24, %v330_v28  ;;  %v1321_v24 = vld [vmem:[%s1777_s5 + $0x38] sm:$0xff]  }
  0xfb   :  { %v335_v32 = vsel %vm327_vm1, %v281_v26, %v331_v30  ;;  %v338_v35 = vpack.c.bf16 %v334_v31, %v334_v31  ;;  %v411_v26 = vrot.slane %v406_v25, %v66_v18 }
  0xfc   :  { %v339_v33 = vpack.c.bf16 %v335_v32, %v335_v32  ;;  %1147 = vmatpush3.bf16.msra.mxu1 %v1321_v24 }
  0xfe   :  { %770 = vmatprep.mubr.bf16.mxu0 %v339_v33 }
  0xff   :  { %771 = vmatmul.mubr.bf16.vlgmr.msra.gmra.mrb[0].mxu0 %v338_v35 }
 0x100   :  { %780 = vmatpush1.bf16.msra.mxu0 %v1258_v34 }
 0x101   :  { %781 = vmatprep.subr.bf16.mxu0 %v1263_v36 }
 0x104   :  { %782 = vmatpush1.bf16.msra.mxu0 %v1261_v37 }
 0x105   :  { %783 = vmatprep.subr.bf16.mxu0 %v1266_v38 }
 0x108   :  { %784 = vmatpush1.bf16.msra.mxu0 %v1264_v39 }
 0x109   :  { %785 = vmatprep.subr.bf16.mxu0 %v1269_v40 }
 0x10c   :  { %786 = vmatpush1.bf16.msra.mxu0 %v1267_v41 }
 0x10d   :  { %787 = vmatprep.subr.bf16.mxu0 %v1272_v42 }
 0x110   :  { %788 = vmatpush1.bf16.msra.mxu0 %v1270_v43 }
 0x111   :  { %789 = vmatprep.subr.bf16.mxu0 %v1275_v44 }
 0x114   :  { %790 = vmatpush1.bf16.msra.mxu0 %v1273_v46 }
 0x115   :  { %791 = vmatprep.subr.bf16.mxu0 %v1278_v47  ;;  %v319_v51 = vpop.f32.mrb[4].mxu1 }
 0x116   :  { %v321_v52 = vpop.f32.mrb[5].mxu1  ;;  %v320_v11 = vadd.f32 %v319_v51, %v75_v8 }
 0x117   :  { %v322_v53 = vadd.f32 %v321_v52, %v79_v48  ;;  %v323_v54 = vpop.f32.mrb[6].mxu1 }
 0x118   :  { %792 = vmatpush1.bf16.msra.mxu0 %v1276_v49  ;;  %v324_v56 = vpop.f32.mrb[7].mxu1  ;;  %v332_v14 = vmul.f32 0.2, %v320_v11  ;;  %vm328_vm3 = vcmp.ge.f32.partialorder %v320_v11, 0.0 }
 0x119   :  { %793 = vmatprep.subr.bf16.mxu0 %v1281_v50  ;;  %vm329_vm2 = vcmp.ge.f32.partialorder %v322_v53, 0.0  ;;  %v333_v58 = vmul.f32 0.2, %v322_v53 }
 0x11a   :  { %v336_v16 = vsel %vm328_vm3, %v320_v11, %v332_v14 }
 0x11b   :  { %v337_v59 = vsel %vm329_vm2, %v322_v53, %v333_v58  ;;  %v340_v19 = vpack.c.bf16 %v336_v16, %v336_v16 }
 0x11c   :  { %794 = vmatpush1.bf16.msra.mxu0 %v1279_v55  ;;  %v341_v61 = vpack.c.bf16 %v337_v59, %v337_v59 }
 0x11d   :  { %795 = vmatprep.subr.bf16.mxu0 %v1284_v57 }
 0x11e   :  { %811 = vmatprep.mubr.bf16.mxu0 %v341_v61 }
 0x120   :  { %796 = vmatpush1.bf16.msra.mxu0 %v1282_v60 }
 0x121   :  { %797 = vmatprep.subr.bf16.mxu0 %v1287_v62 }
 0x124   :  { %798 = vmatpush1.bf16.msra.mxu0 %v1285_v63 }
 0x125   :  { %799 = vmatprep.subr.bf16.mxu0 %v1290_v0 }
 0x128   :  { %800 = vmatpush1.bf16.msra.mxu0 %v1288_v1 }
 0x129   :  { %801 = vmatprep.subr.bf16.mxu0 %v1293_v2 }
 0x12c   :  { %802 = vmatpush1.bf16.msra.mxu0 %v1291_v3 }
 0x12d   :  { %803 = vmatprep.subr.bf16.mxu0 %v1296_v4 }
 0x130   :  { %804 = vmatpush1.bf16.msra.mxu0 %v1294_v6 }
 0x131   :  { %805 = vmatprep.subr.bf16.mxu0 %v1299_v7 }
 0x134   :  { %806 = vmatpush1.bf16.msra.mxu0 %v1297_v9 }
 0x135   :  { %807 = vmatprep.subr.bf16.mxu0 %v1302_v10 }
 0x138   :  { %808 = vmatpush1.bf16.msra.mxu0 %v1300_v12 }
 0x139   :  { %809 = vmatprep.subr.bf16.mxu0 %v1305_v13 }
 0x13c   :  { %810 = vmatpush1.bf16.msra.mxu0 %v1303_v15 }
 0x13f   :  { %812 = vmatmul.mubr.bf16.vlgmr.msra.gmra.mrb[0].mxu0 %v340_v19 }
 0x212   :  { %v813_v28 = vpop.f32.mrb[0].mxu0 }
 0x213   :  { %v1154_v29 = vadd.f32 %v813_v28, %v411_v26  ;;  %v815_v30 = vpop.f32.mrb[1].mxu0 }
 0x214   :  { %v1155_v31 = vadd.f32 %v815_v30, %v415_v27  ;;  %v817_v32 = vpop.f32.mrb[2].mxu0 }
 0x215   :  { %vm820_vm4 = vcmp.ge.f32.partialorder %v1154_v29, 0.0  ;;  %v822_v33 = vmul.f32 0.2, %v1154_v29  ;;  %v818_v34 = vpop.f32.mrb[3].mxu0 }
 0x216   :  { %vm821_vm5 = vcmp.ge.f32.partialorder %v1155_v31, 0.0  ;;  %v823_v35 = vmul.f32 0.2, %v1155_v31 }
 0x217   :  { %v824_v36 = vsel %vm820_vm4, %v1154_v29, %v822_v33 }
 0x218   :  { %v825_v37 = vsel %vm821_vm5, %v1155_v31, %v823_v35  ;;  %v826_v39 = vpack.c.bf16 %v824_v36, %v824_v36 }
 0x219   :  { %v827_v38 = vpack.c.bf16 %v825_v37, %v825_v37 }
 0x21b   :  { %995 = vmatprep.mubr.bf16.mxu1 %v827_v38 }
 0x21c   :  { %996 = vmatmul.mubr.bf16.vlgmr.msra.gmra.mrb[8].mxu1 %v826_v39 }
 0x2ef   :  { %v1148_v18 = vpop.f32.mrb[8].mxu1 }
 0x2f0   :  { %v1149_v20 = vpop.f32.mrb[9].mxu1 }
 0x2f1   :  { %v1150_v40 = vadd.f32 %v1149_v20, %v1148_v18  ;;  %v1151_v41 = vpop.f32.mrb[10].mxu1 }
 0x2f2   :  { %v1152_v42 = vpop.f32.mrb[11].mxu1 }
 0x2f3   :  { %v998_v43 = vadd.f32 %v1150_v40, %v1115_v17 }
 0x2f5   :  { %1004 = vst.msk [vmem:[#allocation2] sm:$0x3] %vm1003_vm6, %v998_v43 }
 0x2f6   :  { %1333 = shalt.err (!%p1330_p4)
}
 0x2f7   :  { %s1334_s6 = scalar_lea.hbm %s1779_s7, 32 }
 0x2f8   :  { %p1335_p5 = scmp.ne.s32.totalorder %s1779_s7, %s1334_s6  ;;  %p1338_p6 = scmp.lt.u32.totalorder %s1334_s6, %s1779_s7 }
 0x2fa   :  { %p1340_p7 = pnand %p1338_p6, %p1335_p5 }
 0x2fc   :  { %1343 = shalt.err (!%p1340_p7)
}
 0x2fd   :  { %1014 = dma.vmem_to_hbm [thread:$0]  %s1012_s8, 32, %s1779_s7, [#allocation3]  }
 0x2fe   :  { %1344 = dma.done.wait [#allocation3], 32  }
 0x2ff   :  { %1345 = vsyncadd [#allocation3], 4294967264 }
 0x300   :  { %1018 = vsyncpa [#allocation3], 1 }

</bundles_post_ra>
